<compile_context>
chip_gen: v7x
topology: tpu7x:2x2x1
jax: 0.10.0
libtpu: 0.0.40
codegen_flags: <defaults>
</compile_context>

<pallas_src>
import numpy as np
import jax
import jax.numpy as jnp
from jax.experimental import pallas as pl
from jax.experimental.pallas import tpu as pltpu

# ----------------------------- configuration (small, forward-consistent) ----
FEATURE_VECTOR_SIZE = 16
D_IN = 3
D_OUT = 1
HIDDEN = [32, 32, 32, 32]
SKIP_IN = (2,)
BIAS = 1.0
MULTIRES = 0              # -> embed_fn is None
INSIDE_OUTSIDE = False
GEOMETRIC_INIT = True

DIMS = [D_IN] + HIDDEN + [D_OUT + FEATURE_VECTOR_SIZE]
NUM_LAYERS = len(DIMS)    # 6 -> 5 linear layers
OUT_DIM = D_OUT + FEATURE_VECTOR_SIZE


# ----------------------------- parameter construction (deterministic) -------
def build_params(key):
    """Returns (layer_kinds, flat_param_list). Weights stored as (in, out), bias as (1, out)."""
    layer_kinds = []
    flat = []
    for l in range(NUM_LAYERS - 1):
        in_dim = DIMS[l]
        if l + 1 in SKIP_IN:
            out_dim = DIMS[l + 1] - DIMS[0]
        else:
            out_dim = DIMS[l + 1]

        key, k = jax.random.split(key)
        if GEOMETRIC_INIT and l == NUM_LAYERS - 2:
            if not INSIDE_OUTSIDE:
                mean = np.sqrt(np.pi) / np.sqrt(DIMS[l])
                W = mean + 1e-4 * jax.random.normal(k, (in_dim, out_dim), jnp.float32)
                b = jnp.full((1, out_dim), -BIAS, jnp.float32)
            else:
                mean = -np.sqrt(np.pi) / np.sqrt(DIMS[l])
                W = mean + 1e-4 * jax.random.normal(k, (in_dim, out_dim), jnp.float32)
                b = jnp.full((1, out_dim), BIAS, jnp.float32)
        else:
            std = np.sqrt(2.0) / np.sqrt(out_dim)
            W = std * jax.random.normal(k, (in_dim, out_dim), jnp.float32)
            b = jnp.zeros((1, out_dim), jnp.float32)

        if l in SKIP_IN:
            # Linear input at this layer is cat([x, input])/sqrt(2); split W row-wise.
            k_x = in_dim - DIMS[0]
            layer_kinds.append("skip")
            flat += [W[:k_x, :], W[k_x:, :], b]
        else:
            layer_kinds.append("plain")
            flat += [W, b]
    return layer_kinds, flat


def prepare_kernel_params(layer_kinds, flat_params, compute_dtype):
    """Transpose weights to (out, in) for the feature-major kernel, fold the skip 1/sqrt(2)
    scale into the static skip weights, and cast matmul operands to compute_dtype.
    Biases stay float32 (added to the f32 accumulator) with shape (out, 1)."""
    inv_sqrt2 = np.float32(1.0 / np.sqrt(2.0))
    out = []
    idx = 0
    for kind in layer_kinds:
        if kind == "skip":
            w_x, w_in, b = flat_params[idx], flat_params[idx + 1], flat_params[idx + 2]
            idx += 3
            out.append((w_x.T * inv_sqrt2).astype(compute_dtype))   # (out, k_x)
            out.append((w_in.T * inv_sqrt2).astype(compute_dtype))  # (out, d_in)
            out.append(b.T.astype(jnp.float32))                     # (out, 1)
        else:
            w, b = flat_params[idx], flat_params[idx + 1]
            idx += 2
            out.append(w.T.astype(compute_dtype))                   # (out, in)
            out.append(b.T.astype(jnp.float32))                     # (out, 1)
    return out


# ----------------------------- kernel ----------------------------------------
def _softplus_beta100(x):
    # PyTorch Softplus(beta=100, threshold=20): linear when beta*x > threshold.
    z = 100.0 * x
    return jnp.where(z > 20.0, x, jnp.log1p(jnp.exp(jnp.minimum(z, 20.0))) * (1.0 / 100.0))


def make_mlp_kernel(layer_kinds, compute_dtype):
    n_layers = len(layer_kinds)

    def kernel(*refs):
        x_ref = refs[0]           # (d_in, TILE_N), compute_dtype
        o_ref = refs[-1]          # (OUT_DIM, TILE_N), float32
        prefs = refs[1:-1]

        x_in = x_ref[...]
        h = x_in
        idx = 0
        for l, kind in enumerate(layer_kinds):
            if kind == "skip":
                w_x = prefs[idx][...]       # (out, k_x), already scaled by 1/sqrt(2)
                w_in = prefs[idx + 1][...]  # (out, d_in), already scaled by 1/sqrt(2)
                b = prefs[idx + 2][...]     # (out, 1) f32
                idx += 3
                z = (jnp.dot(w_x, h, preferred_element_type=jnp.float32)
                     + jnp.dot(w_in, x_in, preferred_element_type=jnp.float32)
                     + b)
            else:
                w = prefs[idx][...]         # (out, in)
                b = prefs[idx + 1][...]     # (out, 1) f32
                idx += 2
                z = jnp.dot(w, h, preferred_element_type=jnp.float32) + b

            if l < n_layers - 1:
                # softplus evaluated in compute_dtype (bf16 on v6e/v7x halves EUP/VPU work)
                h = _softplus_beta100(z.astype(compute_dtype))
            else:
                h = z                       # final linear layer, no activation

        o_ref[...] = h.astype(o_ref.dtype)

    return kernel


# ----------------------------- wrapper ---------------------------------------
def implicit_network_forward(x, layer_kinds, flat_params, tile_n=1024,
                             compute_dtype=jnp.float32):
    """x: (N, d_in) float32 (point-major, like the PyTorch module). Returns (N, OUT_DIM) f32."""
    n, d_in = x.shape

    # Tile sizing: multiple of 128 lanes, no larger than needed, cdiv grid + padded last tile.
    tile_n = int(128 * pl.cdiv(int(tile_n), 128))
    tile_n = int(min(tile_n, 128 * pl.cdiv(n, 128)))
    tile_n = max(tile_n, 128)
    n_pad = int(tile_n * pl.cdiv(n, tile_n))
    grid = (n_pad // tile_n,)

    kparams = prepare_kernel_params(layer_kinds, flat_params, compute_dtype)

    # Feature-major input: (d_in, N_pad); zero-pad the tail points (sliced off at the end).
    x_t = jnp.pad(x.T.astype(compute_dtype), ((0, 0), (0, n_pad - n)))

    in_specs = [pl.BlockSpec((d_in, tile_n), lambda i: (0, i))]
    # Weights/biases are tiny and constant across the grid: whole-array VMEM operands,
    # no per-step DMA / double-buffering.
    for _ in kparams:
        in_specs.append(pl.BlockSpec(memory_space=pltpu.MemorySpace.VMEM))

    kernel = make_mlp_kernel(layer_kinds, compute_dtype)
    out_t = pl.pallas_call(
        kernel,
        out_shape=jax.ShapeDtypeStruct((OUT_DIM, n_pad), jnp.float32),
        grid_spec=pltpu.PrefetchScalarGridSpec(
            num_scalar_prefetch=0,
            grid=grid,
            in_specs=in_specs,
            out_specs=pl.BlockSpec((OUT_DIM, tile_n), lambda i: (0, i)),
        ),
        compiler_params=pltpu.CompilerParams(
            dimension_semantics=("parallel",)),   # shards grid steps across v7x's 2 TCs
    )(x_t, *kparams)

    return out_t[:, :n].T   # back to (N, OUT_DIM), point-major like the PyTorch module


# ----------------------------- float64 numpy reference -----------------------
def _softplus_beta100_np(x):
    z = 100.0 * x
    return np.where(z > 20.0, x, np.log1p(np.exp(np.minimum(z, 20.0))) / 100.0)


def forward_ref_np(x, layer_kinds, flat_params):
    """Exact original PyTorch semantics (cat/sqrt(2), x @ W + b, softplus beta=100) in f64."""
    x = np.asarray(x, np.float64)
    params = [np.asarray(p, np.float64) for p in flat_params]
    inp, h, idx = x, x, 0
    n_layers = len(layer_kinds)
    for l, kind in enumerate(layer_kinds):
        if kind == "skip":
            w_x, w_in, b = params[idx], params[idx + 1], params[idx + 2]
            idx += 3
            cat = np.concatenate([h, inp], axis=1) / np.sqrt(2.0)
            w = np.concatenate([w_x, w_in], axis=0)
            h = cat @ w + b
        else:
            w, b = params[idx], params[idx + 1]
            idx += 2
            h = h @ w + b
        if l < n_layers - 1:
            h = _softplus_beta100_np(h)
    return h


# ----------------------------- main -------------------------------------------
if __name__ == "__main__":
    key = jax.random.PRNGKey(0)
    key, pkey, xkey = jax.random.split(key, 3)

    layer_kinds, flat_params = build_params(pkey)

    N = 3000                              # non-multiple of the tile -> exercises padded last tile
    x = jax.random.normal(xkey, (N, D_IN), jnp.float32)

    # float32 path (recommended on v5e; on v6e/v7x pass compute_dtype=jnp.bfloat16).
    out = implicit_network_forward(x, layer_kinds, flat_params,
                                   tile_n=1024, compute_dtype=jnp.float32)
    out = jax.block_until_ready(out)
    assert out.shape == (N, OUT_DIM), out.shape

    ref = forward_ref_np(np.asarray(x), layer_kinds, flat_params)
    # Tolerance accounts for the MXU's bf16-pass decomposition of f32 matmuls vs the exact f64
    # reference; any semantic error (wrong skip split / bias / softplus) would be O(0.1-1).
    if not np.allclose(np.asarray(out, np.float64), ref, rtol=1e-2, atol=1e-2):
        err = float(np.max(np.abs(np.asarray(out, np.float64) - ref)))
        raise AssertionError(f"Pallas kernel output mismatch vs reference (max abs err={err})")

    print("KERNEL_OK")
</pallas_src>

<mosaic_0001>
module attributes {stable_mosaic.version = 11 : i64} {
  func.func @kernel(%arg0: i32, %arg1: memref<3x1024xf32, #tpu.memory_space<vmem>>, %arg2: memref<32x3xf32, #tpu.memory_space<vmem>>, %arg3: memref<32x1xf32, #tpu.memory_space<vmem>>, %arg4: memref<29x32xf32, #tpu.memory_space<vmem>>, %arg5: memref<29x1xf32, #tpu.memory_space<vmem>>, %arg6: memref<32x29xf32, #tpu.memory_space<vmem>>, %arg7: memref<32x3xf32, #tpu.memory_space<vmem>>, %arg8: memref<32x1xf32, #tpu.memory_space<vmem>>, %arg9: memref<32x32xf32, #tpu.memory_space<vmem>>, %arg10: memref<32x1xf32, #tpu.memory_space<vmem>>, %arg11: memref<17x32xf32, #tpu.memory_space<vmem>>, %arg12: memref<17x1xf32, #tpu.memory_space<vmem>>, %arg13: memref<17x1024xf32, #tpu.memory_space<vmem>>) attributes {dimension_semantics = [#tpu.dimension_semantics<parallel>], iteration_bounds = array<i64: 3>, scalar_prefetch = 0 : i64, scratch_operands = 0 : i64, tpu.core_type = #tpu.core_type<tc>, window_params = [{transform_indices = @transform_0, window_bounds = array<i64: 3, 1024>}, {pipeline_mode = #tpu.pipeline_mode<synchronous>, transform_indices = @transform_1, window_bounds = array<i64: 32, 3>}, {pipeline_mode = #tpu.pipeline_mode<synchronous>, transform_indices = @transform_2, window_bounds = array<i64: 32, 1>}, {pipeline_mode = #tpu.pipeline_mode<synchronous>, transform_indices = @transform_3, window_bounds = array<i64: 29, 32>}, {pipeline_mode = #tpu.pipeline_mode<synchronous>, transform_indices = @transform_4, window_bounds = array<i64: 29, 1>}, {pipeline_mode = #tpu.pipeline_mode<synchronous>, transform_indices = @transform_5, window_bounds = array<i64: 32, 29>}, {pipeline_mode = #tpu.pipeline_mode<synchronous>, transform_indices = @transform_6, window_bounds = array<i64: 32, 3>}, {pipeline_mode = #tpu.pipeline_mode<synchronous>, transform_indices = @transform_7, window_bounds = array<i64: 32, 1>}, {pipeline_mode = #tpu.pipeline_mode<synchronous>, transform_indices = @transform_8, window_bounds = array<i64: 32, 32>}, {pipeline_mode = #tpu.pipeline_mode<synchronous>, transform_indices = @transform_9, window_bounds = array<i64: 32, 1>}, {pipeline_mode = #tpu.pipeline_mode<synchronous>, transform_indices = @transform_10, window_bounds = array<i64: 17, 32>}, {pipeline_mode = #tpu.pipeline_mode<synchronous>, transform_indices = @transform_11, window_bounds = array<i64: 17, 1>}, {transform_indices = @transform_12, window_bounds = array<i64: 17, 1024>}]} {
    %c0 = arith.constant 0 : index
    %c0_0 = arith.constant 0 : index
    %0 = vector.load %arg1[%c0, %c0_0] : memref<3x1024xf32, #tpu.memory_space<vmem>>, vector<3x1024xf32>
    %c0_1 = arith.constant 0 : index
    %c0_2 = arith.constant 0 : index
    %1 = vector.load %arg2[%c0_1, %c0_2] : memref<32x3xf32, #tpu.memory_space<vmem>>, vector<32x3xf32>
    %c0_3 = arith.constant 0 : index
    %c0_4 = arith.constant 0 : index
    %2 = vector.load %arg3[%c0_3, %c0_4] : memref<32x1xf32, #tpu.memory_space<vmem>>, vector<32x1xf32>
    %cst = arith.constant dense<0.000000e+00> : vector<32x1024xf32>
    %3 = tpu.matmul %1, %0, %cst {dimension_numbers = #tpu.dot_dimension_numbers<[1], [0], [0], [1], [0, 0, 1, 1], [], []>} : vector<32x3xf32>, vector<3x1024xf32>, vector<32x1024xf32> -> vector<32x1024xf32>
    %4 = vector.broadcast %2 : vector<32x1xf32> to vector<32x1024xf32>
    %5 = arith.addf %3, %4 : vector<32x1024xf32>
    %cst_5 = arith.constant 1.000000e+02 : f32
    %6 = vector.broadcast %cst_5 : f32 to vector<32x1024xf32>
    %7 = arith.mulf %6, %5 : vector<32x1024xf32>
    %cst_6 = arith.constant 2.000000e+01 : f32
    %8 = vector.broadcast %cst_6 : f32 to vector<32x1024xf32>
    %9 = arith.cmpf ogt, %7, %8 : vector<32x1024xf32>
    %cst_7 = arith.constant 2.000000e+01 : f32
    %10 = vector.broadcast %cst_7 : f32 to vector<32x1024xf32>
    %11 = arith.minimumf %7, %10 : vector<32x1024xf32>
    %12 = math.exp %11 : vector<32x1024xf32>
    %13 = math.log1p %12 : vector<32x1024xf32>
    %cst_8 = arith.constant 0.00999999977 : f32
    %14 = vector.broadcast %cst_8 : f32 to vector<32x1024xf32>
    %15 = arith.mulf %13, %14 : vector<32x1024xf32>
    %16 = arith.select %9, %5, %15 : vector<32x1024xi1>, vector<32x1024xf32>
    %c0_9 = arith.constant 0 : index
    %c0_10 = arith.constant 0 : index
    %17 = vector.load %arg4[%c0_9, %c0_10] : memref<29x32xf32, #tpu.memory_space<vmem>>, vector<29x32xf32>
    %c0_11 = arith.constant 0 : index
    %c0_12 = arith.constant 0 : index
    %18 = vector.load %arg5[%c0_11, %c0_12] : memref<29x1xf32, #tpu.memory_space<vmem>>, vector<29x1xf32>
    %cst_13 = arith.constant dense<0.000000e+00> : vector<29x1024xf32>
    %19 = tpu.matmul %17, %16, %cst_13 {dimension_numbers = #tpu.dot_dimension_numbers<[1], [0], [0], [1], [0, 0, 1, 1], [], []>} : vector<29x32xf32>, vector<32x1024xf32>, vector<29x1024xf32> -> vector<29x1024xf32>
    %20 = vector.broadcast %18 : vector<29x1xf32> to vector<29x1024xf32>
    %21 = arith.addf %19, %20 : vector<29x1024xf32>
    %cst_14 = arith.constant 1.000000e+02 : f32
    %22 = vector.broadcast %cst_14 : f32 to vector<29x1024xf32>
    %23 = arith.mulf %22, %21 : vector<29x1024xf32>
    %cst_15 = arith.constant 2.000000e+01 : f32
    %24 = vector.broadcast %cst_15 : f32 to vector<29x1024xf32>
    %25 = arith.cmpf ogt, %23, %24 : vector<29x1024xf32>
    %cst_16 = arith.constant 2.000000e+01 : f32
    %26 = vector.broadcast %cst_16 : f32 to vector<29x1024xf32>
    %27 = arith.minimumf %23, %26 : vector<29x1024xf32>
    %28 = math.exp %27 : vector<29x1024xf32>
    %29 = math.log1p %28 : vector<29x1024xf32>
    %cst_17 = arith.constant 0.00999999977 : f32
    %30 = vector.broadcast %cst_17 : f32 to vector<29x1024xf32>
    %31 = arith.mulf %29, %30 : vector<29x1024xf32>
    %32 = arith.select %25, %21, %31 : vector<29x1024xi1>, vector<29x1024xf32>
    %c0_18 = arith.constant 0 : index
    %c0_19 = arith.constant 0 : index
    %33 = vector.load %arg6[%c0_18, %c0_19] : memref<32x29xf32, #tpu.memory_space<vmem>>, vector<32x29xf32>
    %c0_20 = arith.constant 0 : index
    %c0_21 = arith.constant 0 : index
    %34 = vector.load %arg7[%c0_20, %c0_21] : memref<32x3xf32, #tpu.memory_space<vmem>>, vector<32x3xf32>
    %c0_22 = arith.constant 0 : index
    %c0_23 = arith.constant 0 : index
    %35 = vector.load %arg8[%c0_22, %c0_23] : memref<32x1xf32, #tpu.memory_space<vmem>>, vector<32x1xf32>
    %cst_24 = arith.constant dense<0.000000e+00> : vector<32x1024xf32>
    %36 = tpu.matmul %33, %32, %cst_24 {dimension_numbers = #tpu.dot_dimension_numbers<[1], [0], [0], [1], [0, 0, 1, 1], [], []>} : vector<32x29xf32>, vector<29x1024xf32>, vector<32x1024xf32> -> vector<32x1024xf32>
    %cst_25 = arith.constant dense<0.000000e+00> : vector<32x1024xf32>
    %37 = tpu.matmul %34, %0, %cst_25 {dimension_numbers = #tpu.dot_dimension_numbers<[1], [0], [0], [1], [0, 0, 1, 1], [], []>} : vector<32x3xf32>, vector<3x1024xf32>, vector<32x1024xf32> -> vector<32x1024xf32>
    %38 = arith.addf %36, %37 : vector<32x1024xf32>
    %39 = vector.broadcast %35 : vector<32x1xf32> to vector<32x1024xf32>
    %40 = arith.addf %38, %39 : vector<32x1024xf32>
    %cst_26 = arith.constant 1.000000e+02 : f32
    %41 = vector.broadcast %cst_26 : f32 to vector<32x1024xf32>
    %42 = arith.mulf %41, %40 : vector<32x1024xf32>
    %cst_27 = arith.constant 2.000000e+01 : f32
    %43 = vector.broadcast %cst_27 : f32 to vector<32x1024xf32>
    %44 = arith.cmpf ogt, %42, %43 : vector<32x1024xf32>
    %cst_28 = arith.constant 2.000000e+01 : f32
    %45 = vector.broadcast %cst_28 : f32 to vector<32x1024xf32>
    %46 = arith.minimumf %42, %45 : vector<32x1024xf32>
    %47 = math.exp %46 : vector<32x1024xf32>
    %48 = math.log1p %47 : vector<32x1024xf32>
    %cst_29 = arith.constant 0.00999999977 : f32
    %49 = vector.broadcast %cst_29 : f32 to vector<32x1024xf32>
    %50 = arith.mulf %48, %49 : vector<32x1024xf32>
    %51 = arith.select %44, %40, %50 : vector<32x1024xi1>, vector<32x1024xf32>
    %c0_30 = arith.constant 0 : index
    %c0_31 = arith.constant 0 : index
    %52 = vector.load %arg9[%c0_30, %c0_31] : memref<32x32xf32, #tpu.memory_space<vmem>>, vector<32x32xf32>
    %c0_32 = arith.constant 0 : index
    %c0_33 = arith.constant 0 : index
    %53 = vector.load %arg10[%c0_32, %c0_33] : memref<32x1xf32, #tpu.memory_space<vmem>>, vector<32x1xf32>
    %cst_34 = arith.constant dense<0.000000e+00> : vector<32x1024xf32>
    %54 = tpu.matmul %52, %51, %cst_34 {dimension_numbers = #tpu.dot_dimension_numbers<[1], [0], [0], [1], [0, 0, 1, 1], [], []>} : vector<32x32xf32>, vector<32x1024xf32>, vector<32x1024xf32> -> vector<32x1024xf32>
    %55 = vector.broadcast %53 : vector<32x1xf32> to vector<32x1024xf32>
    %56 = arith.addf %54, %55 : vector<32x1024xf32>
    %cst_35 = arith.constant 1.000000e+02 : f32
    %57 = vector.broadcast %cst_35 : f32 to vector<32x1024xf32>
    %58 = arith.mulf %57, %56 : vector<32x1024xf32>
    %cst_36 = arith.constant 2.000000e+01 : f32
    %59 = vector.broadcast %cst_36 : f32 to vector<32x1024xf32>
    %60 = arith.cmpf ogt, %58, %59 : vector<32x1024xf32>
    %cst_37 = arith.constant 2.000000e+01 : f32
    %61 = vector.broadcast %cst_37 : f32 to vector<32x1024xf32>
    %62 = arith.minimumf %58, %61 : vector<32x1024xf32>
    %63 = math.exp %62 : vector<32x1024xf32>
    %64 = math.log1p %63 : vector<32x1024xf32>
    %cst_38 = arith.constant 0.00999999977 : f32
    %65 = vector.broadcast %cst_38 : f32 to vector<32x1024xf32>
    %66 = arith.mulf %64, %65 : vector<32x1024xf32>
    %67 = arith.select %60, %56, %66 : vector<32x1024xi1>, vector<32x1024xf32>
    %c0_39 = arith.constant 0 : index
    %c0_40 = arith.constant 0 : index
    %68 = vector.load %arg11[%c0_39, %c0_40] : memref<17x32xf32, #tpu.memory_space<vmem>>, vector<17x32xf32>
    %c0_41 = arith.constant 0 : index
    %c0_42 = arith.constant 0 : index
    %69 = vector.load %arg12[%c0_41, %c0_42] : memref<17x1xf32, #tpu.memory_space<vmem>>, vector<17x1xf32>
    %cst_43 = arith.constant dense<0.000000e+00> : vector<17x1024xf32>
    %70 = tpu.matmul %68, %67, %cst_43 {dimension_numbers = #tpu.dot_dimension_numbers<[1], [0], [0], [1], [0, 0, 1, 1], [], []>} : vector<17x32xf32>, vector<32x1024xf32>, vector<17x1024xf32> -> vector<17x1024xf32>
    %71 = vector.broadcast %69 : vector<17x1xf32> to vector<17x1024xf32>
    %72 = arith.addf %70, %71 : vector<17x1024xf32>
    %c0_44 = arith.constant 0 : index
    %c0_45 = arith.constant 0 : index
    %73 = vector.load %arg13[%c0_44, %c0_45] : memref<17x1024xf32, #tpu.memory_space<vmem>>, vector<17x1024xf32>
    tpu.vector_store %arg13[%c0_44, %c0_45], %72 {strides = array<i32>} : memref<17x1024xf32, #tpu.memory_space<vmem>>, vector<17x1024xf32>,
    return
  }
  func.func @transform_0(%arg0: i32) -> (i32, i32) {
    %c0_i32 = arith.constant 0 : i32
    %c0_i32_0 = arith.constant 0 : i32
    return %c0_i32, %arg0 : i32, i32
  }
  func.func @transform_1(%arg0: i32) -> (i32, i32) {
    %c0_i32 = arith.constant 0 : i32
    %c0_i32_0 = arith.constant 0 : i32
    %c0_i32_1 = arith.constant 0 : i32
    return %c0_i32, %c0_i32_0 : i32, i32
  }
  func.func @transform_2(%arg0: i32) -> (i32, i32) {
    %c0_i32 = arith.constant 0 : i32
    %c0_i32_0 = arith.constant 0 : i32
    %c0_i32_1 = arith.constant 0 : i32
    return %c0_i32, %c0_i32_0 : i32, i32
  }
  func.func @transform_3(%arg0: i32) -> (i32, i32) {
    %c0_i32 = arith.constant 0 : i32
    %c0_i32_0 = arith.constant 0 : i32
    %c0_i32_1 = arith.constant 0 : i32
    return %c0_i32, %c0_i32_0 : i32, i32
  }
  func.func @transform_4(%arg0: i32) -> (i32, i32) {
    %c0_i32 = arith.constant 0 : i32
    %c0_i32_0 = arith.constant 0 : i32
    %c0_i32_1 = arith.constant 0 : i32
    return %c0_i32, %c0_i32_0 : i32, i32
  }
  func.func @transform_5(%arg0: i32) -> (i32, i32) {
    %c0_i32 = arith.constant 0 : i32
    %c0_i32_0 = arith.constant 0 : i32
    %c0_i32_1 = arith.constant 0 : i32
    return %c0_i32, %c0_i32_0 : i32, i32
  }
  func.func @transform_6(%arg0: i32) -> (i32, i32) {
    %c0_i32 = arith.constant 0 : i32
    %c0_i32_0 = arith.constant 0 : i32
    %c0_i32_1 = arith.constant 0 : i32
    return %c0_i32, %c0_i32_0 : i32, i32
  }
  func.func @transform_7(%arg0: i32) -> (i32, i32) {
    %c0_i32 = arith.constant 0 : i32
    %c0_i32_0 = arith.constant 0 : i32
    %c0_i32_1 = arith.constant 0 : i32
    return %c0_i32, %c0_i32_0 : i32, i32
  }
  func.func @transform_8(%arg0: i32) -> (i32, i32) {
    %c0_i32 = arith.constant 0 : i32
    %c0_i32_0 = arith.constant 0 : i32
    %c0_i32_1 = arith.constant 0 : i32
    return %c0_i32, %c0_i32_0 : i32, i32
  }
  func.func @transform_9(%arg0: i32) -> (i32, i32) {
    %c0_i32 = arith.constant 0 : i32
    %c0_i32_0 = arith.constant 0 : i32
    %c0_i32_1 = arith.constant 0 : i32
    return %c0_i32, %c0_i32_0 : i32, i32
  }
  func.func @transform_10(%arg0: i32) -> (i32, i32) {
    %c0_i32 = arith.constant 0 : i32
    %c0_i32_0 = arith.constant 0 : i32
    %c0_i32_1 = arith.constant 0 : i32
    return %c0_i32, %c0_i32_0 : i32, i32
  }
  func.func @transform_11(%arg0: i32) -> (i32, i32) {
    %c0_i32 = arith.constant 0 : i32
    %c0_i32_0 = arith.constant 0 : i32
    %c0_i32_1 = arith.constant 0 : i32
    return %c0_i32, %c0_i32_0 : i32, i32
  }
  func.func @transform_12(%arg0: i32) -> (i32, i32) {
    %c0_i32 = arith.constant 0 : i32
    %c0_i32_0 = arith.constant 0 : i32
    return %c0_i32, %arg0 : i32, i32
  }
}

</mosaic_0001>

<bundles_post_ra>
// kernel: tpu_custom_call.1
= control target key start
LH: loop header
LB: loop body
LE: loop exit
PB: predicated region body
PF: predicated region fallthrough
CT: control target
= control target key end

     0   :  { %17 = vsyncpa [#allocation3], 0  ;;  %s9749_s0 = inlined_call_operand.vmem [shape: f32[3,3072], index: 0, kind: input, shape index: {}]   ;;  %s9750_s1 = inlined_call_operand.vmem [shape: f32[32,3], index: 1, kind: input, shape index: {}]   ;;  %s9751_s2 = inlined_call_operand.vmem [shape: f32[32,1], index: 2, kind: input, shape index: {}]   ;;  %s9752_s3 = inlined_call_operand.vmem [shape: f32[29,32], index: 3, kind: input, shape index: {}]   ;;  %s9753_s4 = inlined_call_operand.vmem [shape: f32[29,1], index: 4, kind: input, shape index: {}]   ;;  %s9754_s5 = inlined_call_operand.vmem [shape: f32[32,29], index: 5, kind: input, shape index: {}]   ;;  %s9755_s6 = inlined_call_operand.vmem [shape: f32[32,3], index: 6, kind: input, shape index: {}]   ;;  %s9756_s7 = inlined_call_operand.vmem [shape: f32[32,1], index: 7, kind: input, shape index: {}]   ;;  %s9757_s8 = inlined_call_operand.vmem [shape: f32[32,32], index: 8, kind: input, shape index: {}]   ;;  %s9758_s9 = inlined_call_operand.vmem [shape: f32[32,1], index: 9, kind: input, shape index: {}]   ;;  %s9759_s10 = inlined_call_operand.vmem [shape: f32[17,32], index: 10, kind: input, shape index: {}]   ;;  %s9760_s11 = inlined_call_operand.vmem [shape: f32[17,1], index: 11, kind: input, shape index: {}]   ;;  %s9761_s12 = inlined_call_operand.hbm [shape: f32[17,3072], index: 12, kind: output, shape index: {}]  }
   0x1   :  { %19 = vsyncpa [#allocation3 + $0x1], 0  ;;  %s5969_s21 = smov 0   ;;  %s5971_s22 = smov 0  }
   0x2   :  { %s5973_s23 = smov 0   ;;  %s5975_s24 = smov 0  }
   0x3 LB: > { %9909 = sst [smem:[#allocation5_spill]] %s5891_s23  ;;  %s5990_s25 = sadd.s32 4294967295, %s5895_s24   ;;  %s5895_s24 = sphi %s5975_s24, %s10399_s24   ;;  %s5891_s23 = sphi %s5973_s23, %s10396_s23   ;;  %s5887_s22 = sphi %s5971_s22, %s10398_s22   ;;  %s5883_s21 = sphi %s5969_s21, %s10397_s21  }
   0x4   : > { %s4970_s26 = sadd.s32 4294967294, %s5895_s24   ;;  %s5994_s27 = sadd.s32 1, %s5895_s24  }
   0x5   : > { %s289_s28 = sadd.s32 1, %s5891_s23  ;;  %s286_s29 = ssub.s32 %s5895_s24, %s5994_s27 }
   0x6   : > { %p299_p0 = scmp.ne.s32.totalorder %s5891_s23, %s5887_s22  ;;  %p287_p1 = scmp.eq.s32.totalorder %s286_s29, 0 }
   0x7   : > { %p300_p2 = scmp.eq.s32.totalorder %s5990_s25, 2  ;;  %p305_p3 = scmp.ne.s32.totalorder %s5887_s22, %s5883_s21 }
   0x8   : > { %p306_p4 = scmp.eq.s32.totalorder %s4970_s26, 2  ;;  %p4973_p7 = scmp.ge.s32.totalorder %s5895_s24, 1 }
   0x9   : > { %s6005_s30 = scalar_select %p287_p1, %s5891_s23, %s289_s28  }
   0xa   : > { %p6007_p5 = por %p300_p2, %p299_p0  ;;  %p6011_p6 = por %p306_p4, %p305_p3 }
   0xb   : > { %9910 = sst [smem:[#allocation6_spill]] %s6005_s30  ;;  %p366_p8 = scmp.lt.s32.totalorder %s5895_s24, 4 }
   0xd   : > { %p367_p9 = pnand %p4973_p7, %p366_p8 }
   0xf   : > { %370 = sbr.rel (%p367_p9) target bundleno = 1678 (0x68e), region = 68 }
  0x16   : > { %s4974_s15 = sshll.u32 %s5990_s25, 3  ;;  %v9763_v0 = vmov 0.0   ;;  %v423_v1 = vld [vmem:[%s9751_s2] sm:$0xff]  ;;  %v5898_v2 = vmov 0   ;;  %v425_v3 = vld [vmem:[%s9751_s2 + $0x10] sm:$0xff]  ;;  %v424_v4 = vld [vmem:[%s9751_s2 + $0x8] sm:$0xff] }
  0x17   : > { %p409_p10 = scmp.lt.s32.totalorder %s4974_s15, 23  ;;  %549 = vmatprep.mubr.f32.mxu0 %v9763_v0  ;;  %638 = vmatprep.mubr.f32.mxu1 %v9763_v0  ;;  %v426_v5 = vld [vmem:[%s9751_s2 + $0x18] sm:$0xff]  ;;  %vm468_vm0 = vcmask 1042432   ;;  %v419_v12 = vld [vmem:[%s9750_s1] sm:$0xff]  ;;  %vm455_vm1 = vcmask 23552   ;;  %v420_v15 = vld [vmem:[%s9750_s1 + $0x8] sm:$0xff] }
  0x18   : > { %5311 = vset.pattern.permute.xlu0 %v5898_v2  ;;  %5312 = vset.pattern.permute.xlu1 %v5898_v2  ;;  %v1357_v16 = vld [vmem:[%s9753_s4] sm:$0xff]  ;;  %v1358_v17 = vld [vmem:[%s9753_s4 + $0x8] sm:$0xff]  ;;  %v421_v18 = vld [vmem:[%s9750_s1 + $0x10] sm:$0xff]  ;;  %s405_s19 = sand.u32 1, %s5887_s22   ;;  %s5096_s28 = sshll.u32 %s5990_s25, 10 }
  0x19   : > { %s10401_s15 = smov (!%p409_p10, %s4974_s15), 23  ;;  %429 = vperm.xlu0 %5311, %v423_v1   ;;  %439 = vperm.xlu1 %5312, %v425_v3   ;;  %v1359_v19 = vld [vmem:[%s9753_s4 + $0x10] sm:$0xff]  ;;  %v1360_v20 = vld [vmem:[%s9753_s4 + $0x18] sm:$0x1f]  ;;  %v2270_v22 = vld [vmem:[%s9756_s7] sm:$0xff]  ;;  %s5265_s20 = smul.u32 192, %s405_s19 }
  0x1a   : > { %s4975_s16 = sshll.u32 %s10401_s15, 2  ;;  %v422_v21 = vld [vmem:[%s9750_s1 + $0x18] sm:$0xff]  ;;  %v2271_v23 = vld [vmem:[%s9756_s7 + $0x8] sm:$0xff]  ;;  %v2272_v24 = vld [vmem:[%s9756_s7 + $0x10] sm:$0xff]  ;;  %s9698_s15 = scalar_lea.hbm %s9761_s12, %s5096_s28 }
  0x1b   : > { %s6035_s23 = scalar_lea.vmem %s9749_s0, %s4975_s16  ;;  %v2273_v25 = vld [vmem:[%s9756_s7 + $0x18] sm:$0xff]  ;;  %v3604_v26 = vld [vmem:[%s9758_s9] sm:$0xff]  ;;  %v3605_v27 = vld [vmem:[%s9758_s9 + $0x8] sm:$0xff]  ;;  %s9661_s26 = scalar_lea.vmem [#allocation2], %s5265_s20 }
  0x1c   : > { %v415_v6 = vld [vmem:[%s6035_s23] sm:$0x77]  ;;  %v416_v7 = vld [vmem:[%s6035_s23 + $0x8] sm:$0x77]  ;;  %v417_v8 = vld [vmem:[%s6035_s23 + $0x10] sm:$0x77] }
  0x1d   : > { %434 = vperm.xlu0 %5311, %v424_v4   ;;  %444 = vperm.xlu1 %5312, %v426_v5   ;;  %v6040_v9 = vcombine.high %v415_v6, %v415_v6  ;;  %v6042_v10 = vcombine.high %v416_v7, %v416_v7  ;;  %v418_v11 = vld [vmem:[%s6035_s23 + $0x18] sm:$0x77]  ;;  %v6052_v13 = vcombine.high %v417_v8, %v417_v8  ;;  %v3606_v28 = vld [vmem:[%s9758_s9 + $0x10] sm:$0xff]  ;;  %v4511_v30 = vld [vmem:[%s9760_s11] sm:$0xff]  ;;  %s4908_s29 = sshll.u32 %s9661_s26, 4  ;;  %s9708_s25 = scalar_lea.sflag [#allocation3], %s405_s19  ;;  %s9701_s29 = int_to_ptr.vmem [resolvable:$true] %s4908_s29 }
  0x1e   : > { %v6054_v14 = vcombine.high %v418_v11, %v418_v11  ;;  %v3607_v29 = vld [vmem:[%s9758_s9 + $0x18] sm:$0xff]  ;;  %v4512_v31 = vld [vmem:[%s9760_s11 + $0x8] sm:$0xff]  ;;  %v4513_v32 = vld [vmem:[%s9760_s11 + $0x10] sm:$0x1]  ;;  %s5833_s18 = scalar_lea.vmem %s9701_s29, 3072 }
  0x1f   : > { %9913 = vst [vmem:[#allocation7_spill] sm:$0xff] %v6040_v9  ;;  %9914 = vst [vmem:[#allocation8_spill] sm:$0xff] %v6042_v10  ;;  %4976 = vmatprep.subr.msk.mxu0 %vm468_vm0, %v6040_v9  ;;  %4982 = vmatprep.subr.msk.mxu1 %vm468_vm0, %v6042_v10  ;;  %p5834_p11 = scmp.ne.s32.totalorder %s9701_s29, %s5833_s18 }
  0x20   : > { %9915 = vst [vmem:[#allocation9_spill] sm:$0xff] %v6052_v13  ;;  %9916 = vst [vmem:[#allocation10_spill] sm:$0xff] %v6054_v14  ;;  %4977 = vmatpush1.msk.msra.mxu0 %vm468_vm0, %v415_v6  ;;  %4983 = vmatpush1.msk.msra.mxu1 %vm468_vm0, %v416_v7 }
  0x21   : > { %4978 = vmatmul.mubr.msk.f32.vlgmr.msra.gmra.mrb[0].mxu0 %vm455_vm1, %v419_v12  ;;  %4984 = vmatmul.mubr.msk.f32.vlgmr.msra.gmra.mrb[0].mxu1 %vm455_vm1, %v419_v12  ;;  %p5835_p12 = pnand %p5834_p11, %p6007_p5 }
  0x22   : > { %555 = vmatprep.mubr.f32.mxu0 %v9763_v0  ;;  %644 = vmatprep.mubr.f32.mxu1 %v9763_v0 }
  0x23   : > { %4988 = vmatprep.subr.msk.mxu0 %vm468_vm0, %v6052_v13  ;;  %4994 = vmatprep.subr.msk.mxu1 %vm468_vm0, %v6054_v14  ;;  %p5836_p13 = pneg %p5835_p12 }
  0x24   : > { %4989 = vmatpush1.msk.msra.mxu0 %vm468_vm0, %v417_v8  ;;  %4995 = vmatpush1.msk.msra.mxu1 %vm468_vm0, %v418_v11 }
  0x25   : > { %4979 = vmatmul.mubr.msk.f32.gmra.mrb[2].mxu0 %vm455_vm1, %v420_v15  ;;  %4985 = vmatmul.mubr.msk.f32.gmra.mrb[2].mxu1 %vm455_vm1, %v420_v15 }
  0x26   : > { %561 = vmatprep.mubr.f32.mxu0 %v9763_v0  ;;  %650 = vmatprep.mubr.f32.mxu1 %v9763_v0 }
  0x27   : > { %1363 = vperm.xlu0 %5311, %v1357_v16   ;;  %1368 = vperm.xlu1 %5312, %v1358_v17  }
  0x29   : > { %4980 = vmatmul.mubr.msk.f32.gmra.mrb[4].mxu0 %vm455_vm1, %v421_v18  ;;  %4986 = vmatmul.mubr.msk.f32.gmra.mrb[4].mxu1 %vm455_vm1, %v421_v18 }
  0x2a   : > { %567 = vmatprep.mubr.f32.mxu0 %v9763_v0  ;;  %656 = vmatprep.mubr.f32.mxu1 %v9763_v0 }
  0x2b   : > { %1373 = vperm.xlu0 %5311, %v1359_v19   ;;  %1378 = vperm.xlu1 %5312, %v1360_v20  }
  0x2d   : > { %4981 = vmatmul.mubr.msk.f32.gmra.mrb[6].mxu0 %vm455_vm1, %v422_v21  ;;  %4987 = vmatmul.mubr.msk.f32.gmra.mrb[6].mxu1 %vm455_vm1, %v422_v21 }
  0x2e   : > { %727 = vmatprep.mubr.f32.mxu0 %v9763_v0  ;;  %816 = vmatprep.mubr.f32.mxu1 %v9763_v0 }
  0x2f   : > { %3038 = vperm.xlu0 %5311, %v2270_v22   ;;  %3043 = vperm.xlu1 %5312, %v2271_v23  }
  0x31   : > { %4990 = vmatmul.mubr.msk.f32.vlgmr.msra.gmra.mrb[8].mxu0 %vm455_vm1, %v419_v12  ;;  %4996 = vmatmul.mubr.msk.f32.vlgmr.msra.gmra.mrb[8].mxu1 %vm455_vm1, %v419_v12 }
  0x32   : > { %733 = vmatprep.mubr.f32.mxu0 %v9763_v0  ;;  %822 = vmatprep.mubr.f32.mxu1 %v9763_v0 }
  0x33   : > { %3048 = vperm.xlu0 %5311, %v2272_v24   ;;  %3053 = vperm.xlu1 %5312, %v2273_v25  }
  0x35   : > { %4991 = vmatmul.mubr.msk.f32.gmra.mrb[10].mxu0 %vm455_vm1, %v420_v15  ;;  %4997 = vmatmul.mubr.msk.f32.gmra.mrb[10].mxu1 %vm455_vm1, %v420_v15 }
  0x36   : > { %739 = vmatprep.mubr.f32.mxu0 %v9763_v0  ;;  %828 = vmatprep.mubr.f32.mxu1 %v9763_v0 }
  0x37   : > { %3610 = vperm.xlu0 %5311, %v3604_v26   ;;  %3615 = vperm.xlu1 %5312, %v3605_v27  }
  0x39   : > { %4992 = vmatmul.mubr.msk.f32.gmra.mrb[12].mxu0 %vm455_vm1, %v421_v18  ;;  %4998 = vmatmul.mubr.msk.f32.gmra.mrb[12].mxu1 %vm455_vm1, %v421_v18 }
  0x3a   : > { %745 = vmatprep.mubr.f32.mxu0 %v9763_v0  ;;  %834 = vmatprep.mubr.f32.mxu1 %v9763_v0 }
  0x3b   : > { %3620 = vperm.xlu0 %5311, %v3606_v28   ;;  %3625 = vperm.xlu1 %5312, %v3607_v29  }
  0x3d   : > { %4993 = vmatmul.mubr.msk.f32.gmra.mrb[14].mxu0 %vm455_vm1, %v422_v21  ;;  %4999 = vmatmul.mubr.msk.f32.gmra.mrb[14].mxu1 %vm455_vm1, %v422_v21 }
  0x3e   : > { %1458 = vmatprep.mubr.f32.mxu0 %v9763_v0  ;;  %1547 = vmatprep.mubr.f32.mxu1 %v9763_v0 }
  0x3f   : > { %4516 = vperm.xlu0 %5311, %v4511_v30   ;;  %4521 = vperm.xlu1 %5312, %v4512_v31  }
  0x43   : > { %4526 = vperm.xlu0 %5311, %v4513_v32  }
  0x98   : > { %v6150_v33 = vpop.permute.xlu0 %429  ;;  %v6168_v49 = vpop.permute.xlu1 %439 }
  0x9c   : > { %v6166_v48 = vpop.permute.xlu0 %434  ;;  %v6216_v17 = vpop.permute.xlu1 %444 }
  0xf4   : > { %v551_v34 = vpop.f32.mrb[0].mxu0  ;;  %v640_v35 = vpop.f32.mrb[0].mxu1 }
  0xf5   : > { %v6153_v36 = vadd.f32 %v551_v34, %v6150_v33  ;;  %v6156_v37 = vadd.f32 %v640_v35, %v6150_v33  ;;  %v553_v38 = vpop.f32.mrb[1].mxu0  ;;  %v642_v39 = vpop.f32.mrb[1].mxu1 }
  0xf6   : > { %v6177_v54 = vadd.f32 %v553_v38, %v6150_v33  ;;  %v6196_v63 = vadd.f32 %v642_v39, %v6150_v33 }
  0xf7   : > { %v6159_v40 = vmul.f32 100.0, %v6153_v36  ;;  %v6162_v41 = vmul.f32 100.0, %v6156_v37 }
  0xf8   : > { %v557_v42 = vpop.f32.mrb[2].mxu0  ;;  %v646_v43 = vpop.f32.mrb[2].mxu1  ;;  %9917 = vst [vmem:[#allocation11_spill] sm:$0xff] %v6177_v54  ;;  %9918 = vst [vmem:[#allocation12_spill] sm:$0xff] %v6196_v63  ;;  %v6201_v5 = vmul.f32 100.0, %v6177_v54  ;;  %v6219_v18 = vmul.f32 100.0, %v6196_v63 }
  0xf9   : > { %v905_v44 = vmin.f32 %v6159_v40, 20.0  ;;  %v907_v45 = vmin.f32 %v6162_v41, 20.0  ;;  %v559_v46 = vpop.f32.mrb[3].mxu0  ;;  %v648_v47 = vpop.f32.mrb[3].mxu1  ;;  %v6171_v52 = vadd.f32 %v557_v42, %v6166_v48  ;;  %v6174_v53 = vadd.f32 %v646_v43, %v6166_v48 }
  0xfa   : > { %9919 = vst [vmem:[#allocation13_spill] sm:$0xff] %v6201_v5  ;;  %v6209_v12 = vadd.f32 %v559_v46, %v6166_v48  ;;  %9921 = vst [vmem:[#allocation15_spill] sm:$0xff] %v6219_v18  ;;  %v6222_v19 = vadd.f32 %v648_v47, %v6166_v48  ;;  %v906_v24 = vmin.f32 %v6201_v5, 20.0  ;;  %v908_v32 = vmin.f32 %v6219_v18, 20.0 }
  0xfb   : > { %v937_v50 = vmul.f32 1.442695, %v905_v44  ;;  %v941_v51 = vmul.f32 1.442695, %v907_v45  ;;  %v6180_v57 = vmul.f32 100.0, %v6171_v52  ;;  %v6183_v58 = vmul.f32 100.0, %v6174_v53 }
  0xfc   : > { %v563_v55 = vpop.f32.mrb[4].mxu0  ;;  %v652_v56 = vpop.f32.mrb[4].mxu1  ;;  %9920 = vst [vmem:[#allocation14_spill] sm:$0xff] %v6209_v12  ;;  %9922 = vst [vmem:[#allocation16_spill] sm:$0xff] %v6222_v19  ;;  %v6236_v28 = vmul.f32 100.0, %v6209_v12  ;;  %v6245_v34 = vmul.f32 100.0, %v6222_v19 }
  0xfd   : > { %5317 = vpow2.f32 %v937_v50  ;;  %v6186_v59 = vadd.f32 %v563_v55, %v6168_v49  ;;  %v6188_v60 = vpop.f32.mrb[5].mxu0  ;;  %v6190_v61 = vpop.f32.mrb[5].mxu1  ;;  %v6193_v62 = vadd.f32 %v652_v56, %v6168_v49  ;;  %v913_v1 = vmin.f32 %v6180_v57, 20.0 }
  0xfe   : > { %5319 = vpow2.f32 %v941_v51  ;;  %v915_v2 = vmin.f32 %v6183_v58, 20.0  ;;  %9923 = vst [vmem:[#allocation17_spill] sm:$0xff] %v6236_v28  ;;  %9924 = vst [vmem:[#allocation18_spill] sm:$0xff] %v6245_v34  ;;  %v939_v44 = vmul.f32 1.442695, %v906_v24  ;;  %v914_v46 = vmin.f32 %v6236_v28, 20.0 }
  0xff   : > { %v953_v6 = vmul.f32 1.442695, %v913_v1  ;;  %v6204_v7 = vmul.f32 100.0, %v6186_v59  ;;  %v6212_v15 = vmul.f32 100.0, %v6193_v62  ;;  %v943_v55 = vmul.f32 1.442695, %v908_v32 }
 0x100   : > { %v569_v3 = vpop.f32.mrb[6].mxu0  ;;  %v658_v4 = vpop.f32.mrb[6].mxu1  ;;  %v957_v11 = vmul.f32 1.442695, %v915_v2  ;;  %v916_v56 = vmin.f32 %v6245_v34, 20.0  ;;  %v6295_v13 = vadd.f32 %v6188_v60, %v6168_v49  ;;  %vm873_vm2 = vcmp.gt.f32.partialorder %v6159_v40, 20.0 }
 0x101   : > { %v6206_v8 = vpop.f32.mrb[7].mxu0  ;;  %v6214_v16 = vpop.f32.mrb[7].mxu1  ;;  %5321 = vpow2.f32 %v953_v6  ;;  %v921_v20 = vmin.f32 %v6204_v7, 20.0  ;;  %v923_v21 = vmin.f32 %v6212_v15, 20.0  ;;  %v6239_v30 = vadd.f32 %v569_v3, %v6216_v17 }
 0x102   : > { %5323 = vpow2.f32 %v957_v11  ;;  %v6256_v45 = vadd.f32 %v658_v4, %v6216_v17  ;;  %9925 = vst [vmem:[#allocation19_spill] sm:$0xff] %v6295_v13  ;;  %vm875_vm4 = vcmp.gt.f32.partialorder %v6162_v41, 20.0  ;;  %vm881_vm5 = vcmp.gt.f32.partialorder %v6180_v57, 20.0 }
 0x103   : > { %v969_v25 = vmul.f32 1.442695, %v921_v20  ;;  %v973_v29 = vmul.f32 1.442695, %v923_v21  ;;  %v6260_v47 = vmul.f32 100.0, %v6239_v30  ;;  %vm883_vm7 = vcmp.gt.f32.partialorder %v6183_v58, 20.0 }
 0x104   : > { %v6226_v22 = vpop.f32.mrb[8].mxu0  ;;  %v6228_v23 = vpop.f32.mrb[8].mxu1  ;;  %v6274_v4 = vmul.f32 100.0, %v6256_v45  ;;  %vm889_vm10 = vcmp.gt.f32.partialorder %v6204_v7, 20.0  ;;  %vm891_vm14 = vcmp.gt.f32.partialorder %v6212_v15, 20.0 }
 0x105   : > { %v6231_v26 = vpop.f32.mrb[9].mxu0  ;;  %v6233_v27 = vpop.f32.mrb[9].mxu1  ;;  %5325 = vpow2.f32 %v969_v25  ;;  %v955_v25 = vmul.f32 1.442695, %v914_v46  ;;  %v6299_v46 = vadd.f32 %v6190_v61, %v6168_v49  ;;  %vm897_vm13 = vcmp.gt.f32.partialorder %v6260_v47, 20.0 }
 0x106   : > { %5327 = vpow2.f32 %v973_v29  ;;  %v929_v29 = vmin.f32 %v6260_v47, 20.0  ;;  %vm899_vm15 = vcmp.gt.f32.partialorder %v6274_v4, 20.0 }
 0x107   : > { %v6241_v31 = vpop.eup %5317  ;;  %9926 = vst [vmem:[#allocation20_spill] sm:$0xff] %v6299_v46 }
 0x108   : > { %v6247_v35 = vpop.eup %5319  ;;  %v1001_v38 = vadd.f32 1.0, %v6241_v31  ;;  %v6250_v39 = vpop.f32.mrb[10].mxu0  ;;  %v1004_v21 = vmul.f32 -0.5, %v6241_v31  ;;  %v985_v19 = vmul.f32 1.442695, %v929_v29  ;;  %v6318_v29 = vmul.f32 100.0, %v6299_v46 }
 0x109   : > { %v6252_v42 = vpop.f32.mrb[10].mxu1  ;;  %v1019_v43 = vadd.f32 1.0, %v6247_v35  ;;  %v6262_v50 = vpop.f32.mrb[11].mxu0  ;;  %v1022_v32 = vmul.f32 -0.5, %v6247_v35  ;;  %v1007_v60 = vand.u32 2147483647, %v6241_v31 }
 0x10a   : > { %5329 = vlog2.f32 %v1001_v38  ;;  %v6264_v51 = vpop.f32.mrb[11].mxu1  ;;  %v1005_v9 = vadd.f32 1.0, %v1004_v21  ;;  %v1025_v18 = vand.u32 2147483647, %v6247_v35  ;;  %9930 = vst [vmem:[#allocation24_spill] sm:$0xff] %v6318_v29 }
 0x10b   : > { %5331 = vlog2.f32 %v1019_v43  ;;  %v6271_v3 = vpop.eup %5321  ;;  %v959_v43 = vmul.f32 1.442695, %v916_v56  ;;  %v1023_v63 = vadd.f32 1.0, %v1022_v32  ;;  %vm6325_vm3 = vcmp.lt.f32.partialorder %v1007_v60, 0.0004427343 }
 0x10c   : > { %v6267_v1 = vpop.f32.mrb[12].mxu0  ;;  %v6269_v2 = vpop.f32.mrb[12].mxu1  ;;  %5333 = vpow2.f32 %v939_v44  ;;  %v1073_v24 = vadd.f32 1.0, %v6271_v3  ;;  %v1076_v34 = vmul.f32 -0.5, %v6271_v3  ;;  %v1006_v32 = vmul.f32 %v6241_v31, %v1005_v9 }
 0x10d   : > { %v6276_v6 = vpop.f32.mrb[13].mxu0  ;;  %v6278_v11 = vpop.f32.mrb[13].mxu1  ;;  %5335 = vpow2.f32 %v943_v55  ;;  %v931_v55 = vmin.f32 %v6274_v4, 20.0  ;;  %vm6334_vm6 = vcmp.lt.f32.partialorder %v1025_v18, 0.0004427343  ;;  %v6350_v18 = vadd.f32 %v6228_v23, %v6150_v33 }
 0x10e   : > { %v6280_v20 = vpop.eup %5323  ;;  %5337 = vlog2.f32 %v1073_v24 }
 0x10f   : > { %v1091_v38 = vadd.f32 1.0, %v6280_v20  ;;  %v6291_v14 = vpop.eup %5325  ;;  %v1094_v12 = vmul.f32 -0.5, %v6280_v20  ;;  %v989_v28 = vmul.f32 1.442695, %v931_v55 }
 0x110   : > { %v6287_v44 = vpop.f32.mrb[14].mxu0  ;;  %v6289_v0 = vpop.f32.mrb[14].mxu1  ;;  %v1148_v23 = vmul.f32 -0.5, %v6291_v14 }
 0x111   : > { %5339 = vlog2.f32 %v1091_v38  ;;  %v6302_v10 = vpop.f32.mrb[15].mxu0  ;;  %v6304_v56 = vpop.f32.mrb[15].mxu1  ;;  %v1145_v38 = vadd.f32 1.0, %v6291_v14 }
 0x112   : > { %9927 = vst [vmem:[#allocation21_spill] sm:$0xff] %v6302_v10  ;;  %9928 = vst [vmem:[#allocation22_spill] sm:$0xff] %v6304_v56  ;;  %v6306_v24 = vpop.eup %5327  ;;  %5341 = vpow2.f32 %v955_v25  ;;  %v6315_v25 = vmul.f32 100.0, %v6295_v13  ;;  %v1079_v56 = vand.u32 2147483647, %v6271_v3 }
 0x113   : > { %5343 = vpow2.f32 %v959_v43  ;;  %v1163_v54 = vadd.f32 1.0, %v6306_v24 }
 0x114   : > { %v5330_v61 = vpop.eup %5329  ;;  %5345 = vlog2.f32 %v1145_v38  ;;  %9929 = vst [vmem:[#allocation23_spill] sm:$0xff] %v6315_v25  ;;  %v1024_v38 = vmul.f32 %v6247_v35, %v1023_v63  ;;  %v1097_v35 = vand.u32 2147483647, %v6280_v20  ;;  %vm6352_vm8 = vcmp.lt.f32.partialorder %v1079_v56, 0.0004427343 }
 0x115   : > { %v5332_v5 = vpop.eup %5331  ;;  %v1003_v21 = vmul.f32 0.6931472, %v5330_v61  ;;  %5347 = vpow2.f32 %v985_v19  ;;  %v1077_v61 = vadd.f32 1.0, %v1076_v34  ;;  %v1095_v19 = vadd.f32 1.0, %v1094_v12 }
 0x116   : > { %v1021_v43 = vmul.f32 0.6931472, %v5332_v5  ;;  %v6322_v10 = vpop.eup %5333  ;;  %5349 = vpow2.f32 %v989_v28  ;;  %v6346_v28 = vadd.f32 %v6226_v22, %v6150_v33  ;;  %v924_v12 = vmin.f32 %v6318_v29, 20.0 }
 0x117   : > { %v1009_v9 = vsel %vm6325_vm3, %v1006_v32, %v1003_v21  ;;  %5351 = vlog2.f32 %v1163_v54  ;;  %v6339_v31 = vpop.eup %5335  ;;  %v922_v54 = vmin.f32 %v6315_v25, 20.0  ;;  %v6360_v21 = vadd.f32 %v6206_v8, %v6216_v17 }
 0x118   : > { %v1027_v63 = vsel %vm6334_vm6, %v1024_v38, %v1021_v43  ;;  %v5338_v34 = vpop.eup %5337  ;;  %v1289_v22 = vmul.f32 0.01, %v1009_v9  ;;  %v1078_v55 = vmul.f32 %v6271_v3, %v1077_v61  ;;  %v1096_v46 = vmul.f32 %v6280_v20, %v1095_v19 }
 0x119   : > { %v1075_v43 = vmul.f32 0.6931472, %v5338_v34  ;;  %v1291_v56 = vmul.f32 0.01, %v1027_v63  ;;  %v6368_v13 = vmul.f32 100.0, %v6346_v28  ;;  %v6376_v3 = vmul.f32 100.0, %v6350_v18 }
 0x11a   : > { %vm1098_vm9 = vcmp.lt.f32.partialorder %v1097_v35, 0.0004427343  ;;  %v1151_v9 = vand.u32 2147483647, %v6291_v14  ;;  %v1166_v63 = vmul.f32 -0.5, %v6306_v24  ;;  %v1149_v25 = vadd.f32 1.0, %v1148_v23 }
 0x11b   : > { %v5340_v32 = vpop.eup %5339  ;;  %v1081_v8 = vsel %vm6352_vm8, %v1078_v55, %v1075_v43  ;;  %v909_v20 = vmin.f32 %v6368_v13, 20.0  ;;  %v6382_v60 = vmul.f32 100.0, %v6360_v21  ;;  %v6389_v43 = vsel %vm873_vm2, %v6153_v36, %v1289_v22 }
 0x11c   : > { %v6364_v38 = vpop.eup %5341  ;;  %v1093_v5 = vmul.f32 0.6931472, %v5340_v32  ;;  %v1297_v61 = vmul.f32 0.01, %v1081_v8  ;;  %v6403_v23 = vadd.f32 %v6214_v16, %v6216_v17  ;;  %v911_v41 = vmin.f32 %v6376_v3, 20.0 }
 0x11d   : > { %v6370_v29 = vpop.eup %5343  ;;  %v1167_v22 = vadd.f32 1.0, %v1166_v63  ;;  %v971_v8 = vmul.f32 1.442695, %v922_v54  ;;  %vm6422_vm11 = vcmp.lt.f32.partialorder %v1151_v9, 0.0004427343  ;;  %vm877_vm6 = vcmp.gt.f32.partialorder %v6368_v13, 20.0 }
 0x11e   : > { %9937 = vst [vmem:[#allocation25_spill] sm:$0xff] %v6370_v29  ;;  %v1099_v34 = vsel %vm1098_vm9, %v1096_v46, %v1093_v5  ;;  %v5346_v19 = vpop.eup %5345  ;;  %v1169_v29 = vand.u32 2147483647, %v6306_v24  ;;  %v6394_v46 = vsel %vm875_vm4, %v6156_v37, %v1291_v56  ;;  %v6399_v55 = vsel %vm881_vm5, %v6171_v52, %v1297_v61 }
 0x11f   : > { %v1299_v32 = vmul.f32 0.01, %v1099_v34  ;;  %v6384_v35 = vpop.eup %5347  ;;  %v1147_v16 = vmul.f32 0.6931472, %v5346_v19  ;;  %v945_v56 = vmul.f32 1.442695, %v909_v20 }
 0x120   : > { %v6405_v5 = vpop.eup %5349  ;;  %v1217_v37 = vadd.f32 1.0, %v6384_v35  ;;  %v930_v34 = vmin.f32 %v6382_v60, 20.0  ;;  %v6427_v57 = vmul.f32 100.0, %v6403_v23  ;;  %vm6429_vm12 = vcmp.lt.f32.partialorder %v1169_v29, 0.0004427343 }
 0x121   : > { %v6412_v40 = vsel %vm883_vm7, %v6174_v53, %v1299_v32  ;;  %v5352_v52 = vpop.eup %5351  ;;  %v1235_v61 = vadd.f32 1.0, %v6405_v5  ;;  %v1150_v53 = vmul.f32 %v6291_v14, %v1149_v25  ;;  %v975_v32 = vmul.f32 1.442695, %v924_v12 }
 0x122   : > { %5353 = vlog2.f32 %v1217_v37  ;;  %v1165_v63 = vmul.f32 0.6931472, %v5352_v52  ;;  %v949_v20 = vmul.f32 1.442695, %v911_v41  ;;  %v1168_v14 = vmul.f32 %v6306_v24, %v1167_v22 }
 0x123   : > { %5355 = vlog2.f32 %v1235_v61  ;;  %v1153_v19 = vsel %vm6422_vm11, %v1150_v53, %v1147_v16  ;;  %v1220_v25 = vmul.f32 -0.5, %v6384_v35  ;;  %v1238_v12 = vmul.f32 -0.5, %v6405_v5 }
 0x124   : > { %5357 = vpow2.f32 %v945_v56  ;;  %v987_v9 = vmul.f32 1.442695, %v930_v34  ;;  %v6440_v29 = vadd.f32 %v6231_v26, %v6150_v33  ;;  %v932_v37 = vmin.f32 %v6427_v57, 20.0 }
 0x125   : > { %5359 = vpow2.f32 %v949_v20  ;;  %v6445_v41 = vadd.f32 %v6233_v27, %v6150_v33  ;;  %v6449_v24 = vadd.f32 %v6250_v39, %v6166_v48  ;;  %v6453_v52 = vadd.f32 %v6252_v42, %v6166_v48 }
 0x126   : > { %9942 = vst [vmem:[#allocation26_spill] sm:$0xff] %v6440_v29  ;;  %v1305_v16 = vmul.f32 0.01, %v1153_v19  ;;  %v1171_v22 = vsel %vm6429_vm12, %v1168_v14, %v1165_v63  ;;  %5361 = vpow2.f32 %v971_v8  ;;  %v1223_v26 = vand.u32 2147483647, %v6384_v35 }
 0x127   : > { %9943 = vst [vmem:[#allocation27_spill] sm:$0xff] %v6445_v41  ;;  %v1221_v56 = vadd.f32 1.0, %v1220_v25  ;;  %v6460_v33 = vmul.f32 100.0, %v6449_v24  ;;  %v6463_v27 = vmul.f32 100.0, %v6453_v52  ;;  %v6467_v39 = vadd.f32 %v6267_v1, %v6168_v49 }
 0x128   : > { %5363 = vpow2.f32 %v975_v32  ;;  %v1239_v42 = vadd.f32 1.0, %v1238_v12  ;;  %v1241_v8 = vand.u32 2147483647, %v6405_v5  ;;  %v6472_v61 = vmul.f32 100.0, %v6440_v29 }
 0x129   : > { %5365 = vpow2.f32 %v987_v9  ;;  %v991_v34 = vmul.f32 1.442695, %v932_v37  ;;  %v6476_v53 = vmul.f32 100.0, %v6445_v41  ;;  %v917_v58 = vmin.f32 %v6460_v33, 20.0 }
 0x12a   : > { %v6482_v32 = vsel %vm889_vm10, %v6186_v59, %v1305_v16  ;;  %v1307_v63 = vmul.f32 0.01, %v1171_v22  ;;  %vm6484_vm2 = vcmp.lt.f32.partialorder %v1223_v26, 0.0004427343  ;;  %v919_v20 = vmin.f32 %v6463_v27, 20.0 }
 0x12b   : > { %9944 = vst [vmem:[#allocation28_spill] sm:$0xff] %v6476_v53  ;;  %v1222_v14 = vmul.f32 %v6384_v35, %v1221_v56  ;;  %v961_v25 = vmul.f32 1.442695, %v917_v58  ;;  %v6491_v12 = vmul.f32 100.0, %v6467_v39  ;;  %v1240_v37 = vmul.f32 %v6405_v5, %v1239_v42 }
 0x12c   : > { %v5354_v1 = vpop.eup %5353  ;;  %vm6494_vm3 = vcmp.lt.f32.partialorder %v1241_v8, 0.0004427343  ;;  %v910_v7 = vmin.f32 %v6472_v61, 20.0  ;;  %v6501_v16 = vadd.f32 %v6269_v2, %v6168_v49  ;;  %v6509_v5 = vadd.f32 %v6262_v50, %v6166_v48 }
 0x12d   : > { %v1219_v19 = vmul.f32 0.6931472, %v5354_v1  ;;  %v5356_v9 = vpop.eup %5355  ;;  %5367 = vpow2.f32 %v961_v25  ;;  %v965_v58 = vmul.f32 1.442695, %v919_v20  ;;  %v6514_v2 = vadd.f32 %v6264_v51, %v6166_v48 }
 0x12e   : > { %v6503_v22 = vpop.eup %5357  ;;  %v1237_v26 = vmul.f32 0.6931472, %v5356_v9  ;;  %9949 = vst [vmem:[#allocation29_spill] sm:$0xff] %v6509_v5  ;;  %v6528_v48 = vmul.f32 100.0, %v6501_v16  ;;  %v6533_v51 = vsel %vm891_vm14, %v6193_v62, %v1307_v63  ;;  %v947_v59 = vmul.f32 1.442695, %v910_v7 }
 0x12f   : > { %v1225_v35 = vsel %vm6484_vm2, %v1222_v14, %v1219_v19  ;;  %v5360_v56 = vpop.eup %5359  ;;  %v1037_v8 = vadd.f32 1.0, %v6503_v22  ;;  %9950 = vst [vmem:[#allocation30_spill] sm:$0xff] %v6514_v2  ;;  %v912_v19 = vmin.f32 %v6476_v53, 20.0  ;;  %v925_v14 = vmin.f32 %v6491_v12, 20.0  ;;  %9951 = vst [vmem:[#allocation31_spill] sm:$0xff] %v6533_v51 }
 0x130   : > { %v1313_v42 = vmul.f32 0.01, %v1225_v35  ;;  %v1243_v1 = vsel %vm6494_vm3, %v1240_v37, %v1237_v26  ;;  %v1055_v54 = vadd.f32 1.0, %v5360_v56  ;;  %v6520_v25 = vpop.eup %5361  ;;  %v6538_v37 = vmul.f32 100.0, %v6509_v5 }
 0x131   : > { %v1315_v20 = vmul.f32 0.01, %v1243_v1  ;;  %5369 = vlog2.f32 %v1037_v8  ;;  %v6548_v15 = vmul.f32 100.0, %v6514_v2  ;;  %v1040_v35 = vmul.f32 -0.5, %v6503_v22 }
 0x132   : > { %v6525_v50 = vsel %vm897_vm13, %v6239_v30, %v1313_v42  ;;  %5371 = vlog2.f32 %v1055_v54  ;;  %v6540_v47 = vpop.eup %5363  ;;  %v1058_v26 = vmul.f32 -0.5, %v5360_v56  ;;  %v977_v42 = vmul.f32 1.442695, %v925_v14 }
 0x133   : > { %v6545_v30 = vsel %vm899_vm15, %v6256_v45, %v1315_v20  ;;  %5373 = vpow2.f32 %v965_v58  ;;  %9953 = vst [vmem:[#allocation33_spill] sm:$0xff] %v6548_v15  ;;  %v6550_v62 = vpop.eup %5365  ;;  %v951_v8 = vmul.f32 1.442695, %v912_v19  ;;  %v927_v4 = vmin.f32 %v6528_v48, 20.0 }
 0x134   : > { %9952 = vst [vmem:[#allocation32_spill] sm:$0xff] %v6545_v30  ;;  %5375 = vpow2.f32 %v991_v34  ;;  %v6558_v45 = vadd.f32 %v6276_v6, %v6168_v49  ;;  %v918_v7 = vmin.f32 %v6538_v37, 20.0  ;;  %v6563_v58 = vadd.f32 %v6278_v11, %v6168_v49 }
 0x135   : > { %5377 = vpow2.f32 %v977_v42  ;;  %v6567_v1 = vadd.f32 %v6287_v44, %v6216_v17  ;;  %v1043_v34 = vand.u32 2147483647, %v6503_v22  ;;  %v920_v54 = vmin.f32 %v6548_v15, 20.0 }
 0x136   : > { %9954 = vst [vmem:[#allocation34_spill] sm:$0xff] %v6558_v45  ;;  %9955 = vst [vmem:[#allocation35_spill] sm:$0xff] %v6563_v58  ;;  %5379 = vpow2.f32 %v947_v59  ;;  %v981_v19 = vmul.f32 1.442695, %v927_v4  ;;  %v1041_v6 = vadd.f32 1.0, %v1040_v35  ;;  %v1059_v20 = vadd.f32 1.0, %v1058_v26 }
 0x137   : > { %v5368_v14 = vpop.eup %5367  ;;  %v1061_v63 = vand.u32 2147483647, %v5360_v56  ;;  %v6573_v42 = vadd.f32 %v6289_v0, %v6216_v17  ;;  %v6576_v11 = vmul.f32 100.0, %v6558_v45  ;;  %v6579_v44 = vmul.f32 100.0, %v6567_v1 }
 0x138   : > { %v1109_v49 = vadd.f32 1.0, %v5368_v14  ;;  %5381 = vpow2.f32 %v981_v19  ;;  %v963_v59 = vmul.f32 1.442695, %v918_v7  ;;  %v6582_v4 = vmul.f32 100.0, %v6563_v58 }
 0x139   : > { %9956 = vst [vmem:[#allocation36_spill] sm:$0xff] %v6576_v11  ;;  %5383 = vpow2.f32 %v951_v8  ;;  %v1010_v35 = vadd.f32 1.0, %v6322_v10  ;;  %vm6585_vm4 = vcmp.lt.f32.partialorder %v1043_v34, 0.0004427343  ;;  %v1112_v0 = vmul.f32 -0.5, %v5368_v14 }
 0x13a   : > { %9957 = vst [vmem:[#allocation37_spill] sm:$0xff] %v6582_v4  ;;  %5385 = vlog2.f32 %v1109_v49  ;;  %v967_v19 = vmul.f32 1.442695, %v920_v54  ;;  %v1042_v2 = vmul.f32 %v6503_v22, %v1041_v6  ;;  %v1060_v41 = vmul.f32 %v5360_v56, %v1059_v20  ;;  %v9962_v20 = vld [vmem:[#allocation21_spill] sm:$0xff] }
 0x13b   : > { %v5370_v26 = vpop.eup %5369  ;;  %vm6590_vm5 = vcmp.lt.f32.partialorder %v1061_v63, 0.0004427343  ;;  %v926_v15 = vmin.f32 %v6576_v11, 20.0  ;;  %v933_v34 = vmin.f32 %v6579_v44, 20.0  ;;  %v6597_v53 = vmul.f32 100.0, %v6573_v42 }
 0x13c   : > { %v5372_v36 = vpop.eup %5371  ;;  %v1039_v45 = vmul.f32 0.6931472, %v5370_v26  ;;  %vm879_vm7 = vcmp.gt.f32.partialorder %v6376_v3, 20.0  ;;  %v1115_v54 = vand.u32 2147483647, %v5368_v14  ;;  %v928_v56 = vmin.f32 %v6582_v4, 20.0 }
 0x13d   : > { %v5374_v7 = vpop.eup %5373  ;;  %v1057_v58 = vmul.f32 0.6931472, %v5372_v36  ;;  %5387 = vlog2.f32 %v1010_v35  ;;  %v1113_v6 = vadd.f32 1.0, %v1112_v0  ;;  %v6608_v49 = vadd.f32 %v9962_v20, %v6216_v17 }
 0x13e   : > { %v1127_v22 = vadd.f32 1.0, %v5374_v7  ;;  %v6602_v63 = vpop.eup %5375  ;;  %v1045_v36 = vsel %vm6585_vm4, %v1042_v2, %v1039_v45  ;;  %5389 = vpow2.f32 %v963_v59  ;;  %v1130_v5 = vmul.f32 -0.5, %v5374_v7 }
 0x13f   : > { %9963 = vst [vmem:[#allocation21_spill] sm:$0xff] %v6608_v49  ;;  %v6610_v26 = vpop.eup %5377  ;;  %v1063_v11 = vsel %vm6590_vm5, %v1060_v41, %v1057_v58  ;;  %v993_v4 = vmul.f32 1.442695, %v933_v34  ;;  %v1133_v29 = vand.u32 2147483647, %v5374_v7  ;;  %vm885_vm8 = vcmp.gt.f32.partialorder %v6460_v33, 20.0 }
 0x140   : > { %5391 = vlog2.f32 %v1127_v22  ;;  %v6614_v35 = vpop.eup %5379  ;;  %v1181_v2 = vadd.f32 1.0, %v6610_v26  ;;  %v979_v9 = vmul.f32 1.442695, %v926_v15  ;;  %vm6618_vm9 = vcmp.lt.f32.partialorder %v1115_v54, 0.0004427343  ;;  %v9966_v41 = vld [vmem:[#allocation22_spill] sm:$0xff] }
 0x141   : > { %5393 = vpow2.f32 %v967_v19  ;;  %v983_v59 = vmul.f32 1.442695, %v928_v56  ;;  %v935_v0 = vmin.f32 %v6597_v53, 20.0  ;;  %v6625_v58 = vadd.f32 %v9966_v41, %v6216_v17 }
 0x142   : > { %v6627_v8 = vpop.eup %5381  ;;  %v1293_v34 = vmul.f32 0.01, %v1045_v36  ;;  %v1295_v19 = vmul.f32 0.01, %v1063_v11  ;;  %v1114_v22 = vmul.f32 %v5368_v14, %v1113_v6  ;;  %5395 = vlog2.f32 %v1181_v2 }
 0x143   : > { %9967 = vst [vmem:[#allocation22_spill] sm:$0xff] %v6625_v58  ;;  %v6629_v15 = vpop.eup %5383  ;;  %v1131_v20 = vadd.f32 1.0, %v1130_v5  ;;  %v1199_v54 = vadd.f32 1.0, %v6627_v8  ;;  %5397 = vpow2.f32 %v993_v4  ;;  %v6633_v56 = vmul.f32 100.0, %v6608_v49  ;;  %v9986_v49 = vld [vmem:[#allocation15_spill] sm:$0xff] }
 0x144   : > { %v5386_v51 = vpop.eup %5385  ;;  %vm6635_vm10 = vcmp.lt.f32.partialorder %v1133_v29, 0.0004427343  ;;  %v1184_v17 = vmul.f32 -0.5, %v6610_v26  ;;  %5399 = vpow2.f32 %v979_v9  ;;  %v997_v11 = vmul.f32 1.442695, %v935_v0 }
 0x145   : > { %v1111_v14 = vmul.f32 0.6931472, %v5386_v51  ;;  %v1187_v36 = vand.u32 2147483647, %v6610_v26  ;;  %5401 = vlog2.f32 %v1199_v54  ;;  %v1202_v5 = vmul.f32 -0.5, %v6627_v8 }
 0x146   : > { %v6645_v4 = vsel %vm877_vm6, %v6346_v28, %v1293_v34  ;;  %v6650_v29 = vsel %vm879_vm7, %v6350_v18, %v1295_v19  ;;  %vm887_vm11 = vcmp.gt.f32.partialorder %v6463_v27, 20.0  ;;  %5403 = vpow2.f32 %v997_v11 }
 0x147   : > { %v6654_v51 = vmul.f32 100.0, %v6625_v58  ;;  %v5388_v6 = vpop.eup %5387  ;;  %v1117_v2 = vsel %vm6618_vm9, %v1114_v22, %v1111_v14  ;;  %v1132_v9 = vmul.f32 %v5374_v7, %v1131_v20  ;;  %v934_v13 = vmin.f32 %v6633_v56, 20.0 }
 0x148   : > { %v1013_v28 = vmul.f32 -0.5, %v6322_v10  ;;  %v6660_v0 = vpop.eup %5389  ;;  %v1301_v3 = vmul.f32 0.01, %v1117_v2  ;;  %v1185_v18 = vadd.f32 1.0, %v1184_v17  ;;  %5405 = vpow2.f32 %v983_v59 }
 0x149   : > { %9970 = vst [vmem:[#allocation38_spill] sm:$0xff] %v6654_v51  ;;  %v1016_v41 = vand.u32 2147483647, %v6322_v10  ;;  %vm6663_vm12 = vcmp.lt.f32.partialorder %v1187_v36, 0.0004427343  ;;  %v1203_v54 = vadd.f32 1.0, %v1202_v5 }
 0x14a   : > { %v5392_v34 = vpop.eup %5391  ;;  %v1014_v45 = vadd.f32 1.0, %v1013_v28  ;;  %v1082_v7 = vadd.f32 1.0, %v6364_v38  ;;  %v6673_v20 = vsel %vm885_vm8, %v6449_v24, %v1301_v3  ;;  %v936_v59 = vmin.f32 %v6654_v51, 20.0 }
 0x14b   : > { %v6668_v22 = vpop.eup %5393  ;;  %v1129_v17 = vmul.f32 0.6931472, %v5392_v34  ;;  %v1012_v11 = vmul.f32 0.6931472, %v5388_v6  ;;  %v1205_v36 = vand.u32 2147483647, %v6627_v8 }
 0x14c   : > { %v995_v5 = vmul.f32 1.442695, %v934_v13  ;;  %5407 = vlog2.f32 %v1082_v7  ;;  %v5396_v2 = vpop.eup %5395  ;;  %vm893_vm13 = vcmp.gt.f32.partialorder %v6491_v12, 20.0  ;;  %v1015_v24 = vmul.f32 %v6322_v10, %v1014_v45  ;;  %v9975_v34 = vld [vmem:[#allocation13_spill] sm:$0xff] }
 0x14d   : > { %v1135_v28 = vsel %vm6635_vm10, %v1132_v9, %v1129_v17  ;;  %vm6683_vm14 = vcmp.lt.f32.partialorder %v1016_v41, 0.0004427343  ;;  %v1028_v6 = vadd.f32 1.0, %v6339_v31  ;;  %v5398_v3 = vpop.eup %5397  ;;  %vm874_vm15 = vcmp.gt.f32.partialorder %v9975_v34, 20.0 }
 0x14e   : > { %v1303_v14 = vmul.f32 0.01, %v1135_v28  ;;  %v1183_v13 = vmul.f32 0.6931472, %v5396_v2  ;;  %v1186_v7 = vmul.f32 %v6610_v26, %v1185_v18  ;;  %v1085_v30 = vmul.f32 -0.5, %v6364_v38  ;;  %v6691_v9 = vpop.eup %5399 }
 0x14f   : > { %v1204_v17 = vmul.f32 %v6627_v8, %v1203_v54  ;;  %v1253_v10 = vadd.f32 1.0, %v5398_v3  ;;  %v999_v41 = vmul.f32 1.442695, %v936_v59  ;;  %v1018_v45 = vsel %vm6683_vm14, %v1015_v24, %v1012_v11  ;;  %v5402_v58 = vpop.eup %5401 }
 0x150   : > { %v6699_v51 = vsel %vm887_vm11, %v6453_v52, %v1303_v14  ;;  %v1189_v26 = vsel %vm6663_vm12, %v1186_v7, %v1183_v13  ;;  %v1256_v18 = vmul.f32 -0.5, %v5398_v3  ;;  %5409 = vlog2.f32 %v1028_v6  ;;  %v5404_v2 = vpop.eup %5403  ;;  %v9976_v52 = vld [vmem:[#allocation17_spill] sm:$0xff] }
 0x151   : > { %v1201_v54 = vmul.f32 0.6931472, %v5402_v58  ;;  %5411 = vlog2.f32 %v1253_v10  ;;  %v1088_v59 = vand.u32 2147483647, %v6364_v38  ;;  %v1309_v11 = vmul.f32 0.01, %v1189_v26 }
 0x152   : > { %v1259_v28 = vand.u32 2147483647, %v5398_v3  ;;  %v1271_v24 = vadd.f32 1.0, %v5404_v2  ;;  %v1086_v33 = vadd.f32 1.0, %v1085_v30  ;;  %v6706_v27 = vpop.eup %5405  ;;  %vm882_vm2 = vcmp.gt.f32.partialorder %v9976_v52, 20.0  ;;  %v9979_v10 = vld [vmem:[#allocation25_spill] sm:$0xff] }
 0x153   : > { %vm895_vm3 = vcmp.gt.f32.partialorder %v6528_v48, 20.0  ;;  %vm6710_vm4 = vcmp.lt.f32.partialorder %v1205_v36, 0.0004427343  ;;  %5413 = vpow2.f32 %v995_v5  ;;  %v1290_v14 = vmul.f32 0.01, %v1018_v45 }
 0x154   : > { %v1207_v58 = vsel %vm6710_vm4, %v1204_v17, %v1201_v54  ;;  %v1257_v6 = vadd.f32 1.0, %v1256_v18  ;;  %5415 = vlog2.f32 %v1271_v24  ;;  %v1274_v13 = vmul.f32 -0.5, %v5404_v2 }
 0x155   : > { %v1277_v7 = vand.u32 2147483647, %v5404_v2  ;;  %5417 = vpow2.f32 %v999_v41  ;;  %v1031_v30 = vmul.f32 -0.5, %v6339_v31  ;;  %v1100_v26 = vadd.f32 1.0, %v9979_v10  ;;  %v9982_v41 = vld [vmem:[#allocation11_spill] sm:$0xff] }
 0x156   : > { %v5408_v8 = vpop.eup %5407  ;;  %v6721_v36 = vsel %vm893_vm13, %v6467_v39, %v1309_v11  ;;  %vm6723_vm5 = vcmp.lt.f32.partialorder %v1259_v28, 0.0004427343  ;;  %v1087_v17 = vmul.f32 %v6364_v38, %v1086_v33  ;;  %vm1089_vm6 = vcmp.lt.f32.partialorder %v1088_v59, 0.0004427343 }
 0x157   : > { %v1311_v45 = vmul.f32 0.01, %v1207_v58  ;;  %v1084_v18 = vmul.f32 0.6931472, %v5408_v8  ;;  %v1322_v54 = vsel %vm874_vm15, %v9982_v41, %v1290_v14  ;;  %5419 = vlog2.f32 %v1100_v26 }
 0x158   : > { %vm901_vm7 = vcmp.gt.f32.partialorder %v6579_v44, 20.0  ;;  %v1258_v24 = vmul.f32 %v5398_v3, %v1257_v6  ;;  %v1275_v12 = vadd.f32 1.0, %v1274_v13  ;;  %v1103_v39 = vmul.f32 -0.5, %v9979_v10 }
 0x159   : > { %v1154_v11 = vadd.f32 1.0, %v6520_v25  ;;  %vm6734_vm8 = vcmp.lt.f32.partialorder %v1277_v7, 0.0004427343  ;;  %v1090_v38 = vsel %vm1089_vm6, %v1087_v17, %v1084_v18  ;;  %v1032_v59 = vadd.f32 1.0, %v1031_v30  ;;  %v9985_v30 = vld [vmem:[#allocation14_spill] sm:$0xff] }
 0x15a   : > { %v1226_v8 = vadd.f32 1.0, %v6550_v62  ;;  %v5410_v33 = vpop.eup %5409  ;;  %v1298_v34 = vmul.f32 0.01, %v1090_v38  ;;  %v1034_v19 = vand.u32 2147483647, %v6339_v31  ;;  %v1157_v3 = vmul.f32 -0.5, %v6520_v25 }
 0x15b   : > { %5421 = vlog2.f32 %v1154_v11  ;;  %v5412_v14 = vpop.eup %5411  ;;  %v6744_v58 = vsel %vm895_vm3, %v6501_v16, %v1311_v45  ;;  %vm903_vm9 = vcmp.gt.f32.partialorder %v6597_v53, 20.0  ;;  %v1106_v6 = vand.u32 2147483647, %v9979_v10 }
 0x15c   : > { %5423 = vlog2.f32 %v1226_v8  ;;  %v1229_v13 = vmul.f32 -0.5, %v6550_v62  ;;  %v1255_v7 = vmul.f32 0.6931472, %v5412_v14  ;;  %v1330_v26 = vsel %vm882_vm2, %v9985_v30, %v1298_v34  ;;  %v9987_v8 = vld [vmem:[#allocation18_spill] sm:$0xff] }
 0x15d   : > { %v1030_v17 = vmul.f32 0.6931472, %v5410_v33  ;;  %v1104_v18 = vadd.f32 1.0, %v1103_v39  ;;  %v6752_v41 = vpop.eup %5413  ;;  %v1276_v11 = vmul.f32 %v5404_v2, %v1275_v12  ;;  %v5097_v48 = vpack.c.bf16 %v1330_v26, %v1322_v54 }
 0x15e   : > { %v1160_v16 = vand.u32 2147483647, %v6520_v25  ;;  %v1172_v45 = vadd.f32 1.0, %v6540_v47  ;;  %v5416_v38 = vpop.eup %5415  ;;  %vm876_vm10 = vcmp.gt.f32.partialorder %v9986_v49, 20.0  ;;  %vm884_vm11 = vcmp.gt.f32.partialorder %v9987_v8, 20.0 }
 0x15f   : > { %v1261_v14 = vsel %vm6723_vm5, %v1258_v24, %v1255_v7  ;;  %v1033_v52 = vmul.f32 %v6339_v31, %v1032_v59  ;;  %vm6761_vm12 = vcmp.lt.f32.partialorder %v1034_v19, 0.0004427343  ;;  %v1158_v2 = vadd.f32 1.0, %v1157_v3  ;;  %v6765_v54 = vpop.eup %5417  ;;  %5098 = vmatprep.subr.bf16.mxu0 %v5097_v48  ;;  %v9995_v7 = vld [vmem:[#allocation23_spill] sm:$0xff] }
 0x160   : > { %v1317_v12 = vmul.f32 0.01, %v1261_v14  ;;  %v1273_v33 = vmul.f32 0.6931472, %v5416_v38  ;;  %v1230_v34 = vadd.f32 1.0, %v1229_v13  ;;  %5425 = vlog2.f32 %v1172_v45 }
 0x161   : > { %v1036_v30 = vsel %vm6761_vm12, %v1033_v52, %v1030_v17  ;;  %v1105_v5 = vmul.f32 %v9979_v10, %v1104_v18  ;;  %vm6770_vm13 = vcmp.lt.f32.partialorder %v1106_v6, 0.0004427343  ;;  %v9992_v31 = vpack.c.bf16 %v6399_v55, %v6389_v43  ;;  %v5420_v19 = vpop.eup %5419 }
 0x162   : > { %v1244_v59 = vadd.f32 1.0, %v6602_v63  ;;  %v6781_v3 = vsel %vm901_vm7, %v6567_v1, %v1317_v12  ;;  %v1279_v13 = vsel %vm6734_vm8, %v1276_v11, %v1273_v33  ;;  %vm6785_vm14 = vcmp.lt.f32.partialorder %v1160_v16, 0.0004427343  ;;  %v9997_v12 = vld [vmem:[#allocation16_spill] sm:$0xff] }
 0x163   : > { %5100 = vmatpush1.bf16.msra.mxu0 %v9992_v31  ;;  %v1232_v6 = vand.u32 2147483647, %v6550_v62  ;;  %vm890_vm15 = vcmp.gt.f32.partialorder %v9995_v7, 20.0  ;;  %vm898_vm2 = vcmp.gt.f32.partialorder %v6382_v60, 20.0  ;;  %v5119_v43 = vpack.c.bf16 %v6781_v3, %v6721_v36  ;;  %v5829_v36 = vld [vmem:[%s6035_s23] sm:$0x77] }
 0x164   : > { %v1319_v55 = vmul.f32 0.01, %v1279_v13  ;;  %v1102_v44 = vmul.f32 0.6931472, %v5420_v19  ;;  %v1175_v1 = vmul.f32 -0.5, %v6540_v47  ;;  %v1159_v28 = vmul.f32 %v6520_v25, %v1158_v2  ;;  %v9998_v13 = vld [vmem:[#allocation24_spill] sm:$0xff] }
 0x165   : > { %v1292_v26 = vmul.f32 0.01, %v1036_v30  ;;  %v1231_v17 = vmul.f32 %v6550_v62, %v1230_v34  ;;  %5427 = vlog2.f32 %v1244_v59  ;;  %v5422_v18 = vpop.eup %5421  ;;  %v1247_v16 = vmul.f32 -0.5, %v6602_v63  ;;  %v10037_v3 = vld [vmem:[#allocation8_spill] sm:$0xff] }
 0x166   : > { %v6800_v11 = vsel %vm903_vm9, %v6573_v42, %v1319_v55  ;;  %v1108_v48 = vsel %vm6770_vm13, %v1105_v5, %v1102_v44  ;;  %v1046_v45 = vadd.f32 1.0, %v6614_v35  ;;  %v5424_v38 = vpop.eup %5423  ;;  %v1156_v62 = vmul.f32 0.6931472, %v5422_v18  ;;  %v9996_v42 = vld [vmem:[#allocation12_spill] sm:$0xff] }
 0x167   : > { %v5127_v25 = vpack.c.bf16 %v6800_v11, %v6744_v58  ;;  %v1300_v14 = vmul.f32 0.01, %v1108_v48  ;;  %vm1233_vm3 = vcmp.lt.f32.partialorder %v1232_v6, 0.0004427343  ;;  %v1228_v52 = vmul.f32 0.6931472, %v5424_v38 }
 0x168   : > { %v1176_v39 = vadd.f32 1.0, %v1175_v1  ;;  %v1178_v53 = vand.u32 2147483647, %v6540_v47  ;;  %5429 = vlog2.f32 %v1046_v45  ;;  %v1324_v2 = vsel %vm876_vm10, %v9996_v42, %v1292_v26  ;;  %v10018_v42 = vld [vmem:[#allocation29_spill] sm:$0xff]  ;;  %v5830_v58 = vld [vmem:[%s6035_s23 + $0x8] sm:$0x77] }
 0x169   : > { %v1332_v33 = vsel %vm884_vm11, %v9997_v12, %v1300_v14  ;;  %v1162_v34 = vsel %vm6785_vm14, %v1159_v28, %v1156_v62  ;;  %v1118_v30 = vadd.f32 1.0, %v6660_v0  ;;  %v1234_v24 = vsel %vm1233_vm3, %v1231_v17, %v1228_v52  ;;  %v10002_v28 = vld [vmem:[#allocation19_spill] sm:$0xff]  ;;  %v10039_v11 = vld [vmem:[#allocation10_spill] sm:$0xff] }
 0x16a   : > { %v5105_v5 = vpack.c.bf16 %v1332_v33, %v1324_v2  ;;  %v1306_v31 = vmul.f32 0.01, %v1162_v34  ;;  %v1248_v59 = vadd.f32 1.0, %v1247_v16  ;;  %v5426_v19 = vpop.eup %5425  ;;  %vm892_vm4 = vcmp.gt.f32.partialorder %v9998_v13, 20.0  ;;  %v6880_v13 = vld [vmem:[%s9752_s3 + $0x8] sm:$0xff] }
 0x16b   : > { %v1314_v6 = vmul.f32 0.01, %v1234_v24  ;;  %v1049_v49 = vmul.f32 -0.5, %v6614_v35  ;;  %5431 = vlog2.f32 %v1118_v30  ;;  %v1121_v55 = vmul.f32 -0.5, %v6660_v0  ;;  %v10006_v24 = vld [vmem:[#allocation20_spill] sm:$0xff] }
 0x16c   : > { %vm900_vm5 = vcmp.gt.f32.partialorder %v6427_v57, 20.0  ;;  %5106 = vmatprep.subr.bf16.mxu1 %v5105_v5  ;;  %v1174_v8 = vmul.f32 0.6931472, %v5426_v19  ;;  %v1177_v10 = vmul.f32 %v6540_v47, %v1176_v39  ;;  %vm6823_vm6 = vcmp.lt.f32.partialorder %v1178_v53, 0.0004427343  ;;  %v10027_v57 = vld [vmem:[#allocation30_spill] sm:$0xff] }
 0x16d   : > { %v1064_v1 = vadd.f32 1.0, %v6629_v15  ;;  %v10001_v26 = vpack.c.bf16 %v6412_v40, %v6394_v46  ;;  %v1338_v17 = vsel %vm890_vm15, %v10002_v28, %v1306_v31  ;;  %v1346_v18 = vsel %vm898_vm2, %v6360_v21, %v1314_v6 }
 0x16e   : > { %v1250_v47 = vand.u32 2147483647, %v6602_v63  ;;  %v1052_v48 = vand.u32 2147483647, %v6614_v35  ;;  %v5101_v16 = vpack.c.bf16 %v1346_v18, %v1338_v17  ;;  %v1180_v45 = vsel %vm6823_vm6, %v1177_v10, %v1174_v8 }
 0x16f   : > { %5108 = vmatpush1.bf16.msra.mxu1 %v10001_v26  ;;  %v1249_v38 = vmul.f32 %v6602_v63, %v1248_v59  ;;  %5433 = vlog2.f32 %v1064_v1  ;;  %v5428_v46 = vpop.eup %5427  ;;  %v1050_v40 = vadd.f32 1.0, %v1049_v49  ;;  %v1122_v14 = vadd.f32 1.0, %v1121_v55  ;;  %v6852_v63 = vld [vmem:[%s9752_s3] sm:$0xff] }
 0x170   : > { %v1124_v7 = vand.u32 2147483647, %v6660_v0  ;;  %v1136_v62 = vadd.f32 1.0, %v6668_v22  ;;  %5102 = vmatprep.subr.bf16.mxu0 %v5101_v16  ;;  %v1246_v21 = vmul.f32 0.6931472, %v5428_v46  ;;  %v1067_v52 = vmul.f32 -0.5, %v6629_v15 }
 0x171   : > { %v1308_v60 = vmul.f32 0.01, %v1180_v45  ;;  %v1190_v39 = vadd.f32 1.0, %v6691_v9  ;;  %vm1251_vm7 = vcmp.lt.f32.partialorder %v1250_v47, 0.0004427343  ;;  %v10003_v53 = vpack.c.bf16 %v6525_v50, %v6482_v32  ;;  %v10012_v45 = vld [vmem:[#allocation32_spill] sm:$0xff] }
 0x172   : > { %vm1381_vm8 = vcmask 261120   ;;  %vm6854_vm9 = vcmp.lt.f32.partialorder %v1052_v48, 0.0004427343  ;;  %5435 = vlog2.f32 %v1136_v62  ;;  %v5430_v2 = vpop.eup %5429  ;;  %vm878_vm10 = vcmp.gt.f32.partialorder %v6472_v61, 20.0  ;;  %v6930_v61 = vld [vmem:[%s9752_s3 + $0x18] sm:$0x1f] }
 0x173   : > { %5104 = vmatpush1.bf16.msra.mxu0 %v10003_v53  ;;  %v1252_v12 = vsel %vm1251_vm7, %v1249_v38, %v1246_v21  ;;  %v1070_v33 = vand.u32 2147483647, %v6629_v15  ;;  %v1139_v32 = vmul.f32 -0.5, %v6668_v22  ;;  %5437 = vlog2.f32 %v1190_v39  ;;  %v10013_v38 = vld [vmem:[#allocation31_spill] sm:$0xff]  ;;  %v10017_v39 = vld [vmem:[#allocation26_spill] sm:$0xff] }
 0x174   : > { %v1316_v50 = vmul.f32 0.01, %v1252_v12  ;;  %v1048_v34 = vmul.f32 0.6931472, %v5430_v2  ;;  %v1051_v30 = vmul.f32 %v6614_v35, %v1050_v40  ;;  %v1262_v5 = vadd.f32 1.0, %v6752_v41 }
 0x175   : > { %v1340_v31 = vsel %vm892_vm4, %v10006_v24, %v1308_v60  ;;  %v1123_v59 = vmul.f32 %v6660_v0, %v1122_v14  ;;  %vm6869_vm11 = vcmp.lt.f32.partialorder %v1124_v7, 0.0004427343  ;;  %v1068_v6 = vadd.f32 1.0, %v1067_v52  ;;  %v5432_v49 = vpop.eup %5431  ;;  %v6906_v7 = vld [vmem:[%s9752_s3 + $0x10] sm:$0xff] }
 0x176   : > { %5000 = vmatmul.mubr.msk.f32.vlgmr.msra.gmra.mrb[16].mxu0 %vm1381_vm8, %v6852_v63  ;;  %v1348_v35 = vsel %vm900_vm5, %v6403_v23, %v1316_v50  ;;  %v10009_v55 = vmov 0.0   ;;  %v1054_v0 = vsel %vm6854_vm9, %v1051_v30, %v1048_v34  ;;  %v1193_v8 = vmul.f32 -0.5, %v6691_v9 }
 0x177   : > { %1464 = vmatprep.mubr.f32.mxu0 %v10009_v55  ;;  %5439 = vlog2.f32 %v1262_v5  ;;  %v5109_v10 = vpack.c.bf16 %v1348_v35, %v1340_v31  ;;  %v1120_v44 = vmul.f32 0.6931472, %v5432_v49  ;;  %v1140_v1 = vadd.f32 1.0, %v1139_v32  ;;  %v10022_v35 = vld [vmem:[#allocation33_spill] sm:$0xff] }
 0x178   : > { %v1142_v26 = vand.u32 2147483647, %v6668_v22  ;;  %vm886_vm12 = vcmp.gt.f32.partialorder %v6538_v37, 20.0  ;;  %v1294_v23 = vmul.f32 0.01, %v1054_v0  ;;  %v1208_v28 = vadd.f32 1.0, %v6706_v27 }
 0x179   : > { %vm6887_vm13 = vcmp.lt.f32.partialorder %v1070_v33, 0.0004427343  ;;  %v5434_v17 = vpop.eup %5433  ;;  %5110 = vmatprep.subr.bf16.mxu1 %v5109_v10  ;;  %v1126_v18 = vsel %vm6869_vm11, %v1123_v59, %v1120_v44  ;;  %v1069_v47 = vmul.f32 %v6629_v15, %v1068_v6  ;;  %v1265_v48 = vmul.f32 -0.5, %v6752_v41  ;;  %v10019_v59 = vld [vmem:[#allocation28_spill] sm:$0xff] }
 0x17a   : > { %5001 = vmatmul.mubr.msk.f32.gmra.mrb[18].mxu0 %vm1381_vm8, %v6880_v13  ;;  %v1280_v16 = vadd.f32 1.0, %v6765_v54  ;;  %v10014_v46 = vpack.c.bf16 %v10012_v45, %v10013_v38  ;;  %v1302_v40 = vmul.f32 0.01, %v1126_v18  ;;  %v1066_v14 = vmul.f32 0.6931472, %v5434_v17  ;;  %v10028_v45 = vld [vmem:[#allocation36_spill] sm:$0xff] }
 0x17b   : > { %1470 = vmatprep.mubr.f32.mxu0 %v10009_v55  ;;  %v1194_v62 = vadd.f32 1.0, %v1193_v8  ;;  %5441 = vlog2.f32 %v1208_v28  ;;  %v1141_v15 = vmul.f32 %v6668_v22, %v1140_v1  ;;  %vm6909_vm14 = vcmp.lt.f32.partialorder %v1142_v26, 0.0004427343 }
 0x17c   : > { %5112 = vmatpush1.bf16.msra.mxu1 %v10014_v46  ;;  %v1196_v60 = vand.u32 2147483647, %v6691_v9  ;;  %5443 = vlog2.f32 %v1280_v16  ;;  %v5436_v52 = vpop.eup %5435  ;;  %v1326_v53 = vsel %vm878_vm10, %v10017_v39, %v1294_v23  ;;  %v1334_v2 = vsel %vm886_vm12, %v10018_v42, %v1302_v40 }
 0x17d   : > { %v1072_v12 = vsel %vm6887_vm13, %v1069_v47, %v1066_v14  ;;  %v1268_v22 = vand.u32 2147483647, %v6752_v41  ;;  %v5438_v33 = vpop.eup %5437  ;;  %v5113_v32 = vpack.c.bf16 %v1334_v2, %v1326_v53  ;;  %v1138_v50 = vmul.f32 0.6931472, %v5436_v52 }
 0x17e   : > { %5002 = vmatmul.mubr.msk.f32.gmra.mrb[20].mxu0 %vm1381_vm8, %v6906_v7  ;;  %v1266_v37 = vadd.f32 1.0, %v1265_v48  ;;  %v1211_v34 = vmul.f32 -0.5, %v6706_v27  ;;  %v1296_v30 = vmul.f32 0.01, %v1072_v12  ;;  %v1192_v5 = vmul.f32 0.6931472, %v5438_v33 }
 0x17f   : > { %5004 = vmatmul.mubr.msk.f32.vlgmr.msra.gmra.mrb[16].mxu1 %vm1381_vm8, %v6852_v63  ;;  %1476 = vmatprep.mubr.f32.mxu0 %v10009_v55  ;;  %v1195_v24 = vmul.f32 %v6691_v9, %v1194_v62  ;;  %v1283_v31 = vmul.f32 -0.5, %v6765_v54  ;;  %vm880_vm15 = vcmp.gt.f32.partialorder %v10019_v59, 20.0  ;;  %v1144_v19 = vsel %vm6909_vm14, %v1141_v15, %v1138_v50  ;;  %v10030_v15 = vld [vmem:[#allocation34_spill] sm:$0xff]  ;;  %v10036_v50 = vld [vmem:[#allocation7_spill] sm:$0xff] }
 0x180   : > { %1553 = vmatprep.mubr.f32.mxu1 %v10009_v55  ;;  %5114 = vmatprep.subr.bf16.mxu0 %v5113_v32  ;;  %vm6940_vm2 = vcmp.lt.f32.partialorder %v1196_v60, 0.0004427343  ;;  %vm888_vm3 = vcmp.gt.f32.partialorder %v10022_v35, 20.0  ;;  %v1304_v0 = vmul.f32 0.01, %v1144_v19  ;;  %v10023_v8 = vpack.c.bf16 %v6673_v20, %v6645_v4  ;;  %v10026_v20 = vld [vmem:[#allocation27_spill] sm:$0xff]  ;;  %v7082_v19 = vpop.permute.xlu1 %1368 }
 0x181   : > { %v5440_v49 = vpop.eup %5439  ;;  %v1198_v9 = vsel %vm6940_vm2, %v1195_v24, %v1192_v5  ;;  %vm6950_vm4 = vcmp.lt.f32.partialorder %v1268_v22, 0.0004427343  ;;  %v1267_v1 = vmul.f32 %v6752_v41, %v1266_v37  ;;  %v1212_v26 = vadd.f32 1.0, %v1211_v34  ;;  %v10031_v60 = vld [vmem:[#allocation21_spill] sm:$0xff]  ;;  %v10035_v33 = vld [vmem:[#allocation22_spill] sm:$0xff] }
 0x182   : > { %5116 = vmatpush1.bf16.msra.mxu0 %v10023_v8  ;;  %v1264_v44 = vmul.f32 0.6931472, %v5440_v49  ;;  %v1214_v4 = vand.u32 2147483647, %v6706_v27  ;;  %v1328_v23 = vsel %vm880_vm15, %v10026_v20, %v1296_v30  ;;  %v1336_v28 = vsel %vm888_vm3, %v10027_v57, %v1304_v0  ;;  %v2269_v34 = vld [vmem:[%s9755_s6 + $0x18] sm:$0xff]  ;;  %v7070_v30 = vpop.permute.xlu0 %1363 }
 0x183   : > { %5005 = vmatmul.mubr.msk.f32.gmra.mrb[18].mxu1 %vm1381_vm8, %v6880_v13  ;;  %5003 = vmatmul.mubr.msk.f32.gmra.mrb[22].mxu0 %vm1381_vm8, %v6930_v61  ;;  %v1310_v17 = vmul.f32 0.01, %v1198_v9  ;;  %v1284_v18 = vadd.f32 1.0, %v1283_v31  ;;  %v5121_v47 = vpack.c.bf16 %v1336_v28, %v1328_v23  ;;  %v1286_v41 = vand.u32 2147483647, %v6765_v54 }
 0x184   : > { %1559 = vmatprep.mubr.f32.mxu1 %v10009_v55  ;;  %1636 = vmatprep.mubr.f32.mxu0 %v10009_v55  ;;  %v1270_v48 = vsel %vm6950_vm4, %v1267_v1, %v1264_v44  ;;  %vm894_vm5 = vcmp.gt.f32.partialorder %v10028_v45, 20.0  ;;  %vm902_vm6 = vcmp.gt.f32.partialorder %v6633_v56, 20.0  ;;  %v1213_v14 = vmul.f32 %v6706_v27, %v1212_v26  ;;  %v10033_v27 = vld [vmem:[#allocation38_spill] sm:$0xff] }
 0x185   : > { %v5442_v16 = vpop.eup %5441  ;;  %v1318_v38 = vmul.f32 0.01, %v1270_v48  ;;  %5122 = vmatprep.subr.bf16.mxu1 %v5121_v47  ;;  %vm1215_vm7 = vcmp.lt.f32.partialorder %v1214_v4, 0.0004427343  ;;  %v10029_v62 = vpack.c.bf16 %v6699_v51, %v6650_v29  ;;  %v1342_v21 = vsel %vm894_vm5, %v10030_v15, %v1310_v17  ;;  %v10032_v51 = vld [vmem:[#allocation37_spill] sm:$0xff] }
 0x186   : > { %v5444_v46 = vpop.eup %5443  ;;  %v1210_v40 = vmul.f32 0.6931472, %v5442_v16  ;;  %v1285_v56 = vmul.f32 %v6765_v54, %v1284_v18  ;;  %vm1287_vm9 = vcmp.lt.f32.partialorder %v1286_v41, 0.0004427343  ;;  %vm896_vm10 = vcmp.gt.f32.partialorder %v10032_v51, 20.0  ;;  %v10034_v54 = vld [vmem:[#allocation35_spill] sm:$0xff]  ;;  %v7099_v23 = vpop.permute.xlu0 %1373 }
 0x187   : > { %5006 = vmatmul.mubr.msk.f32.gmra.mrb[20].mxu1 %vm1381_vm8, %v6906_v7  ;;  %v1350_v52 = vsel %vm902_vm6, %v10031_v60, %v1318_v38  ;;  %v1282_v39 = vmul.f32 0.6931472, %v5444_v46  ;;  %vm904_vm11 = vcmp.gt.f32.partialorder %v10033_v27, 20.0  ;;  %v7125_v60 = vpop.permute.xlu1 %1378 }
 0x188   : > { %5124 = vmatpush1.bf16.msra.mxu1 %v10029_v62  ;;  %1565 = vmatprep.mubr.f32.mxu1 %v10009_v55  ;;  %v5117_v53 = vpack.c.bf16 %v1350_v52, %v1342_v21  ;;  %v1216_v42 = vsel %vm1215_vm7, %v1213_v14, %v1210_v40 }
 0x189   : > { %v1288_v2 = vsel %vm1287_vm9, %v1285_v56, %v1282_v39  ;;  %v1312_v12 = vmul.f32 0.01, %v1216_v42 }
 0x18a   : > { %5118 = vmatprep.subr.bf16.mxu0 %v5117_v53  ;;  %v1320_v29 = vmul.f32 0.01, %v1288_v2 }
 0x18b   : > { %5007 = vmatmul.mubr.msk.f32.gmra.mrb[22].mxu1 %vm1381_vm8, %v6930_v61  ;;  %5120 = vmatpush1.bf16.msra.mxu0 %v5119_v43  ;;  %v1344_v22 = vsel %vm896_vm10, %v10034_v54, %v1312_v12  ;;  %v10038_v43 = vld [vmem:[#allocation9_spill] sm:$0xff] }
 0x18c   : > { %1725 = vmatprep.mubr.f32.mxu1 %v10009_v55  ;;  %v1352_v32 = vsel %vm904_vm11, %v10035_v33, %v1320_v29  ;;  %5016 = vmatprep.subr.msk.mxu0 %vm468_vm0, %v10036_v50 }
 0x18d   : > { %v5125_v37 = vpack.c.bf16 %v1352_v32, %v1344_v22 }
 0x18e   : > { %5008 = vmatmul.mubr.msk.f32.vlgmr.msra.gmra.mrb[24].mxu0 %vm1381_vm8, %v6852_v63 }
 0x18f   : > { %5126 = vmatprep.subr.bf16.mxu1 %v5125_v37  ;;  %1642 = vmatprep.mubr.f32.mxu0 %v10009_v55 }
 0x190   : > { %5128 = vmatpush1.bf16.msra.mxu1 %v5127_v25  ;;  %5017 = vmatpush1.msk.msra.mxu0 %vm468_vm0, %v5829_v36  ;;  %v2266_v25 = vld [vmem:[%s9755_s6] sm:$0xff] }
 0x191   : > { %5022 = vmatprep.subr.msk.mxu1 %vm468_vm0, %v10037_v3  ;;  %5028 = vmatprep.subr.msk.mxu0 %vm468_vm0, %v10038_v43 }
 0x192   : > { %5009 = vmatmul.mubr.msk.f32.gmra.mrb[26].mxu0 %vm1381_vm8, %v6880_v13 }
 0x193   : > { %5012 = vmatmul.mubr.msk.f32.vlgmr.msra.gmra.mrb[24].mxu1 %vm1381_vm8, %v6852_v63  ;;  %1648 = vmatprep.mubr.f32.mxu0 %v10009_v55  ;;  %v5831_v63 = vld [vmem:[%s6035_s23 + $0x10] sm:$0x77] }
 0x194   : > { %1731 = vmatprep.mubr.f32.mxu1 %v10009_v55  ;;  %5023 = vmatpush1.msk.msra.mxu1 %vm468_vm0, %v5830_v58 }
 0x195   : > { %5034 = vmatprep.subr.msk.mxu1 %vm468_vm0, %v10039_v11 }
 0x196   : > { %5010 = vmatmul.mubr.msk.f32.gmra.mrb[28].mxu0 %vm1381_vm8, %v6906_v7 }
 0x197   : > { %5013 = vmatmul.mubr.msk.f32.gmra.mrb[26].mxu1 %vm1381_vm8, %v6880_v13  ;;  %1654 = vmatprep.mubr.f32.mxu0 %v10009_v55  ;;  %v5832_v13 = vld [vmem:[%s6035_s23 + $0x18] sm:$0x77]  ;;  %s5900_s23 = smov [#allocation2]  }
 0x198   : > { %1737 = vmatprep.mubr.f32.mxu1 %v10009_v55  ;;  %s5837_s30 = sshll.u32 %s5900_s23, 4  ;;  %s5838_s30 = int_to_ptr.vmem [resolvable:$false] %s5837_s30 }
 0x199   : > { %s5839_s20 = scalar_lea.vmem %s5838_s30, 6144  ;;  %p5840_p0 = scmp.lt.s32.totalorder %s9701_s29, %s5838_s30 }
 0x19a   : > { %5011 = vmatmul.mubr.msk.f32.gmra.mrb[30].mxu0 %vm1381_vm8, %v6930_v61  ;;  %p5841_p1 = scmp.lt.s32.totalorder %s5839_s20, %s5833_s18 }
 0x19b   : > { %5014 = vmatmul.mubr.msk.f32.gmra.mrb[28].mxu1 %vm1381_vm8, %v6906_v7  ;;  %2350 = vmatprep.mubr.f32.mxu0 %v10009_v55  ;;  %v2267_v7 = vld [vmem:[%s9755_s6 + $0x8] sm:$0xff] }
 0x19c   : > { %1743 = vmatprep.mubr.f32.mxu1 %v10009_v55  ;;  %p5842_p2 = por %p5841_p1, %p5840_p0 }
 0x19e   : > { %5018 = vmatmul.mubr.msk.f32.vlgmr.msra.gmra.mrb[32].mxu0 %vm455_vm1, %v2266_v25  ;;  %p5843_p3 = pnand %p5842_p2, %p5836_p13 }
 0x19f   : > { %5015 = vmatmul.mubr.msk.f32.gmra.mrb[30].mxu1 %vm1381_vm8, %v6930_v61  ;;  %2356 = vmatprep.mubr.f32.mxu0 %v10009_v55  ;;  %v2268_v61 = vld [vmem:[%s9755_s6 + $0x10] sm:$0xff] }
 0x1a0   : > { %2439 = vmatprep.mubr.f32.mxu1 %v10009_v55  ;;  %5029 = vmatpush1.msk.msra.mxu0 %vm468_vm0, %v5831_v63 }
 0x1a2   : > { %5019 = vmatmul.mubr.msk.f32.gmra.mrb[34].mxu0 %vm455_vm1, %v2267_v7 }
 0x1a3   : > { %5024 = vmatmul.mubr.msk.f32.vlgmr.msra.gmra.mrb[32].mxu1 %vm455_vm1, %v2266_v25  ;;  %2362 = vmatprep.mubr.f32.mxu0 %v10009_v55 }
 0x1a4   : > { %2445 = vmatprep.mubr.f32.mxu1 %v10009_v55  ;;  %5035 = vmatpush1.msk.msra.mxu1 %vm468_vm0, %v5832_v13 }
 0x1a6   : > { %5020 = vmatmul.mubr.msk.f32.gmra.mrb[36].mxu0 %vm455_vm1, %v2268_v61 }
 0x1a7   : > { %5025 = vmatmul.mubr.msk.f32.gmra.mrb[34].mxu1 %vm455_vm1, %v2267_v7  ;;  %2368 = vmatprep.mubr.f32.mxu0 %v10009_v55 }
 0x1a8   : > { %2451 = vmatprep.mubr.f32.mxu1 %v10009_v55 }
 0x1aa   : > { %5021 = vmatmul.mubr.msk.f32.gmra.mrb[38].mxu0 %vm455_vm1, %v2269_v34 }
 0x1ab   : > { %5026 = vmatmul.mubr.msk.f32.gmra.mrb[36].mxu1 %vm455_vm1, %v2268_v61  ;;  %2528 = vmatprep.mubr.f32.mxu0 %v10009_v55 }
 0x1ac   : > { %2457 = vmatprep.mubr.f32.mxu1 %v10009_v55 }
 0x1ae   : > { %5030 = vmatmul.mubr.msk.f32.vlgmr.msra.gmra.mrb[40].mxu0 %vm455_vm1, %v2266_v25 }
 0x1af   : > { %5027 = vmatmul.mubr.msk.f32.gmra.mrb[38].mxu1 %vm455_vm1, %v2269_v34  ;;  %2534 = vmatprep.mubr.f32.mxu0 %v10009_v55 }
 0x1b0   : > { %2617 = vmatprep.mubr.f32.mxu1 %v10009_v55 }
 0x1b2   : > { %5031 = vmatmul.mubr.msk.f32.gmra.mrb[42].mxu0 %vm455_vm1, %v2267_v7 }
 0x1b3   : > { %5036 = vmatmul.mubr.msk.f32.vlgmr.msra.gmra.mrb[40].mxu1 %vm455_vm1, %v2266_v25  ;;  %2540 = vmatprep.mubr.f32.mxu0 %v10009_v55 }
 0x1b4   : > { %2623 = vmatprep.mubr.f32.mxu1 %v10009_v55 }
 0x1b6   : > { %5032 = vmatmul.mubr.msk.f32.gmra.mrb[44].mxu0 %vm455_vm1, %v2268_v61 }
 0x1b7   : > { %5037 = vmatmul.mubr.msk.f32.gmra.mrb[42].mxu1 %vm455_vm1, %v2267_v7  ;;  %2546 = vmatprep.mubr.f32.mxu0 %v10009_v55 }
 0x1b8   : > { %2629 = vmatprep.mubr.f32.mxu1 %v10009_v55 }
 0x1ba   : > { %5033 = vmatmul.mubr.msk.f32.gmra.mrb[46].mxu0 %vm455_vm1, %v2269_v34 }
 0x1bb   : > { %5038 = vmatmul.mubr.msk.f32.gmra.mrb[44].mxu1 %vm455_vm1, %v2268_v61  ;;  %2744 = vmatprep.mubr.f32.mxu0 %v10009_v55 }
 0x1bc   : > { %2635 = vmatprep.mubr.f32.mxu1 %v10009_v55 }
 0x1bf   : > { %5039 = vmatmul.mubr.msk.f32.gmra.mrb[46].mxu1 %vm455_vm1, %v2269_v34 }
 0x1c0   : > { %2833 = vmatprep.mubr.f32.mxu1 %v10009_v55 }
 0x249   : > { %v1460_v5 = vpop.f32.mrb[16].mxu0 }
 0x24a   : > { %v7075_v24 = vadd.f32 %v1460_v5, %v7070_v30  ;;  %v1462_v31 = vpop.f32.mrb[17].mxu0 }
 0x24b   : > { %v7144_v54 = vadd.f32 %v1462_v31, %v7070_v30 }
 0x24c   : > { %v7080_v59 = vmul.f32 100.0, %v7075_v24 }
 0x24d   : > { %v1466_v6 = vpop.f32.mrb[18].mxu0  ;;  %10040 = vst [vmem:[#allocation13_spill] sm:$0xff] %v7144_v54  ;;  %v7168_v13 = vmul.f32 100.0, %v7144_v54 }
 0x24e   : > { %v1814_v49 = vmin.f32 %v7080_v59, 20.0  ;;  %v7088_v35 = vadd.f32 %v1466_v6, %v7082_v19  ;;  %v1468_v0 = vpop.f32.mrb[19].mxu0  ;;  %vm1782_vm0 = vcmp.gt.f32.partialorder %v7080_v59, 20.0 }
 0x24f   : > { %10041 = vst [vmem:[#allocation17_spill] sm:$0xff] %v7168_v13  ;;  %v7171_v7 = vadd.f32 %v1468_v0, %v7082_v19 }
 0x250   : > { %v1846_v8 = vmul.f32 1.442695, %v1814_v49  ;;  %v7093_v9 = vmul.f32 100.0, %v7088_v35 }
 0x251   : > { %v1472_v44 = vpop.f32.mrb[20].mxu0  ;;  %10042 = vst [vmem:[#allocation25_spill] sm:$0xff] %v7171_v7 }
 0x252   : > { %v1549_v10 = vpop.f32.mrb[16].mxu1  ;;  %5445 = vpow2.f32 %v1846_v8  ;;  %v1822_v4 = vmin.f32 %v7093_v9, 20.0  ;;  %v1474_v20 = vpop.f32.mrb[21].mxu0  ;;  %v7105_v17 = vadd.f32 %v1472_v44, %v7099_v23  ;;  %vm1790_vm13 = vcmp.gt.f32.partialorder %v7093_v9, 20.0 }
 0x253   : > { %v7096_v1 = vadd.f32 %v1549_v10, %v7070_v30  ;;  %v1551_v26 = vpop.f32.mrb[17].mxu1  ;;  %v7122_v62 = vadd.f32 %v1474_v20, %v7099_v23 }
 0x254   : > { %v1862_v28 = vmul.f32 1.442695, %v1822_v4  ;;  %v7119_v40 = vmul.f32 100.0, %v7105_v17  ;;  %v7177_v31 = vadd.f32 %v1551_v26, %v7070_v30 }
 0x255   : > { %v7102_v57 = vmul.f32 100.0, %v7096_v1  ;;  %v7138_v12 = vmul.f32 100.0, %v7122_v62 }
 0x256   : > { %v1555_v18 = vpop.f32.mrb[18].mxu1  ;;  %v1478_v47 = vpop.f32.mrb[22].mxu0  ;;  %5447 = vpow2.f32 %v1862_v28  ;;  %v1830_v52 = vmin.f32 %v7119_v40, 20.0  ;;  %10043 = vst [vmem:[#allocation11_spill] sm:$0xff] %v7177_v31  ;;  %vm1798_vm4 = vcmp.gt.f32.partialorder %v7119_v40, 20.0 }
 0x257   : > { %v1816_v48 = vmin.f32 %v7102_v57, 20.0  ;;  %v7109_v41 = vadd.f32 %v1555_v18, %v7082_v19  ;;  %v7111_v16 = vpop.f32.mrb[19].mxu1  ;;  %v7113_v45 = vpop.f32.mrb[23].mxu0  ;;  %v7134_v42 = vadd.f32 %v1478_v47, %v7125_v60  ;;  %v1831_v43 = vmin.f32 %v7138_v12, 20.0 }
 0x258   : > { %v1878_v29 = vmul.f32 1.442695, %v1830_v52  ;;  %v1815_v18 = vmin.f32 %v7168_v13, 20.0  ;;  %v7195_v47 = vmul.f32 100.0, %v7171_v7  ;;  %vm1784_vm15 = vcmp.gt.f32.partialorder %v7102_v57, 20.0 }
 0x259   : > { %v1850_v38 = vmul.f32 1.442695, %v1816_v48  ;;  %v7116_v46 = vmul.f32 100.0, %v7109_v41  ;;  %v7156_v36 = vmul.f32 100.0, %v7134_v42  ;;  %v1880_v10 = vmul.f32 1.442695, %v1831_v43 }
 0x25a   : > { %v1561_v14 = vpop.f32.mrb[20].mxu1  ;;  %10044 = vst [vmem:[#allocation14_spill] sm:$0xff] %v7195_v47 }
 0x25b   : > { %5449 = vpow2.f32 %v1850_v38  ;;  %v1824_v15 = vmin.f32 %v7116_v46, 20.0  ;;  %v1563_v21 = vpop.f32.mrb[21].mxu1  ;;  %v7131_v53 = vadd.f32 %v1561_v14, %v7099_v23  ;;  %v1838_v61 = vmin.f32 %v7156_v36, 20.0 }
 0x25c   : > { %v7128_v39 = vpop.eup %5445  ;;  %v7147_v22 = vadd.f32 %v1563_v21, %v7099_v23  ;;  %v7205_v21 = vmul.f32 100.0, %v7177_v31  ;;  %vm1792_vm2 = vcmp.gt.f32.partialorder %v7116_v46, 20.0  ;;  %vm1806_vm6 = vcmp.gt.f32.partialorder %v7156_v36, 20.0 }
 0x25d   : > { %v1866_v56 = vmul.f32 1.442695, %v1824_v15  ;;  %v1910_v2 = vadd.f32 1.0, %v7128_v39  ;;  %v7141_v51 = vmul.f32 100.0, %v7131_v53  ;;  %v1913_v50 = vmul.f32 -0.5, %v7128_v39 }
 0x25e   : > { %v1567_v27 = vpop.f32.mrb[22].mxu1  ;;  %v7163_v25 = vmul.f32 100.0, %v7147_v22  ;;  %v1894_v4 = vmul.f32 1.442695, %v1838_v61  ;;  %v1916_v26 = vand.u32 2147483647, %v7128_v39 }
 0x25f   : > { %5451 = vpow2.f32 %v1866_v56  ;;  %v7149_v33 = vpop.f32.mrb[23].mxu1  ;;  %v1832_v37 = vmin.f32 %v7141_v51, 20.0  ;;  %v1914_v5 = vadd.f32 1.0, %v1913_v50  ;;  %v7180_v6 = vadd.f32 %v1567_v27, %v7125_v60  ;;  %10045 = vst [vmem:[#allocation15_spill] sm:$0xff] %v7205_v21 }
 0x260   : > { %5453 = vlog2.f32 %v1910_v2  ;;  %v7151_v32 = vpop.eup %5447  ;;  %v1833_v0 = vmin.f32 %v7163_v25, 20.0  ;;  %vm7216_vm1 = vcmp.lt.f32.partialorder %v1916_v26, 0.0004427343  ;;  %v1817_v26 = vmin.f32 %v7205_v21, 20.0 }
 0x261   : > { %v1982_v3 = vadd.f32 1.0, %v7151_v32  ;;  %v7160_v58 = vpop.f32.mrb[24].mxu0  ;;  %5455 = vpow2.f32 %v1878_v29  ;;  %v1882_v11 = vmul.f32 1.442695, %v1832_v37  ;;  %v1985_v8 = vmul.f32 -0.5, %v7151_v32 }
 0x262   : > { %v7165_v63 = vpop.f32.mrb[25].mxu0  ;;  %v7188_v20 = vmul.f32 100.0, %v7180_v6  ;;  %v1915_v15 = vmul.f32 %v7128_v39, %v1914_v5  ;;  %v1988_v52 = vand.u32 2147483647, %v7151_v32  ;;  %v1884_v50 = vmul.f32 1.442695, %v1833_v0 }
 0x263   : > { %5457 = vlog2.f32 %v1982_v3  ;;  %v1986_v29 = vadd.f32 1.0, %v1985_v8  ;;  %v1848_v5 = vmul.f32 1.442695, %v1815_v18  ;;  %v1852_v54 = vmul.f32 1.442695, %v1817_v26 }
 0x264   : > { %5459 = vpow2.f32 %v1882_v11  ;;  %v1840_v56 = vmin.f32 %v7188_v20, 20.0  ;;  %vm7236_vm12 = vcmp.lt.f32.partialorder %v1988_v52, 0.0004427343  ;;  %vm1800_vm11 = vcmp.gt.f32.partialorder %v7141_v51, 20.0 }
 0x265   : > { %v7174_v34 = vpop.eup %5449  ;;  %v7185_v44 = vpop.f32.mrb[26].mxu0 }
 0x266   : > { %v1928_v49 = vadd.f32 1.0, %v7174_v34  ;;  %v7190_v28 = vpop.f32.mrb[24].mxu1  ;;  %v7199_v38 = vpop.f32.mrb[27].mxu0  ;;  %v1931_v39 = vmul.f32 -0.5, %v7174_v34  ;;  %v1898_v43 = vmul.f32 1.442695, %v1840_v56 }
 0x267   : > { %v7197_v48 = vpop.f32.mrb[25].mxu1  ;;  %v1823_v56 = vmin.f32 %v7195_v47, 20.0 }
 0x268   : > { %5461 = vlog2.f32 %v1928_v49  ;;  %v7222_v49 = vadd.f32 %v7113_v45, %v7125_v60  ;;  %v1987_v45 = vmul.f32 %v7151_v32, %v1986_v29 }
 0x269   : > { %v7201_v14 = vpop.eup %5451  ;;  %5463 = vpow2.f32 %v1880_v10  ;;  %v7210_v37 = vpop.f32.mrb[28].mxu0 }
 0x26a   : > { %v5454_v2 = vpop.eup %5453  ;;  %v2000_v27 = vadd.f32 1.0, %v7201_v14  ;;  %5465 = vpow2.f32 %v1894_v4  ;;  %v7214_v11 = vpop.f32.mrb[26].mxu1  ;;  %v2003_v21 = vmul.f32 -0.5, %v7201_v14  ;;  %v7248_v32 = vmul.f32 100.0, %v7222_v49 }
 0x26b   : > { %v1912_v3 = vmul.f32 0.6931472, %v5454_v2  ;;  %v7224_v8 = vpop.f32.mrb[27].mxu1  ;;  %v7226_v10 = vpop.f32.mrb[29].mxu0  ;;  %v1934_v2 = vand.u32 2147483647, %v7174_v34 }
 0x26c   : > { %5467 = vlog2.f32 %v2000_v27  ;;  %v7228_v0 = vpop.eup %5455  ;;  %v2006_v13 = vand.u32 2147483647, %v7201_v14  ;;  %v2004_v27 = vadd.f32 1.0, %v2003_v21 }
 0x26d   : > { %v1918_v4 = vsel %vm7216_vm1, %v1915_v15, %v1912_v3  ;;  %5469 = vpow2.f32 %v1898_v43  ;;  %v5458_v18 = vpop.eup %5457  ;;  %v2054_v31 = vadd.f32 1.0, %v7228_v0  ;;  %v7241_v55 = vpop.f32.mrb[30].mxu0  ;;  %v1932_v15 = vadd.f32 1.0, %v1931_v39 }
 0x26e   : > { %v7243_v61 = vpop.eup %5459  ;;  %v1984_v3 = vmul.f32 0.6931472, %v5458_v18  ;;  %5471 = vpow2.f32 %v1884_v50  ;;  %v2198_v43 = vmul.f32 0.01, %v1918_v4  ;;  %v7250_v52 = vpop.f32.mrb[28].mxu1 }
 0x26f   : > { %5473 = vlog2.f32 %v2054_v31  ;;  %v2072_v7 = vadd.f32 1.0, %v7243_v61  ;;  %v7252_v29 = vpop.f32.mrb[31].mxu0  ;;  %v1864_v18 = vmul.f32 1.442695, %v1823_v56  ;;  %v7257_v47 = vpop.f32.mrb[29].mxu1  ;;  %v1933_v9 = vmul.f32 %v7174_v34, %v1932_v15 }
 0x270   : > { %10050 = vst [vmem:[#allocation18_spill] sm:$0xff] %v7252_v29  ;;  %v1990_v39 = vsel %vm7236_vm12, %v1987_v45, %v1984_v3  ;;  %vm7259_vm14 = vcmp.lt.f32.partialorder %v1934_v2, 0.0004427343  ;;  %v7266_v29 = vadd.f32 %v7111_v16, %v7082_v19  ;;  %v7274_v2 = vsel %vm1782_vm0, %v7075_v24, %v2198_v43 }
 0x271   : > { %v2206_v4 = vmul.f32 0.01, %v1990_v39  ;;  %5475 = vlog2.f32 %v2072_v7  ;;  %10054 = vst [vmem:[#allocation12_spill] sm:$0xff] %v7274_v2  ;;  %v1839_v3 = vmin.f32 %v7248_v32, 20.0  ;;  %v7282_v16 = vadd.f32 %v7149_v33, %v7125_v60 }
 0x272   : > { %v5462_v50 = vpop.eup %5461  ;;  %10053 = vst [vmem:[#allocation23_spill] sm:$0xff] %v7266_v29  ;;  %v7284_v39 = vpop.f32.mrb[30].mxu1  ;;  %5477 = vpow2.f32 %v1848_v5  ;;  %vm7296_vm3 = vcmp.lt.f32.partialorder %v2006_v13, 0.0004427343  ;;  %v7301_v21 = vmul.f32 100.0, %v7266_v29  ;;  %v2005_v5 = vmul.f32 %v7201_v14, %v2004_v27 }
 0x273   : > { %v1930_v26 = vmul.f32 0.6931472, %v5462_v50  ;;  %v7269_v56 = vpop.eup %5463  ;;  %v7277_v45 = vsel %vm1790_vm13, %v7088_v35, %v2206_v4  ;;  %v7293_v35 = vpop.f32.mrb[31].mxu1  ;;  %5479 = vpow2.f32 %v1864_v18  ;;  %v2057_v50 = vmul.f32 -0.5, %v7228_v0 }
 0x274   : > { %10055 = vst [vmem:[#allocation16_spill] sm:$0xff] %v7277_v45  ;;  %v7286_v34 = vpop.eup %5465  ;;  %5481 = vpow2.f32 %v1852_v54  ;;  %v7309_v13 = vmul.f32 100.0, %v7282_v16  ;;  %v2063_v24 = vadd.f32 1.0, %v7269_v56  ;;  %v2060_v29 = vand.u32 2147483647, %v7228_v0 }
 0x275   : > { %v1936_v59 = vsel %vm7259_vm14, %v1933_v9, %v1930_v26  ;;  %v2126_v31 = vadd.f32 1.0, %v7286_v34  ;;  %v1896_v26 = vmul.f32 1.442695, %v1839_v3  ;;  %v2075_v54 = vmul.f32 -0.5, %v7243_v61 }
 0x276   : > { %v5468_v7 = vpop.eup %5467  ;;  %v2200_v4 = vmul.f32 0.01, %v1936_v59  ;;  %v7321_v3 = vadd.f32 %v7160_v58, %v7070_v30  ;;  %v2058_v59 = vadd.f32 1.0, %v2057_v50  ;;  %v2129_v2 = vmul.f32 -0.5, %v7286_v34 }
 0x277   : > { %v7303_v15 = vpop.eup %5469  ;;  %v2002_v43 = vmul.f32 0.6931472, %v5468_v7  ;;  %5483 = vlog2.f32 %v2126_v31  ;;  %v7326_v33 = vadd.f32 %v7190_v28, %v7070_v30  ;;  %v1841_v57 = vmin.f32 %v7309_v13, 20.0 }
 0x278   : > { %v7311_v9 = vpop.eup %5471  ;;  %v2144_v14 = vadd.f32 1.0, %v7303_v15  ;;  %10058 = vst [vmem:[#allocation24_spill] sm:$0xff] %v7321_v3  ;;  %v7345_v46 = vmul.f32 100.0, %v7321_v3  ;;  %vm7357_vm5 = vcmp.lt.f32.partialorder %v2060_v29, 0.0004427343  ;;  %vm1808_vm0 = vcmp.gt.f32.partialorder %v7188_v20, 20.0 }
 0x279   : > { %v2008_v18 = vsel %vm7296_vm3, %v2005_v5, %v2002_v43  ;;  %v5474_v27 = vpop.eup %5473  ;;  %10059 = vst [vmem:[#allocation19_spill] sm:$0xff] %v7326_v33  ;;  %v7331_v43 = vsel %vm1784_vm15, %v7096_v1, %v2200_v4  ;;  %v2081_v58 = vadd.f32 1.0, %v7311_v9  ;;  %v2147_v1 = vmul.f32 -0.5, %v7303_v15 }
 0x27a   : > { %v2208_v7 = vmul.f32 0.01, %v2008_v18  ;;  %5485 = vlog2.f32 %v2144_v14  ;;  %10060 = vst [vmem:[#allocation20_spill] sm:$0xff] %v7331_v43  ;;  %v2056_v18 = vmul.f32 0.6931472, %v5474_v27  ;;  %v2076_v14 = vadd.f32 1.0, %v2075_v54 }
 0x27b   : > { %5487 = vpow2.f32 %v1896_v26  ;;  %v5476_v50 = vpop.eup %5475  ;;  %v2059_v4 = vmul.f32 %v7228_v0, %v2058_v59  ;;  %v2078_v26 = vand.u32 2147483647, %v7243_v61  ;;  %v7353_v27 = vmul.f32 100.0, %v7326_v33 }
 0x27c   : > { %v7336_v5 = vsel %vm1792_vm2, %v7109_v41, %v2208_v7  ;;  %5489 = vlog2.f32 %v2063_v24  ;;  %v7347_v41 = vpop.eup %5477  ;;  %v2130_v7 = vadd.f32 1.0, %v2129_v2  ;;  %v2074_v31 = vmul.f32 0.6931472, %v5476_v50 }
 0x27d   : > { %10061 = vst [vmem:[#allocation32_spill] sm:$0xff] %v7336_v5  ;;  %v7355_v24 = vpop.eup %5479  ;;  %5491 = vlog2.f32 %v2081_v58  ;;  %v1900_v28 = vmul.f32 1.442695, %v1841_v57  ;;  %v2062_v0 = vsel %vm7357_vm5, %v2059_v4, %v2056_v18  ;;  %v2132_v59 = vand.u32 2147483647, %v7286_v34 }
 0x27e   : > { %10062 = vst [vmem:[#allocation31_spill] sm:$0xff] %v7355_v24  ;;  %v2150_v2 = vand.u32 2147483647, %v7303_v15  ;;  %v1818_v43 = vmin.f32 %v7345_v46, 20.0  ;;  %v7367_v5 = vpop.eup %5481  ;;  %v2077_v29 = vmul.f32 %v7243_v61, %v2076_v14  ;;  %v2148_v45 = vadd.f32 1.0, %v2147_v1 }
 0x27f   : > { %10065 = vst [vmem:[#allocation26_spill] sm:$0xff] %v7367_v5  ;;  %5493 = vpow2.f32 %v1900_v28  ;;  %v1820_v58 = vmin.f32 %v7353_v27, 20.0  ;;  %vm7371_vm7 = vcmp.lt.f32.partialorder %v2078_v26, 0.0004427343  ;;  %v2066_v18 = vmul.f32 -0.5, %v7269_v56 }
 0x280   : > { %v2131_v4 = vmul.f32 %v7286_v34, %v2130_v7  ;;  %v1854_v54 = vmul.f32 1.442695, %v1818_v43  ;;  %v2214_v33 = vmul.f32 0.01, %v2062_v0  ;;  %v2080_v5 = vsel %vm7371_vm7, %v2077_v29, %v2074_v31 }
 0x281   : > { %v5484_v50 = vpop.eup %5483  ;;  %v1858_v61 = vmul.f32 1.442695, %v1820_v58  ;;  %v2069_v28 = vand.u32 2147483647, %v7269_v56  ;;  %vm2133_vm9 = vcmp.lt.f32.partialorder %v2132_v59, 0.0004427343  ;;  %v2149_v43 = vmul.f32 %v7303_v15, %v2148_v45 }
 0x282   : > { %v2128_v24 = vmul.f32 0.6931472, %v5484_v50  ;;  %vm7380_vm10 = vcmp.lt.f32.partialorder %v2150_v2, 0.0004427343  ;;  %5495 = vpow2.f32 %v1854_v54  ;;  %v2216_v31 = vmul.f32 0.01, %v2080_v5 }
 0x283   : > { %5497 = vpow2.f32 %v1858_v61  ;;  %v7390_v59 = vadd.f32 %v7185_v44, %v7082_v19  ;;  %v7395_v2 = vsel %vm1798_vm4, %v7105_v17, %v2214_v33  ;;  %v2067_v58 = vadd.f32 1.0, %v2066_v18 }
 0x284   : > { %v5486_v14 = vpop.eup %5485  ;;  %v2134_v3 = vsel %vm2133_vm9, %v2131_v4, %v2128_v24  ;;  %v2084_v24 = vmul.f32 -0.5, %v7311_v9  ;;  %v7407_v44 = vadd.f32 %v7165_v63, %v7070_v30  ;;  %v7414_v5 = vsel %vm1800_vm11, %v7131_v53, %v2216_v31 }
 0x285   : > { %v7384_v26 = vpop.eup %5487  ;;  %v2146_v34 = vmul.f32 0.6931472, %v5486_v14  ;;  %v2222_v0 = vmul.f32 0.01, %v2134_v3  ;;  %10071 = vst [vmem:[#allocation28_spill] sm:$0xff] %v7414_v5  ;;  %v7420_v36 = vmul.f32 100.0, %v7390_v59  ;;  %v7424_v63 = vadd.f32 %v7214_v11, %v7082_v19 }
 0x286   : > { %v5490_v7 = vpop.eup %5489  ;;  %v2135_v29 = vadd.f32 1.0, %v7384_v26  ;;  %10070 = vst [vmem:[#allocation29_spill] sm:$0xff] %v7407_v44  ;;  %v2068_v50 = vmul.f32 %v7269_v56, %v2067_v58  ;;  %v2138_v53 = vmul.f32 -0.5, %v7384_v26  ;;  %vm7436_vm1 = vcmp.lt.f32.partialorder %v2069_v28, 0.0004427343 }
 0x287   : > { %v2152_v45 = vsel %vm7380_vm10, %v2149_v43, %v2146_v34  ;;  %v7403_v15 = vsel %vm1806_vm6, %v7134_v42, %v2222_v0  ;;  %v5492_v40 = vpop.eup %5491  ;;  %v2065_v17 = vmul.f32 0.6931472, %v5490_v7  ;;  %v2085_v18 = vadd.f32 1.0, %v2084_v24 }
 0x288   : > { %v2224_v3 = vmul.f32 0.01, %v2152_v45  ;;  %5499 = vlog2.f32 %v2135_v29  ;;  %v7442_v4 = vmul.f32 100.0, %v7407_v44  ;;  %v10077_v56 = vmin.f32 %v7301_v21, 20.0  ;;  %v10108_v44 = vld [vmem:[#allocation14_spill] sm:$0xff] }
 0x289   : > { %v7426_v51 = vpop.eup %5493  ;;  %v2071_v61 = vsel %vm7436_vm1, %v2068_v50, %v2065_v17  ;;  %v2087_v14 = vand.u32 2147483647, %v7311_v9  ;;  %vm1799_vm12 = vcmp.gt.f32.partialorder %v7138_v12, 20.0  ;;  %v2083_v28 = vmul.f32 0.6931472, %v5492_v40 }
 0x28a   : > { %v7417_v42 = vsel %vm1808_vm0, %v7180_v6, %v2224_v3  ;;  %v7434_v6 = vadd.f32 %v7197_v48, %v7070_v30  ;;  %v2153_v11 = vadd.f32 1.0, %v7426_v51  ;;  %10076 = vst [vmem:[#allocation30_spill] sm:$0xff] %v7442_v4  ;;  %v1868_v54 = vmul.f32 1.442695, %v10077_v56 }
 0x28b   : > { %10072 = vst [vmem:[#allocation33_spill] sm:$0xff] %v7417_v42  ;;  %v1826_v30 = vmin.f32 %v7420_v36, 20.0  ;;  %v2141_v1 = vand.u32 2147483647, %v7384_v26  ;;  %v7455_v34 = vmul.f32 100.0, %v7424_v63  ;;  %v2139_v7 = vadd.f32 1.0, %v2138_v53 }
 0x28c   : > { %10073 = vst [vmem:[#allocation27_spill] sm:$0xff] %v7434_v6  ;;  %v7450_v48 = vpop.eup %5495  ;;  %5501 = vlog2.f32 %v2153_v11  ;;  %v7461_v0 = vmul.f32 100.0, %v7434_v6  ;;  %v2086_v58 = vmul.f32 %v7311_v9, %v2085_v18  ;;  %v2156_v24 = vmul.f32 -0.5, %v7426_v51 }
 0x28d   : > { %v7457_v43 = vpop.eup %5497  ;;  %v1946_v31 = vadd.f32 1.0, %v7450_v48  ;;  %v1870_v29 = vmul.f32 1.442695, %v1826_v30  ;;  %v1819_v3 = vmin.f32 %v7442_v4, 20.0  ;;  %5503 = vpow2.f32 %v1868_v54 }
 0x28e   : > { %10078 = vst [vmem:[#allocation36_spill] sm:$0xff] %v7461_v0  ;;  %v1964_v45 = vadd.f32 1.0, %v7457_v43  ;;  %v2215_v40 = vmul.f32 0.01, %v2071_v61  ;;  %vm7467_vm13 = vcmp.lt.f32.partialorder %v2087_v14, 0.0004427343  ;;  %v2140_v11 = vmul.f32 %v7384_v26, %v2139_v7 }
 0x28f   : > { %vm1807_vm14 = vcmp.gt.f32.partialorder %v7248_v32, 20.0  ;;  %vm1801_vm15 = vcmp.gt.f32.partialorder %v7163_v25, 20.0  ;;  %v2089_v9 = vsel %vm7467_vm13, %v2086_v58, %v2083_v28  ;;  %vm7475_vm2 = vcmp.lt.f32.partialorder %v2141_v1, 0.0004427343 }
 0x290   : > { %5505 = vlog2.f32 %v1946_v31  ;;  %v1828_v57 = vmin.f32 %v7455_v34, 20.0  ;;  %v1821_v56 = vmin.f32 %v7461_v0, 20.0  ;;  %v2157_v54 = vadd.f32 1.0, %v2156_v24 }
 0x291   : > { %5507 = vpow2.f32 %v1870_v29  ;;  %v1856_v61 = vmul.f32 1.442695, %v1819_v3  ;;  %vm1809_vm3 = vcmp.gt.f32.partialorder %v7309_v13, 20.0  ;;  %v7487_v28 = vadd.f32 %v7210_v37, %v7099_v23 }
 0x292   : > { %v5500_v50 = vpop.eup %5499  ;;  %5509 = vlog2.f32 %v1964_v45  ;;  %v1874_v14 = vmul.f32 1.442695, %v1828_v57  ;;  %v7491_v1 = vadd.f32 %v7250_v52, %v7099_v23  ;;  %v7495_v26 = vadd.f32 %v7226_v10, %v7099_v23 }
 0x293   : > { %v2137_v18 = vmul.f32 0.6931472, %v5500_v50  ;;  %v2159_v31 = vand.u32 2147483647, %v7426_v51  ;;  %v7500_v29 = vadd.f32 %v7199_v38, %v7082_v19  ;;  %v7505_v37 = vsel %vm1799_vm12, %v7122_v62, %v2215_v40 }
 0x294   : > { %5511 = vpow2.f32 %v1874_v14  ;;  %v2217_v58 = vmul.f32 0.01, %v2089_v9  ;;  %v1860_v52 = vmul.f32 1.442695, %v1821_v56  ;;  %v7508_v24 = vmul.f32 100.0, %v7487_v28 }
 0x295   : > { %v2143_v30 = vsel %vm7475_vm2, %v2140_v11, %v2137_v18  ;;  %10083 = vst [vmem:[#allocation34_spill] sm:$0xff] %v7500_v29  ;;  %v1949_v3 = vmul.f32 -0.5, %v7450_v48  ;;  %v1952_v38 = vand.u32 2147483647, %v7450_v48  ;;  %v7518_v17 = vmul.f32 100.0, %v7491_v1 }
 0x296   : > { %v2223_v7 = vmul.f32 0.01, %v2143_v30  ;;  %v5502_v10 = vpop.eup %5501  ;;  %v2158_v40 = vmul.f32 %v7426_v51, %v2157_v54  ;;  %v7524_v50 = vmul.f32 100.0, %v7495_v26  ;;  %vm2160_vm4 = vcmp.lt.f32.partialorder %v2159_v31, 0.0004427343 }
 0x297   : > { %v2155_v12 = vmul.f32 0.6931472, %v5502_v10  ;;  %5513 = vpow2.f32 %v1856_v61  ;;  %v1834_v32 = vmin.f32 %v7508_v24, 20.0  ;;  %v7530_v9 = vpop.eup %5503  ;;  %v7535_v53 = vsel %vm1801_vm15, %v7147_v22, %v2217_v58 }
 0x298   : > { %v7513_v45 = vsel %vm1807_vm14, %v7222_v49, %v2223_v7  ;;  %v7527_v49 = vmul.f32 100.0, %v7500_v29  ;;  %5515 = vpow2.f32 %v1860_v52  ;;  %v7539_v51 = vadd.f32 %v7257_v47, %v7099_v23  ;;  %v10105_v29 = vld [vmem:[#allocation17_spill] sm:$0xff] }
 0x299   : > { %v2161_v57 = vsel %vm2160_vm4, %v2158_v40, %v2155_v12  ;;  %v1967_v56 = vmul.f32 -0.5, %v7457_v43  ;;  %v7544_v54 = vadd.f32 %v7224_v8, %v7082_v19  ;;  %v1836_v61 = vmin.f32 %v7518_v17, 20.0  ;;  %v10088_v12 = vld [vmem:[#allocation18_spill] sm:$0xff] }
 0x29a   : > { %10084 = vst [vmem:[#allocation21_spill] sm:$0xff] %v7527_v49  ;;  %v5506_v18 = vpop.eup %5505  ;;  %v2225_v11 = vmul.f32 0.01, %v2161_v57  ;;  %v1950_v22 = vadd.f32 1.0, %v1949_v3  ;;  %vm7549_vm5 = vcmp.lt.f32.partialorder %v1952_v38, 0.0004427343  ;;  %v7569_v3 = vadd.f32 %v7241_v55, %v7125_v60 }
 0x29b   : > { %10085 = vst [vmem:[#allocation37_spill] sm:$0xff] %v7544_v54  ;;  %v7547_v14 = vpop.eup %5507  ;;  %v1970_v23 = vand.u32 2147483647, %v7457_v43  ;;  %v1835_v47 = vmin.f32 %v7524_v50, 20.0  ;;  %v1827_v8 = vmin.f32 %v7527_v49, 20.0  ;;  %v7565_v10 = vmul.f32 100.0, %v7539_v51 }
 0x29c   : > { %v5510_v30 = vpop.eup %5509  ;;  %v7558_v7 = vsel %vm1809_vm3, %v7282_v16, %v2225_v11  ;;  %v2018_v19 = vadd.f32 1.0, %v7547_v14  ;;  %v1886_v31 = vmul.f32 1.442695, %v1834_v32  ;;  %v1948_v52 = vmul.f32 0.6931472, %v5506_v18 }
 0x29d   : > { %v1890_v16 = vmul.f32 1.442695, %v1836_v61  ;;  %v7575_v13 = vadd.f32 %v7284_v39, %v7125_v60  ;;  %v7579_v40 = vadd.f32 %v10088_v12, %v7125_v60  ;;  %v1968_v32 = vadd.f32 1.0, %v1967_v56 }
 0x29e   : > { %v7571_v38 = vpop.eup %5511  ;;  %5517 = vlog2.f32 %v2018_v19  ;;  %v7583_v18 = vmul.f32 100.0, %v7544_v54  ;;  %v1888_v55 = vmul.f32 1.442695, %v1835_v47  ;;  %v1951_v11 = vmul.f32 %v7450_v48, %v1950_v22 }
 0x29f   : > { %v2036_v57 = vadd.f32 1.0, %v7571_v38  ;;  %v1966_v20 = vmul.f32 0.6931472, %v5510_v30  ;;  %v1872_v19 = vmul.f32 1.442695, %v1827_v8  ;;  %5519 = vpow2.f32 %v1886_v31 }
 0x2a0   : > { %10089 = vst [vmem:[#allocation38_spill] sm:$0xff] %v7583_v18  ;;  %vm1786_vm6 = vcmp.gt.f32.partialorder %v7345_v46, 20.0  ;;  %v2021_v39 = vmul.f32 -0.5, %v7547_v14  ;;  %v1837_v61 = vmin.f32 %v7565_v10, 20.0  ;;  %v7590_v56 = vmul.f32 100.0, %v7569_v3 }
 0x2a1   : > { %5521 = vlog2.f32 %v2036_v57  ;;  %v7592_v12 = vpop.eup %5513  ;;  %v1954_v47 = vsel %vm7549_vm5, %v1951_v11, %v1948_v52  ;;  %v7597_v48 = vmul.f32 100.0, %v7575_v13  ;;  %v7600_v22 = vmul.f32 100.0, %v7579_v40 }
 0x2a2   : > { %5523 = vpow2.f32 %v1890_v16  ;;  %v7602_v30 = vpop.eup %5515  ;;  %v1969_v8 = vmul.f32 %v7457_v43, %v1968_v32  ;;  %v1829_v31 = vmin.f32 %v7583_v18, 20.0  ;;  %v1892_v57 = vmul.f32 1.442695, %v1837_v61 }
 0x2a3   : > { %5525 = vpow2.f32 %v1888_v55  ;;  %vm7606_vm7 = vcmp.lt.f32.partialorder %v1970_v23, 0.0004427343  ;;  %v2039_v25 = vmul.f32 -0.5, %v7571_v38  ;;  %v1842_v52 = vmin.f32 %v7590_v56, 20.0 }
 0x2a4   : > { %v1844_v16 = vmin.f32 %v7597_v48, 20.0  ;;  %v2202_v11 = vmul.f32 0.01, %v1954_v47  ;;  %v1972_v33 = vsel %vm7606_vm7, %v1969_v8, %v1966_v20  ;;  %vm1794_vm9 = vcmp.gt.f32.partialorder %v7420_v36, 20.0 }
 0x2a5   : > { %v2022_v43 = vadd.f32 1.0, %v2021_v39  ;;  %v1843_v32 = vmin.f32 %v7600_v22, 20.0  ;;  %v2024_v23 = vand.u32 2147483647, %v7547_v14  ;;  %5527 = vpow2.f32 %v1872_v19 }
 0x2a6   : > { %v1902_v55 = vmul.f32 1.442695, %v1842_v52  ;;  %v1906_v61 = vmul.f32 1.442695, %v1844_v16  ;;  %v2042_v62 = vand.u32 2147483647, %v7571_v38  ;;  %5529 = vpow2.f32 %v1892_v57 }
 0x2a7   : > { %v1876_v54 = vmul.f32 1.442695, %v1829_v31  ;;  %v1904_v6 = vmul.f32 1.442695, %v1843_v32  ;;  %vm1788_vm10 = vcmp.gt.f32.partialorder %v7353_v27, 20.0  ;;  %vm1796_vm11 = vcmp.gt.f32.partialorder %v7455_v34, 20.0 }
 0x2a8   : > { %v5518_v18 = vpop.eup %5517  ;;  %v2204_v58 = vmul.f32 0.01, %v1972_v33  ;;  %v2040_v20 = vadd.f32 1.0, %v2039_v25  ;;  %5531 = vpow2.f32 %v1902_v55  ;;  %v1919_v39 = vadd.f32 1.0, %v7347_v41  ;;  %v10092_v57 = vld [vmem:[#allocation24_spill] sm:$0xff]  ;;  %v10094_v33 = vld [vmem:[#allocation31_spill] sm:$0xff] }
 0x2a9   : > { %v2020_v47 = vmul.f32 0.6931472, %v5518_v18  ;;  %v2023_v19 = vmul.f32 %v7547_v14, %v2022_v43  ;;  %5533 = vpow2.f32 %v1906_v61  ;;  %v7625_v8 = vadd.f32 %v7293_v35, %v7125_v60  ;;  %v5520_v31 = vpop.eup %5519 }
 0x2aa   : > { %v7630_v52 = vsel %vm1786_vm6, %v10092_v57, %v2202_v11  ;;  %vm2025_vm0 = vcmp.lt.f32.partialorder %v2024_v23, 0.0004427343  ;;  %5535 = vpow2.f32 %v1904_v6  ;;  %v1991_v25 = vadd.f32 1.0, %v10094_v33 }
 0x2ab   : > { %10093 = vst [vmem:[#allocation35_spill] sm:$0xff] %v7630_v52  ;;  %v5522_v16 = vpop.eup %5521  ;;  %v2026_v32 = vsel %vm2025_vm0, %v2023_v19, %v2020_v47  ;;  %vm7633_vm1 = vcmp.lt.f32.partialorder %v2042_v62, 0.0004427343  ;;  %v2090_v14 = vadd.f32 1.0, %v5520_v31  ;;  %v1922_v60 = vmul.f32 -0.5, %v7347_v41 }
 0x2ac   : > { %v5524_v35 = vpop.eup %5523  ;;  %v2210_v43 = vmul.f32 0.01, %v2026_v32  ;;  %v2038_v55 = vmul.f32 0.6931472, %v5522_v16  ;;  %v2041_v46 = vmul.f32 %v7571_v38, %v2040_v20  ;;  %5537 = vlog2.f32 %v1919_v39 }
 0x2ad   : > { %v5526_v11 = vpop.eup %5525  ;;  %5539 = vlog2.f32 %v2090_v14  ;;  %v2108_v6 = vadd.f32 1.0, %v5524_v35  ;;  %v7640_v23 = vmul.f32 100.0, %v7625_v8  ;;  %v1925_v62 = vand.u32 2147483647, %v7347_v41  ;;  %v10098_v14 = vld [vmem:[#allocation19_spill] sm:$0xff] }
 0x2ae   : > { %v7646_v61 = vsel %vm1794_vm9, %v7390_v59, %v2210_v43  ;;  %v2044_v47 = vsel %vm7633_vm1, %v2041_v46, %v2038_v55  ;;  %v2093_v19 = vmul.f32 -0.5, %v5520_v31  ;;  %5541 = vlog2.f32 %v1991_v25 }
 0x2af   : > { %10097 = vst [vmem:[#allocation22_spill] sm:$0xff] %v7646_v61  ;;  %v2212_v20 = vmul.f32 0.01, %v2044_v47  ;;  %5543 = vlog2.f32 %v2108_v6  ;;  %v1923_v39 = vadd.f32 1.0, %v1922_v60  ;;  %v7652_v57 = vpop.eup %5527  ;;  %v2111_v16 = vmul.f32 -0.5, %v5524_v35 }
 0x2b0   : > { %5545 = vpow2.f32 %v1876_v54  ;;  %v2099_v32 = vadd.f32 1.0, %v5526_v11  ;;  %v1994_v36 = vmul.f32 -0.5, %v10094_v33  ;;  %v7655_v59 = vpop.eup %5529  ;;  %v7660_v18 = vsel %vm1788_vm10, %v10098_v14, %v2204_v58 }
 0x2b1   : > { %10099 = vst [vmem:[#allocation7_spill] sm:$0xff] %v7660_v18  ;;  %v7665_v25 = vsel %vm1796_vm11, %v7424_v63, %v2212_v20  ;;  %v2102_v60 = vmul.f32 -0.5, %v5526_v11  ;;  %v1845_v43 = vmin.f32 %v7640_v23, 20.0  ;;  %v2094_v46 = vadd.f32 1.0, %v2093_v19 }
 0x2b2   : > { %10100 = vst [vmem:[#allocation8_spill] sm:$0xff] %v7665_v25  ;;  %v5532_v54 = vpop.eup %5531  ;;  %v2096_v6 = vand.u32 2147483647, %v5520_v31  ;;  %5547 = vlog2.f32 %v2099_v32  ;;  %v2114_v27 = vand.u32 2147483647, %v5524_v35  ;;  %v1924_v58 = vmul.f32 %v7347_v41, %v1923_v39 }
 0x2b3   : > { %v7670_v47 = vpop.eup %5533  ;;  %vm7673_vm12 = vcmp.lt.f32.partialorder %v1925_v62, 0.0004427343  ;;  %v1997_v63 = vand.u32 2147483647, %v10094_v33  ;;  %v2112_v20 = vadd.f32 1.0, %v2111_v16  ;;  %v2117_v38 = vadd.f32 1.0, %v7655_v59 }
 0x2b4   : > { %v7678_v34 = vpop.eup %5535  ;;  %v2162_v55 = vadd.f32 1.0, %v5532_v54  ;;  %v1995_v19 = vadd.f32 1.0, %v1994_v36  ;;  %v2103_v18 = vadd.f32 1.0, %v2102_v60  ;;  %v2105_v32 = vand.u32 2147483647, %v5526_v11 }
 0x2b5   : > { %v2180_v25 = vadd.f32 1.0, %v7670_v47  ;;  %v1908_v52 = vmul.f32 1.442695, %v1845_v43  ;;  %v2095_v41 = vmul.f32 %v5520_v31, %v2094_v46  ;;  %vm7682_vm13 = vcmp.lt.f32.partialorder %v2096_v6, 0.0004427343 }
 0x2b6   : > { %v5538_v61 = vpop.eup %5537  ;;  %5549 = vlog2.f32 %v2162_v55  ;;  %v2165_v39 = vmul.f32 -0.5, %v5532_v54  ;;  %vm1783_vm14 = vcmp.gt.f32.partialorder %v10105_v29, 20.0  ;;  %vm7687_vm15 = vcmp.lt.f32.partialorder %v2114_v27, 0.0004427343 }
 0x2b7   : > { %v5540_v0 = vpop.eup %5539  ;;  %v2168_v36 = vand.u32 2147483647, %v5532_v54  ;;  %5551 = vlog2.f32 %v2180_v25  ;;  %v2171_v60 = vadd.f32 1.0, %v7678_v34  ;;  %vm1791_vm2 = vcmp.gt.f32.partialorder %v10108_v44, 20.0 }
 0x2b8   : > { %v5542_v43 = vpop.eup %5541  ;;  %v2092_v31 = vmul.f32 0.6931472, %v5540_v0  ;;  %v2113_v46 = vmul.f32 %v5524_v35, %v2112_v20  ;;  %5553 = vlog2.f32 %v2117_v38  ;;  %v7694_v55 = vmul.f32 -0.5, %v7655_v59 }
 0x2b9   : > { %v5544_v6 = vpop.eup %5543  ;;  %v2104_v49 = vmul.f32 %v5526_v11, %v2103_v18  ;;  %vm7696_vm3 = vcmp.lt.f32.partialorder %v2105_v32, 0.0004427343  ;;  %5555 = vlog2.f32 %v2171_v60  ;;  %v1921_v4 = vmul.f32 0.6931472, %v5538_v61 }
 0x2ba   : > { %v7700_v25 = vpop.eup %5545  ;;  %vm1802_vm4 = vcmp.gt.f32.partialorder %v7508_v24, 20.0  ;;  %v2110_v5 = vmul.f32 0.6931472, %v5544_v6  ;;  %v2166_v42 = vadd.f32 1.0, %v2165_v39  ;;  %v2183_v0 = vmul.f32 -0.5, %v7670_v47 }
 0x2bb   : > { %5557 = vpow2.f32 %v1908_v52  ;;  %vm7704_vm5 = vcmp.lt.f32.partialorder %v2168_v36, 0.0004427343  ;;  %v2174_v11 = vmul.f32 -0.5, %v7678_v34  ;;  %v1927_v38 = vsel %vm7673_vm12, %v1924_v58, %v1921_v4  ;;  %v10113_v4 = vld [vmem:[#allocation26_spill] sm:$0xff] }
 0x2bc   : > { %v1993_v18 = vmul.f32 0.6931472, %v5542_v43  ;;  %v5548_v61 = vpop.eup %5547  ;;  %v2098_v20 = vsel %vm7682_vm13, %v2095_v41, %v2092_v31  ;;  %vm1804_vm6 = vcmp.gt.f32.partialorder %v7518_v17, 20.0  ;;  %v2186_v32 = vand.u32 2147483647, %v7670_v47 }
 0x2bd   : > { %v1996_v52 = vmul.f32 %v10094_v33, %v1995_v19  ;;  %v2199_v39 = vmul.f32 0.01, %v1927_v38  ;;  %v2116_v36 = vsel %vm7687_vm15, %v2113_v46, %v2110_v5  ;;  %v2101_v60 = vmul.f32 0.6931472, %v5548_v61  ;;  %v10117_v38 = vld [vmem:[#allocation25_spill] sm:$0xff] }
 0x2be   : > { %vm1810_vm7 = vcmp.gt.f32.partialorder %v7590_v56, 20.0  ;;  %vm1998_vm9 = vcmp.lt.f32.partialorder %v1997_v63, 0.0004427343  ;;  %v1937_v58 = vadd.f32 1.0, %v10113_v4  ;;  %v2167_v14 = vmul.f32 %v5532_v54, %v2166_v42  ;;  %v10116_v42 = vld [vmem:[#allocation13_spill] sm:$0xff] }
 0x2bf   : > { %vm1812_vm10 = vcmp.gt.f32.partialorder %v7597_v48, 20.0  ;;  %v2184_v41 = vadd.f32 1.0, %v2183_v0  ;;  %v2177_v62 = vand.u32 2147483647, %v7678_v34  ;;  %v1999_v43 = vsel %vm1998_vm9, %v1996_v52, %v1993_v18 }
 0x2c0   : > { %v2218_v31 = vmul.f32 0.01, %v2098_v20  ;;  %vm1803_vm11 = vcmp.gt.f32.partialorder %v7524_v50, 20.0  ;;  %v2175_v33 = vadd.f32 1.0, %v2174_v11  ;;  %v2207_v19 = vmul.f32 0.01, %v1999_v43  ;;  %v5550_v5 = vpop.eup %5549 }
 0x2c1   : > { %5559 = vlog2.f32 %v1937_v58  ;;  %v2220_v16 = vmul.f32 0.01, %v2116_v36  ;;  %vm7723_vm0 = vcmp.lt.f32.partialorder %v2186_v32, 0.0004427343  ;;  %vm1811_vm1 = vcmp.gt.f32.partialorder %v7600_v22, 20.0  ;;  %v5552_v6 = vpop.eup %5551  ;;  %v10121_v43 = vld [vmem:[#allocation12_spill] sm:$0xff] }
 0x2c2   : > { %v2231_v54 = vsel %vm1783_vm14, %v10116_v42, %v2199_v39  ;;  %v1940_v63 = vmul.f32 -0.5, %v10113_v4  ;;  %v2107_v0 = vsel %vm7696_vm3, %v2104_v49, %v2101_v60  ;;  %v2164_v11 = vmul.f32 0.6931472, %v5550_v5  ;;  %v5554_v20 = vpop.eup %5553 }
 0x2c3   : > { %v2239_v18 = vsel %vm1791_vm2, %v10117_v38, %v2207_v19  ;;  %v2009_v61 = vadd.f32 1.0, %v7530_v9  ;;  %v2182_v32 = vmul.f32 0.6931472, %v5552_v6  ;;  %v2185_v52 = vmul.f32 %v7670_v47, %v2184_v41  ;;  %v5556_v36 = vpop.eup %5555 }
 0x2c4   : > { %vm7739_vm12 = vcmp.lt.f32.partialorder %v2177_v62, 0.0004427343  ;;  %v5129_v39 = vpack.c.bf16 %v2239_v18, %v2231_v54  ;;  %v7746_v49 = vsel %vm1802_vm4, %v7487_v28, %v2218_v31  ;;  %v2170_v44 = vsel %vm7704_vm5, %v2167_v14, %v2164_v11 }
 0x2c5   : > { %v2176_v27 = vmul.f32 %v7678_v34, %v2175_v33  ;;  %5561 = vlog2.f32 %v2009_v61  ;;  %v7751_v60 = vpop.eup %5557  ;;  %v2219_v47 = vmul.f32 0.01, %v2107_v0  ;;  %v2226_v58 = vmul.f32 0.01, %v2170_v44  ;;  %v10120_v34 = vld [vmem:[#allocation16_spill] sm:$0xff] }
 0x2c6   : > { %v2188_v41 = vsel %vm7723_vm0, %v2185_v52, %v2182_v32  ;;  %v2173_v62 = vmul.f32 0.6931472, %v5556_v36  ;;  %5130 = vmatprep.subr.bf16.mxu0 %v5129_v39  ;;  %v7758_v28 = vsel %vm1804_vm6, %v7491_v1, %v2220_v16  ;;  %v2189_v35 = vadd.f32 1.0, %v7751_v60 }
 0x2c7   : > { %v2228_v24 = vmul.f32 0.01, %v2188_v41  ;;  %v1941_v14 = vadd.f32 1.0, %v1940_v63  ;;  %v10122_v31 = vpack.c.bf16 %v10120_v34, %v10121_v43  ;;  %v7767_v33 = vsel %vm1810_vm7, %v7569_v3, %v2226_v58  ;;  %v7842_v58 = vld [vmem:[%s9754_s5 + $0x8] sm:$0xff] }
 0x2c8   : > { %v2179_v19 = vsel %vm7739_vm12, %v2176_v27, %v2173_v62  ;;  %v1943_v17 = vand.u32 2147483647, %v10113_v4  ;;  %v2012_v1 = vmul.f32 -0.5, %v7530_v9  ;;  %v5156_v5 = vpack.c.bf16 %v7767_v33, %v7746_v49  ;;  %v7965_v49 = vpop.permute.xlu0 %3038 }
 0x2c9   : > { %5132 = vmatpush1.bf16.msra.mxu0 %v10122_v31  ;;  %v7778_v16 = vsel %vm1812_vm10, %v7575_v13, %v2228_v24  ;;  %v2227_v46 = vmul.f32 0.01, %v2179_v19  ;;  %5563 = vlog2.f32 %v2189_v35  ;;  %v7783_v3 = vsel %vm1803_vm11, %v7495_v26, %v2219_v47  ;;  %v10132_v24 = vld [vmem:[#allocation15_spill] sm:$0xff] }
 0x2ca   : > { %v2121_v56 = vadd.f32 1.0, %v7694_v55  ;;  %v2123_v42 = vand.u32 2147483647, %v7655_v59  ;;  %v5166_v54 = vpack.c.bf16 %v7778_v16, %v7758_v28  ;;  %v1942_v48 = vmul.f32 %v10113_v4, %v1941_v14 }
 0x2cb   : > { %v5560_v63 = vpop.eup %5559  ;;  %v7792_v13 = vsel %vm1811_vm1, %v7579_v40, %v2227_v46  ;;  %vm2655_vm13 = vcmask 1044480   ;;  %v2192_v50 = vmul.f32 -0.5, %v7751_v60  ;;  %v2013_v6 = vadd.f32 1.0, %v2012_v1  ;;  %v10134_v46 = vld [vmem:[#allocation23_spill] sm:$0xff] }
 0x2cc   : > { %v5153_v26 = vpack.c.bf16 %v7792_v13, %v7783_v3  ;;  %v1939_v55 = vmul.f32 0.6931472, %v5560_v63  ;;  %vm5899_vm14 = vmmov 1   ;;  %vm7802_vm2 = vcmp.lt.f32.partialorder %v1943_v17, 0.0004427343  ;;  %v10133_v17 = vld [vmem:[#allocation11_spill] sm:$0xff]  ;;  %v7973_v3 = vpop.permute.xlu1 %3043 }
 0x2cd   : > { %vm7798_vm15 = vmpackc.low %vm2655_vm13, %vm5899_vm14  ;;  %v2015_v40 = vand.u32 2147483647, %v7530_v9  ;;  %v10127_v22 = vpack.c.bf16 %v7513_v45, %v7505_v37  ;;  %v1955_v4 = vadd.f32 1.0, %v7592_v12  ;;  %v2027_v38 = vadd.f32 1.0, %v7652_v57  ;;  %v7824_v37 = vld [vmem:[%s9754_s5] sm:$0xff] }
 0x2ce   : > { %v2119_v18 = vmul.f32 0.6931472, %v5554_v20  ;;  %v1945_v61 = vsel %vm7802_vm2, %v1942_v48, %v1939_v55  ;;  %v10128_v32 = vpack.c.bf16 %v7403_v15, %v7395_v2  ;;  %vm2642_vm3 = vcmask 236544  }
 0x2cf   : > { %5135 = vmatprep.subr.msk.bf16.mxu0 %vm7798_vm15, %v10127_v22  ;;  %v1973_v45 = vadd.f32 1.0, %v7602_v30  ;;  %v5562_v52 = vpop.eup %5561  ;;  %v2122_v20 = vmul.f32 %v7655_v59, %v2121_v56  ;;  %vm7828_vm4 = vcmp.lt.f32.partialorder %v2123_v42, 0.0004427343  ;;  %5565 = vlog2.f32 %v1955_v4 }
 0x2d0   : > { %5138 = vmatpush1.bf16.msk.msra.mxu0 %vm7798_vm15, %v10128_v32  ;;  %v2193_v2 = vadd.f32 1.0, %v2192_v50  ;;  %v2011_v15 = vmul.f32 0.6931472, %v5562_v52  ;;  %v2014_v39 = vmul.f32 %v7530_v9, %v2013_v6  ;;  %5567 = vlog2.f32 %v2027_v38 }
 0x2d1   : > { %v2195_v36 = vand.u32 2147483647, %v7751_v60  ;;  %vm2016_vm5 = vcmp.lt.f32.partialorder %v2015_v40, 0.0004427343  ;;  %v2201_v44 = vmul.f32 0.01, %v1945_v61  ;;  %5569 = vlog2.f32 %v1973_v45 }
 0x2d2   : > { %v2125_v59 = vsel %vm7828_vm4, %v2122_v20, %v2119_v18  ;;  %v2017_v27 = vsel %vm2016_vm5, %v2014_v39, %v2011_v15  ;;  %v10131_v47 = vmov 0.0   ;;  %v1958_v9 = vmul.f32 -0.5, %v7592_v12  ;;  %v10135_v18 = vld [vmem:[#allocation32_spill] sm:$0xff]  ;;  %v7884_v20 = vld [vmem:[%s9754_s5 + $0x18] sm:$0xff] }
 0x2d3   : > { %5042 = vmatmul.mubr.msk.f32.vlgmr.msra.gmra.mrb[32].mxu0 %vm2642_vm3, %v7824_v37  ;;  %v2045_v41 = vadd.f32 1.0, %v7700_v25  ;;  %v5564_v62 = vpop.eup %5563  ;;  %vm1785_vm6 = vcmp.gt.f32.partialorder %v10132_v24, 20.0  ;;  %vm1793_vm7 = vcmp.gt.f32.partialorder %v7301_v21, 20.0  ;;  %v2209_v35 = vmul.f32 0.01, %v2017_v27  ;;  %v10136_v61 = vld [vmem:[#allocation20_spill] sm:$0xff] }
 0x2d4   : > { %2750 = vmatprep.mubr.f32.mxu0 %v10131_v47  ;;  %v2030_v14 = vmul.f32 -0.5, %v7652_v57  ;;  %v2191_v34 = vmul.f32 0.6931472, %v5564_v62  ;;  %v2194_v43 = vmul.f32 %v7751_v60, %v2193_v2  ;;  %v1976_v31 = vmul.f32 -0.5, %v7602_v30  ;;  %v7860_v60 = vld [vmem:[%s9754_s5 + $0x10] sm:$0xff] }
 0x2d5   : > { %5571 = vlog2.f32 %v2045_v41  ;;  %v2221_v19 = vmul.f32 0.01, %v2125_v59  ;;  %vm2196_vm9 = vcmp.lt.f32.partialorder %v2195_v36, 0.0004427343  ;;  %v2233_v1 = vsel %vm1785_vm6, %v10133_v17, %v2201_v44  ;;  %v10139_v44 = vld [vmem:[#allocation33_spill] sm:$0xff]  ;;  %v10140_v59 = vld [vmem:[#allocation28_spill] sm:$0xff] }
 0x2d6   : > { %v2241_v56 = vsel %vm1793_vm7, %v10134_v46, %v2209_v35  ;;  %v2197_v42 = vsel %vm2196_vm9, %v2194_v43, %v2191_v34  ;;  %v1959_v63 = vadd.f32 1.0, %v1958_v9  ;;  %v1961_v48 = vand.u32 2147483647, %v7592_v12  ;;  %v10143_v35 = vld [vmem:[#allocation21_spill] sm:$0xff] }
 0x2d7   : > { %5043 = vmatmul.mubr.msk.f32.gmra.mrb[34].mxu0 %vm2642_vm3, %v7842_v58  ;;  %v5139_v21 = vpack.c.bf16 %v2241_v56, %v2233_v1  ;;  %v2229_v50 = vmul.f32 0.01, %v2197_v42  ;;  %v2031_v55 = vadd.f32 1.0, %v2030_v14  ;;  %v2033_v6 = vand.u32 2147483647, %v7652_v57  ;;  %v10144_v43 = vld [vmem:[#allocation29_spill] sm:$0xff] }
 0x2d8   : > { %2756 = vmatprep.mubr.f32.mxu0 %v10131_v47  ;;  %v2048_v11 = vmul.f32 -0.5, %v7700_v25  ;;  %vm1805_vm10 = vcmp.gt.f32.partialorder %v7565_v10, 20.0  ;;  %vm1813_vm11 = vcmp.gt.f32.partialorder %v7640_v23, 20.0  ;;  %v1977_v40 = vadd.f32 1.0, %v1976_v31 }
 0x2d9   : > { %5140 = vmatprep.subr.bf16.mxu1 %v5139_v21  ;;  %v5566_v22 = vpop.eup %5565  ;;  %v2253_v4 = vsel %vm1805_vm10, %v7539_v51, %v2221_v19  ;;  %v2261_v38 = vsel %vm1813_vm11, %v7625_v8, %v2229_v50  ;;  %v10137_v32 = vpack.c.bf16 %v10135_v18, %v10136_v61  ;;  %v1979_v45 = vand.u32 2147483647, %v7602_v30  ;;  %v10145_v19 = vld [vmem:[#allocation34_spill] sm:$0xff]  ;;  %v10146_v21 = vld [vmem:[#allocation36_spill] sm:$0xff]  ;;  %v10149_v50 = vld [vmem:[#allocation37_spill] sm:$0xff] }
 0x2da   : > { %v5568_v52 = vpop.eup %5567  ;;  %v5163_v10 = vpack.c.bf16 %v2261_v38, %v2253_v4  ;;  %v10138_v23 = vpack.c.bf16 %v7558_v7, %v7535_v53  ;;  %v1957_v51 = vmul.f32 0.6931472, %v5566_v22  ;;  %v1960_v8 = vmul.f32 %v7592_v12, %v1959_v63  ;;  %v10147_v63 = vld [vmem:[#allocation38_spill] sm:$0xff]  ;;  %v10153_v4 = vld [vmem:[#allocation8_spill] sm:$0xff]  ;;  %v10154_v38 = vld [vmem:[#allocation7_spill] sm:$0xff] }
 0x2db   : > { %5142 = vmatpush1.bf16.msra.mxu1 %v10137_v32  ;;  %5044 = vmatmul.mubr.msk.f32.gmra.mrb[36].mxu0 %vm2642_vm3, %v7860_v60  ;;  %vm1962_vm0 = vcmp.lt.f32.partialorder %v1961_v48, 0.0004427343  ;;  %v5570_v29 = vpop.eup %5569  ;;  %v2029_v2 = vmul.f32 0.6931472, %v5568_v52  ;;  %v2032_v15 = vmul.f32 %v7652_v57, %v2031_v55  ;;  %vm2034_vm1 = vcmp.lt.f32.partialorder %v2033_v6, 0.0004427343 }
 0x2dc   : > { %5145 = vmatprep.subr.msk.bf16.mxu1 %vm7798_vm15, %v10138_v23  ;;  %2762 = vmatprep.mubr.f32.mxu0 %v10131_v47  ;;  %v2049_v53 = vadd.f32 1.0, %v2048_v11  ;;  %v1963_v7 = vsel %vm1962_vm0, %v1960_v8, %v1957_v51  ;;  %v1975_v39 = vmul.f32 0.6931472, %v5570_v29  ;;  %v1978_v36 = vmul.f32 %v7602_v30, %v1977_v40  ;;  %v10142_v30 = vld [vmem:[#allocation30_spill] sm:$0xff]  ;;  %v10151_v11 = vld [vmem:[#allocation35_spill] sm:$0xff]  ;;  %v7991_v51 = vpop.permute.xlu1 %3053 }
 0x2dd   : > { %v2051_v12 = vand.u32 2147483647, %v7700_v25  ;;  %v10141_v27 = vpack.c.bf16 %v10139_v44, %v10140_v59  ;;  %v2035_v9 = vsel %vm2034_vm1, %v2032_v15, %v2029_v2  ;;  %v2203_v41 = vmul.f32 0.01, %v1963_v7  ;;  %v10150_v6 = vld [vmem:[#allocation22_spill] sm:$0xff] }
 0x2de   : > { %vm1980_vm12 = vcmp.lt.f32.partialorder %v1979_v45, 0.0004427343  ;;  %v2211_v62 = vmul.f32 0.01, %v2035_v9  ;;  %vm1787_vm13 = vcmp.gt.f32.partialorder %v10142_v30, 20.0  ;;  %vm1795_vm14 = vcmp.gt.f32.partialorder %v10143_v35, 20.0 }
 0x2df   : > { %5148 = vmatpush1.bf16.msk.msra.mxu1 %vm7798_vm15, %v10141_v27  ;;  %5045 = vmatmul.mubr.msk.f32.gmra.mrb[38].mxu0 %vm2642_vm3, %v7884_v20  ;;  %v5572_v57 = vpop.eup %5571  ;;  %v1981_v24 = vsel %vm1980_vm12, %v1978_v36, %v1975_v39  ;;  %v2050_v34 = vmul.f32 %v7700_v25, %v2049_v53  ;;  %v2235_v31 = vsel %vm1787_vm13, %v10144_v43, %v2203_v41  ;;  %vm2052_vm2 = vcmp.lt.f32.partialorder %v2051_v12, 0.0004427343  ;;  %v10148_v25 = vld [vmem:[#allocation27_spill] sm:$0xff] }
 0x2e0   : > { %2922 = vmatprep.mubr.f32.mxu0 %v10131_v47  ;;  %v2047_v14 = vmul.f32 0.6931472, %v5572_v57  ;;  %v2243_v17 = vsel %vm1795_vm14, %v10145_v19, %v2211_v62  ;;  %v2205_v1 = vmul.f32 0.01, %v1981_v24  ;;  %vm1789_vm4 = vcmp.gt.f32.partialorder %v10146_v21, 20.0 }
 0x2e1   : > { %v5149_v46 = vpack.c.bf16 %v2243_v17, %v2235_v31  ;;  %vm1797_vm5 = vcmp.gt.f32.partialorder %v10147_v63, 20.0  ;;  %v10152_v40 = vpack.c.bf16 %v10150_v6, %v10151_v11  ;;  %v10155_v18 = vpack.c.bf16 %v10153_v4, %v10154_v38 }
 0x2e2   : > { %5048 = vmatmul.mubr.msk.f32.vlgmr.msra.gmra.mrb[32].mxu1 %vm2642_vm3, %v7824_v37  ;;  %v2053_v56 = vsel %vm2052_vm2, %v2050_v34, %v2047_v14  ;;  %v2237_v48 = vsel %vm1789_vm4, %v10148_v25, %v2205_v1 }
 0x2e3   : > { %2839 = vmatprep.mubr.f32.mxu1 %v10131_v47  ;;  %v2213_v42 = vmul.f32 0.01, %v2053_v56  ;;  %5150 = vmatprep.subr.bf16.mxu0 %v5149_v46 }
 0x2e4   : > { %5152 = vmatpush1.bf16.msra.mxu0 %v10152_v40 }
 0x2e5   : > { %v2245_v55 = vsel %vm1797_vm5, %v10149_v50, %v2213_v42  ;;  %5155 = vmatprep.subr.msk.bf16.mxu0 %vm7798_vm15, %v5153_v26 }
 0x2e6   : > { %5049 = vmatmul.mubr.msk.f32.gmra.mrb[34].mxu1 %vm2642_vm3, %v7842_v58  ;;  %v5159_v22 = vpack.c.bf16 %v2245_v55, %v2237_v48 }
 0x2e7   : > { %2845 = vmatprep.mubr.f32.mxu1 %v10131_v47 }
 0x2e8   : > { %5160 = vmatprep.subr.bf16.mxu1 %v5159_v22  ;;  %5158 = vmatpush1.bf16.msk.msra.mxu0 %vm7798_vm15, %v5156_v5 }
 0x2e9   : > { %5162 = vmatpush1.bf16.msra.mxu1 %v10155_v18 }
 0x2ea   : > { %5050 = vmatmul.mubr.msk.f32.gmra.mrb[36].mxu1 %vm2642_vm3, %v7860_v60  ;;  %5165 = vmatprep.subr.msk.bf16.mxu1 %vm7798_vm15, %v5163_v10 }
 0x2eb   : > { %2851 = vmatprep.mubr.f32.mxu1 %v10131_v47  ;;  %5054 = vmatmul.mubr.msk.f32.vlgmr.msra.gmra.mrb[40].mxu0 %vm2642_vm3, %v7824_v37 }
 0x2ec   : > { %2928 = vmatprep.mubr.f32.mxu0 %v10131_v47 }
 0x2ed   : > { %5168 = vmatpush1.bf16.msk.msra.mxu1 %vm7798_vm15, %v5166_v54 }
 0x2ee   : > { %5051 = vmatmul.mubr.msk.f32.gmra.mrb[38].mxu1 %vm2642_vm3, %v7884_v20 }
 0x2ef   : > { %3011 = vmatprep.mubr.f32.mxu1 %v10131_v47  ;;  %5055 = vmatmul.mubr.msk.f32.gmra.mrb[42].mxu0 %vm2642_vm3, %v7842_v58 }
 0x2f0   : > { %2934 = vmatprep.mubr.f32.mxu0 %v10131_v47 }
 0x2f2   : > { %5060 = vmatmul.mubr.msk.f32.vlgmr.msra.gmra.mrb[40].mxu1 %vm2642_vm3, %v7824_v37 }
 0x2f3   : > { %3017 = vmatprep.mubr.f32.mxu1 %v10131_v47  ;;  %5056 = vmatmul.mubr.msk.f32.gmra.mrb[44].mxu0 %vm2642_vm3, %v7860_v60 }
 0x2f4   : > { %2940 = vmatprep.mubr.f32.mxu0 %v10131_v47 }
 0x2f6   : > { %5061 = vmatmul.mubr.msk.f32.gmra.mrb[42].mxu1 %vm2642_vm3, %v7842_v58 }
 0x2f7   : > { %3023 = vmatprep.mubr.f32.mxu1 %v10131_v47  ;;  %5057 = vmatmul.mubr.msk.f32.gmra.mrb[46].mxu0 %vm2642_vm3, %v7884_v20 }
 0x2f8   : > { %3704 = vmatprep.mubr.f32.mxu0 %v10131_v47 }
 0x2fa   : > { %5062 = vmatmul.mubr.msk.f32.gmra.mrb[44].mxu1 %vm2642_vm3, %v7860_v60  ;;  %v7982_v60 = vpop.permute.xlu0 %3048 }
 0x2fb   : > { %3029 = vmatprep.mubr.f32.mxu1 %v10131_v47 }
 0x2fe   : > { %5063 = vmatmul.mubr.msk.f32.gmra.mrb[46].mxu1 %vm2642_vm3, %v7884_v20 }
 0x2ff   : > { %3793 = vmatprep.mubr.f32.mxu1 %v10131_v47 }
 0x3a6   : > { %v2746_v28 = vpop.f32.mrb[32].mxu0 }
 0x3a7   : > { %v7968_v33 = vadd.f32 %v7965_v49, %v2746_v28  ;;  %v2748_v5 = vpop.f32.mrb[33].mxu0 }
 0x3a8   : > { %v8004_v36 = vadd.f32 %v7965_v49, %v2748_v5 }
 0x3a9   : > { %v7971_v16 = vmul.f32 100.0, %v7968_v33 }
 0x3aa   : > { %v2752_v54 = vpop.f32.mrb[34].mxu0  ;;  %10156 = vst [vmem:[#allocation9_spill] sm:$0xff] %v8004_v36  ;;  %v8014_v24 = vmul.f32 100.0, %v8004_v36 }
 0x3ab   : > { %v3152_v13 = vmin.f32 %v7971_v16, 20.0  ;;  %v7977_v26 = vadd.f32 %v7973_v3, %v2752_v54  ;;  %v2754_v0 = vpop.f32.mrb[35].mxu0  ;;  %vm3120_vm3 = vcmp.gt.f32.partialorder %v7971_v16, 20.0 }
 0x3ac   : > { %v8007_v44 = vadd.f32 %v7973_v3, %v2754_v0  ;;  %10158 = vst [vmem:[#allocation18_spill] sm:$0xff] %v8014_v24  ;;  %v3153_v1 = vmin.f32 %v8014_v24, 20.0 }
 0x3ad   : > { %v3184_v37 = vmul.f32 1.442695, %v3152_v13  ;;  %v7980_v58 = vmul.f32 100.0, %v7977_v26 }
 0x3ae   : > { %v2758_v61 = vpop.f32.mrb[36].mxu0  ;;  %10157 = vst [vmem:[#allocation10_spill] sm:$0xff] %v8007_v44  ;;  %v8024_v43 = vmul.f32 100.0, %v8007_v44  ;;  %v3186_v4 = vmul.f32 1.442695, %v3153_v1 }
 0x3af   : > { %5573 = vpow2.f32 %v3184_v37  ;;  %v3160_v32 = vmin.f32 %v7980_v58, 20.0  ;;  %v7986_v45 = vadd.f32 %v7982_v60, %v2758_v61  ;;  %v2760_v52 = vpop.f32.mrb[37].mxu0  ;;  %vm3128_vm6 = vcmp.gt.f32.partialorder %v7980_v58, 20.0 }
 0x3b0   : > { %v8017_v35 = vadd.f32 %v7982_v60, %v2760_v52  ;;  %10160 = vst [vmem:[#allocation31_spill] sm:$0xff] %v8024_v43  ;;  %v3161_v25 = vmin.f32 %v8024_v43, 20.0 }
 0x3b1   : > { %v3200_v10 = vmul.f32 1.442695, %v3160_v32  ;;  %v7989_v23 = vmul.f32 100.0, %v7986_v45 }
 0x3b2   : > { %v2764_v8 = vpop.f32.mrb[38].mxu0  ;;  %10159 = vst [vmem:[#allocation24_spill] sm:$0xff] %v8017_v35  ;;  %v8037_v21 = vmul.f32 100.0, %v8017_v35  ;;  %v3202_v54 = vmul.f32 1.442695, %v3161_v25 }
 0x3b3   : > { %5575 = vpow2.f32 %v3200_v10  ;;  %v3168_v20 = vmin.f32 %v7989_v23, 20.0  ;;  %v7995_v29 = vadd.f32 %v7991_v51, %v2764_v8  ;;  %v2766_v2 = vpop.f32.mrb[39].mxu0  ;;  %vm3136_vm10 = vcmp.gt.f32.partialorder %v7989_v23, 20.0 }
 0x3b4   : > { %10162 = vst [vmem:[#allocation17_spill] sm:$0xff] %v8037_v21  ;;  %v3169_v28 = vmin.f32 %v8037_v21, 20.0  ;;  %v8069_v10 = vadd.f32 %v7991_v51, %v2766_v2 }
 0x3b5   : > { %v2835_v15 = vpop.f32.mrb[32].mxu1  ;;  %v3216_v53 = vmul.f32 1.442695, %v3168_v20  ;;  %v7998_v7 = vmul.f32 100.0, %v7995_v29 }
 0x3b6   : > { %v8001_v39 = vadd.f32 %v7965_v49, %v2835_v15  ;;  %v2837_v12 = vpop.f32.mrb[33].mxu1  ;;  %10165 = vst [vmem:[#allocation13_spill] sm:$0xff] %v8069_v10 }
 0x3b7   : > { %5577 = vpow2.f32 %v3216_v53  ;;  %v3176_v59 = vmin.f32 %v7998_v7, 20.0  ;;  %v8033_v46 = vadd.f32 %v7965_v49, %v2837_v12  ;;  %vm3144_vm11 = vcmp.gt.f32.partialorder %v7998_v7, 20.0 }
 0x3b8   : > { %v8011_v27 = vmul.f32 100.0, %v8001_v39 }
 0x3b9   : > { %v5574_v9 = vpop.eup %5573  ;;  %v2841_v41 = vpop.f32.mrb[34].mxu1  ;;  %v3232_v57 = vmul.f32 1.442695, %v3176_v59  ;;  %10161 = vst [vmem:[#allocation19_spill] sm:$0xff] %v8033_v46  ;;  %v8053_v38 = vmul.f32 100.0, %v8033_v46 }
 0x3ba   : > { %v3248_v62 = vadd.f32 1.0, %v5574_v9  ;;  %v2843_v30 = vpop.f32.mrb[35].mxu1  ;;  %v3154_v14 = vmin.f32 %v8011_v27, 20.0  ;;  %v8021_v34 = vadd.f32 %v7973_v3, %v2841_v41  ;;  %v3251_v50 = vmul.f32 -0.5, %v5574_v9 }
 0x3bb   : > { %10163 = vst [vmem:[#allocation14_spill] sm:$0xff] %v8053_v38  ;;  %v8058_v13 = vadd.f32 %v7973_v3, %v2843_v30  ;;  %v3254_v32 = vand.u32 2147483647, %v5574_v9  ;;  %v3155_v59 = vmin.f32 %v8053_v38, 20.0  ;;  %v3218_v41 = vmul.f32 1.442695, %v3169_v28 }
 0x3bc   : > { %5579 = vlog2.f32 %v3248_v62  ;;  %v3188_v19 = vmul.f32 1.442695, %v3154_v14  ;;  %v8029_v17 = vmul.f32 100.0, %v8021_v34  ;;  %v3252_v61 = vadd.f32 1.0, %v3251_v50 }
 0x3bd   : > { %v8026_v31 = vpop.eup %5575  ;;  %5581 = vpow2.f32 %v3232_v57  ;;  %v2847_v42 = vpop.f32.mrb[36].mxu1  ;;  %10164 = vst [vmem:[#allocation26_spill] sm:$0xff] %v8058_v13  ;;  %v8086_v14 = vmul.f32 100.0, %v8058_v13  ;;  %vm8088_vm15 = vcmp.lt.f32.partialorder %v3254_v32, 0.0004427343  ;;  %vm3122_vm1 = vcmp.gt.f32.partialorder %v8011_v27, 20.0 }
 0x3be   : > { %v3320_v56 = vadd.f32 1.0, %v8026_v31  ;;  %5583 = vpow2.f32 %v3188_v19  ;;  %v3162_v63 = vmin.f32 %v8029_v17, 20.0  ;;  %v8041_v48 = vpop.f32.mrb[37].mxu1  ;;  %v8044_v55 = vadd.f32 %v7982_v60, %v2847_v42  ;;  %v8046_v6 = vpop.f32.mrb[40].mxu0 }
 0x3bf   : > { %v8050_v22 = vpop.f32.mrb[41].mxu0  ;;  %v3323_v20 = vmul.f32 -0.5, %v8026_v31  ;;  %10166 = vst [vmem:[#allocation25_spill] sm:$0xff] %v8086_v14  ;;  %v3253_v1 = vmul.f32 %v5574_v9, %v3252_v61  ;;  %v8093_v42 = vmul.f32 100.0, %v8069_v10  ;;  %v3163_v32 = vmin.f32 %v8086_v14, 20.0 }
 0x3c0   : > { %5585 = vlog2.f32 %v3320_v56  ;;  %v3204_v40 = vmul.f32 1.442695, %v3162_v63  ;;  %v8061_v0 = vmul.f32 100.0, %v8044_v55  ;;  %vm3130_vm12 = vcmp.gt.f32.partialorder %v8029_v17, 20.0 }
 0x3c1   : > { %v8048_v11 = vpop.eup %5577  ;;  %v2853_v5 = vpop.f32.mrb[38].mxu1  ;;  %v3324_v50 = vadd.f32 1.0, %v3323_v20  ;;  %v3206_v46 = vmul.f32 1.442695, %v3163_v32 }
 0x3c2   : > { %v3392_v18 = vadd.f32 1.0, %v8048_v11  ;;  %5587 = vpow2.f32 %v3204_v40  ;;  %v8063_v37 = vpop.f32.mrb[39].mxu1  ;;  %v8066_v52 = vadd.f32 %v7991_v51, %v2853_v5  ;;  %v8071_v8 = vpop.f32.mrb[42].mxu0  ;;  %v3170_v15 = vmin.f32 %v8061_v0, 20.0 }
 0x3c3   : > { %v8075_v53 = vpop.f32.mrb[43].mxu0  ;;  %v3190_v5 = vmul.f32 1.442695, %v3155_v59  ;;  %vm3138_vm2 = vcmp.gt.f32.partialorder %v8061_v0, 20.0 }
 0x3c4   : > { %5589 = vlog2.f32 %v3392_v18  ;;  %v8079_v57 = vmul.f32 100.0, %v8066_v52  ;;  %v3220_v19 = vmul.f32 1.442695, %v3170_v15 }
 0x3c5   : > { %v8081_v62 = vpop.f32.mrb[40].mxu1  ;;  %5591 = vpow2.f32 %v3186_v4 }
 0x3c6   : > { %v5580_v12 = vpop.eup %5579  ;;  %5593 = vpow2.f32 %v3202_v54  ;;  %v8095_v63 = vpop.f32.mrb[41].mxu1  ;;  %v3178_v4 = vmin.f32 %v8079_v57, 20.0  ;;  %v3326_v54 = vand.u32 2147483647, %v8026_v31  ;;  %v8158_v16 = vadd.f32 %v7965_v49, %v8081_v62 }
 0x3c7   : > { %v8083_v2 = vpop.eup %5581  ;;  %v3250_v30 = vmul.f32 0.6931472, %v5580_v12  ;;  %5595 = vpow2.f32 %v3220_v19  ;;  %v8101_v18 = vpop.f32.mrb[44].mxu0  ;;  %v3395_v12 = vmul.f32 -0.5, %v8048_v11  ;;  %v8269_v27 = vadd.f32 %v7965_v49, %v8095_v63 }
 0x3c8   : > { %v8097_v25 = vpop.eup %5583  ;;  %v3464_v40 = vadd.f32 1.0, %v8083_v2  ;;  %5597 = vpow2.f32 %v3218_v41  ;;  %v3236_v20 = vmul.f32 1.442695, %v3178_v4  ;;  %v8116_v59 = vpop.f32.mrb[45].mxu0  ;;  %v3325_v41 = vmul.f32 %v8026_v31, %v3324_v50 }
 0x3c9   : > { %v3256_v9 = vsel %vm8088_vm15, %v3253_v1, %v3250_v30  ;;  %v3266_v28 = vadd.f32 1.0, %v8097_v25  ;;  %v8109_v15 = vpop.f32.mrb[42].mxu1  ;;  %vm3327_vm7 = vcmp.lt.f32.partialorder %v3326_v54, 0.0004427343  ;;  %v3470_v32 = vand.u32 2147483647, %v8083_v2 }
 0x3ca   : > { %v5586_v61 = vpop.eup %5585  ;;  %v8114_v19 = vpop.f32.mrb[43].mxu1  ;;  %v3536_v56 = vmul.f32 0.01, %v3256_v9  ;;  %v3398_v9 = vand.u32 2147483647, %v8048_v11  ;;  %v8188_v44 = vmul.f32 100.0, %v8158_v16  ;;  %v8248_v7 = vadd.f32 %v7973_v3, %v8109_v15 }
 0x3cb   : > { %5599 = vlog2.f32 %v3266_v28  ;;  %v3322_v47 = vmul.f32 0.6931472, %v5586_v61  ;;  %v8121_v4 = vpop.f32.mrb[46].mxu0  ;;  %v3269_v28 = vmul.f32 -0.5, %v8097_v25  ;;  %vm8193_vm0 = vcmp.lt.f32.partialorder %v3470_v32, 0.0004427343 }
 0x3cc   : > { %v8118_v1 = vpop.eup %5587  ;;  %5601 = vlog2.f32 %v3464_v40  ;;  %v8127_v35 = vpop.f32.mrb[47].mxu0  ;;  %v3396_v40 = vadd.f32 1.0, %v3395_v12  ;;  %v8138_v61 = vsel %vm3120_vm3, %v7968_v33, %v3536_v56  ;;  %vm8167_vm9 = vcmp.lt.f32.partialorder %v3398_v9, 0.0004427343  ;;  %10181 = vst [vmem:[#allocation32_spill] sm:$0xff] %v8269_v27 }
 0x3cd   : > { %5603 = vpow2.f32 %v3190_v5  ;;  %v3338_v10 = vadd.f32 1.0, %v8118_v1  ;;  %v8125_v30 = vpop.f32.mrb[44].mxu1  ;;  %v3328_v13 = vsel %vm3327_vm7, %v3325_v41, %v3322_v47  ;;  %v3467_v5 = vmul.f32 -0.5, %v8083_v2  ;;  %10169 = vst [vmem:[#allocation16_spill] sm:$0xff] %v8138_v61 }
 0x3ce   : > { %v5590_v21 = vpop.eup %5589  ;;  %5605 = vpow2.f32 %v3236_v20  ;;  %v8130_v31 = vpop.f32.mrb[45].mxu1  ;;  %v3544_v50 = vmul.f32 0.01, %v3328_v13  ;;  %v8142_v47 = vadd.f32 %v7982_v60, %v8041_v48  ;;  %v8147_v13 = vadd.f32 %v7965_v49, %v8046_v6 }
 0x3cf   : > { %5607 = vlog2.f32 %v3338_v10  ;;  %v8133_v54 = vpop.eup %5591  ;;  %v3270_v20 = vadd.f32 1.0, %v3269_v28  ;;  %v3394_v33 = vmul.f32 0.6931472, %v5590_v21  ;;  %v3341_v41 = vmul.f32 -0.5, %v8118_v1 }
 0x3d0   : > { %10170 = vst [vmem:[#allocation12_spill] sm:$0xff] %v8142_v47  ;;  %v8149_v10 = vpop.eup %5593  ;;  %v8154_v12 = vsel %vm3128_vm6, %v7977_v26, %v3544_v50  ;;  %v8172_v26 = vmul.f32 100.0, %v8147_v13  ;;  %v3272_v21 = vand.u32 2147483647, %v8097_v25  ;;  %v3397_v62 = vmul.f32 %v8048_v11, %v3396_v40 }
 0x3d1   : > { %10171 = vst [vmem:[#allocation15_spill] sm:$0xff] %v8154_v12  ;;  %v8160_v48 = vpop.f32.mrb[46].mxu1  ;;  %v8162_v56 = vpop.eup %5595  ;;  %v3468_v6 = vadd.f32 1.0, %v3467_v5  ;;  %5609 = vpow2.f32 %v3206_v46  ;;  %v8184_v61 = vmul.f32 100.0, %v8142_v47  ;;  %v3271_v14 = vmul.f32 %v8097_v25, %v3270_v20 }
 0x3d2   : > { %v8174_v58 = vpop.f32.mrb[47].mxu1  ;;  %v3410_v50 = vadd.f32 1.0, %v8162_v56  ;;  %v8181_v9 = vpop.eup %5597  ;;  %v3156_v12 = vmin.f32 %v8172_v26, 20.0  ;;  %v3400_v11 = vsel %vm8167_vm9, %v3397_v62, %v3394_v33  ;;  %v3342_v47 = vadd.f32 1.0, %v3341_v41 }
 0x3d3   : > { %10174 = vst [vmem:[#allocation11_spill] sm:$0xff] %v8181_v9  ;;  %v3158_v9 = vmin.f32 %v8188_v44, 20.0  ;;  %vm8202_vm13 = vcmp.lt.f32.partialorder %v3272_v21, 0.0004427343  ;;  %v3344_v32 = vand.u32 2147483647, %v8118_v1  ;;  %v3469_v33 = vmul.f32 %v8083_v2, %v3468_v6 }
 0x3d4   : > { %5611 = vlog2.f32 %v3410_v50  ;;  %v3192_v38 = vmul.f32 1.442695, %v3156_v12  ;;  %v3552_v41 = vmul.f32 0.01, %v3400_v11  ;;  %v3413_v50 = vmul.f32 -0.5, %v8162_v56 }
 0x3d5   : > { %v5600_v36 = vpop.eup %5599  ;;  %v3196_v12 = vmul.f32 1.442695, %v3158_v9  ;;  %v3171_v21 = vmin.f32 %v8184_v61, 20.0  ;;  %v3343_v2 = vmul.f32 %v8118_v1, %v3342_v47  ;;  %vm3345_vm14 = vcmp.lt.f32.partialorder %v3344_v32, 0.0004427343 }
 0x3d6   : > { %v5602_v46 = vpop.eup %5601  ;;  %v3268_v5 = vmul.f32 0.6931472, %v5600_v36  ;;  %5613 = vpow2.f32 %v3192_v38  ;;  %v8220_v38 = vadd.f32 %v7991_v51, %v8063_v37  ;;  %v8225_v9 = vsel %vm3136_vm10, %v7986_v45, %v3552_v41 }
 0x3d7   : > { %v8200_v43 = vpop.eup %5603  ;;  %v3466_v20 = vmul.f32 0.6931472, %v5602_v46  ;;  %5615 = vpow2.f32 %v3196_v12  ;;  %v3414_v47 = vadd.f32 1.0, %v3413_v50  ;;  %v3416_v45 = vand.u32 2147483647, %v8162_v56 }
 0x3d8   : > { %10177 = vst [vmem:[#allocation23_spill] sm:$0xff] %v8200_v43  ;;  %v8208_v28 = vpop.eup %5605  ;;  %v3274_v36 = vsel %vm8202_vm13, %v3271_v14, %v3268_v5  ;;  %v3222_v23 = vmul.f32 1.442695, %v3171_v21  ;;  %v8280_v12 = vmul.f32 100.0, %v8248_v7  ;;  %v8291_v63 = vadd.f32 %v7982_v60, %v8101_v18 }
 0x3d9   : > { %v5608_v62 = vpop.eup %5607  ;;  %v3472_v24 = vsel %vm8193_vm0, %v3469_v33, %v3466_v20  ;;  %v3482_v46 = vadd.f32 1.0, %v8208_v28  ;;  %v3538_v25 = vmul.f32 0.01, %v3274_v36  ;;  %v10180_v20 = vmin.f32 %v8093_v42, 20.0 }
 0x3da   : > { %v3340_v43 = vmul.f32 0.6931472, %v5608_v62  ;;  %v3560_v6 = vmul.f32 0.01, %v3472_v24  ;;  %v8234_v24 = vadd.f32 %v7965_v49, %v8050_v22  ;;  %vm8284_vm4 = vcmp.lt.f32.partialorder %v3416_v45, 0.0004427343 }
 0x3db   : > { %5617 = vlog2.f32 %v3482_v46  ;;  %v8239_v40 = vpop.eup %5609  ;;  %v8253_v5 = vsel %vm3122_vm1, %v8001_v39, %v3538_v25  ;;  %v3234_v33 = vmul.f32 1.442695, %v10180_v20  ;;  %v3488_v21 = vand.u32 2147483647, %v8208_v28 }
 0x3dc   : > { %v3346_v14 = vsel %vm3345_vm14, %v3343_v2, %v3340_v43  ;;  %v8230_v11 = vsel %vm3144_vm11, %v7995_v29, %v3560_v6  ;;  %v3485_v43 = vmul.f32 -0.5, %v8208_v28  ;;  %v8244_v29 = vadd.f32 %v7973_v3, %v8071_v8 }
 0x3dd   : > { %v3546_v1 = vmul.f32 0.01, %v3346_v14  ;;  %v8263_v8 = vmul.f32 100.0, %v8220_v38  ;;  %v8277_v41 = vmul.f32 100.0, %v8234_v24  ;;  %5619 = vpow2.f32 %v3222_v23 }
 0x3de   : > { %v5612_v22 = vpop.eup %5611  ;;  %v8272_v39 = vmul.f32 100.0, %v8244_v29  ;;  %v3486_v17 = vadd.f32 1.0, %v3485_v43  ;;  %5621 = vpow2.f32 %v3234_v33  ;;  %v8301_v25 = vmul.f32 100.0, %v8269_v27 }
 0x3df   : > { %v8258_v32 = vsel %vm3130_vm12, %v8021_v34, %v3546_v1  ;;  %v3412_v36 = vmul.f32 0.6931472, %v5612_v22  ;;  %v3415_v34 = vmul.f32 %v8162_v56, %v3414_v47  ;;  %v3179_v6 = vmin.f32 %v8263_v8, 20.0 }
 0x3e0   : > { %v8282_v62 = vpop.eup %5613  ;;  %v3164_v49 = vmin.f32 %v8272_v39, 20.0  ;;  %10184 = vst [vmem:[#allocation20_spill] sm:$0xff] %v8301_v25  ;;  %v3166_v1 = vmin.f32 %v8280_v12, 20.0  ;;  %v3487_v47 = vmul.f32 %v8208_v28, %v3486_v17  ;;  %v3157_v43 = vmin.f32 %v8277_v41, 20.0 }
 0x3e1   : > { %v3418_v56 = vsel %vm8284_vm4, %v3415_v34, %v3412_v36  ;;  %v3284_v46 = vadd.f32 1.0, %v8282_v62  ;;  %v8297_v2 = vpop.eup %5615  ;;  %v8308_v45 = vadd.f32 %v7973_v3, %v8075_v53  ;;  %v8312_v33 = vmul.f32 100.0, %v8291_v63 }
 0x3e2   : > { %v3208_v14 = vmul.f32 1.442695, %v3164_v49  ;;  %v3554_v23 = vmul.f32 0.01, %v3418_v56  ;;  %v3302_v20 = vadd.f32 1.0, %v8297_v2  ;;  %vm3146_vm5 = vcmp.gt.f32.partialorder %v8079_v57, 20.0 }
 0x3e3   : > { %5623 = vlog2.f32 %v3284_v46  ;;  %10185 = vst [vmem:[#allocation33_spill] sm:$0xff] %v8308_v45  ;;  %vm3489_vm15 = vcmp.lt.f32.partialorder %v3488_v21, 0.0004427343  ;;  %v3212_v36 = vmul.f32 1.442695, %v3166_v1  ;;  %v3159_v17 = vmin.f32 %v8301_v25, 20.0 }
 0x3e4   : > { %5625 = vpow2.f32 %v3208_v14  ;;  %v3238_v34 = vmul.f32 1.442695, %v3179_v6  ;;  %v3287_v53 = vmul.f32 -0.5, %v8282_v62  ;;  %v3194_v49 = vmul.f32 1.442695, %v3157_v43 }
 0x3e5   : > { %v5618_v18 = vpop.eup %5617  ;;  %5627 = vlog2.f32 %v3302_v20  ;;  %v8320_v56 = vsel %vm3138_vm2, %v8044_v55, %v3554_v23  ;;  %v8323_v46 = vmul.f32 100.0, %v8308_v45  ;;  %v8327_v21 = vadd.f32 %v7973_v3, %v8114_v19 }
 0x3e6   : > { %v3484_v22 = vmul.f32 0.6931472, %v5618_v18  ;;  %5629 = vpow2.f32 %v3212_v36  ;;  %v3172_v6 = vmin.f32 %v8312_v33, 20.0  ;;  %v3305_v1 = vmul.f32 -0.5, %v8297_v2 }
 0x3e7   : > { %10186 = vst [vmem:[#allocation28_spill] sm:$0xff] %v8327_v21  ;;  %v8338_v55 = vadd.f32 %v7982_v60, %v8125_v30  ;;  %v8342_v0 = vadd.f32 %v7982_v60, %v8116_v59  ;;  %v8344_v18 = vpop.eup %5619  ;;  %v3290_v19 = vand.u32 2147483647, %v8282_v62  ;;  %v3198_v57 = vmul.f32 1.442695, %v3159_v17 }
 0x3e8   : > { %v3490_v28 = vsel %vm3489_vm15, %v3487_v47, %v3484_v22  ;;  %v8349_v47 = vpop.eup %5621  ;;  %5631 = vpow2.f32 %v3238_v34  ;;  %v3288_v43 = vadd.f32 1.0, %v3287_v53  ;;  %v3165_v59 = vmin.f32 %v8323_v46, 20.0 }
 0x3e9   : > { %v3562_v50 = vmul.f32 0.01, %v3490_v28  ;;  %10187 = vst [vmem:[#allocation30_spill] sm:$0xff] %v8342_v0  ;;  %v8352_v30 = vmul.f32 100.0, %v8338_v55  ;;  %5633 = vpow2.f32 %v3194_v49  ;;  %v8356_v23 = vmul.f32 100.0, %v8327_v21 }
 0x3ea   : > { %v8360_v22 = vadd.f32 %v7982_v60, %v8130_v31  ;;  %v3306_v36 = vadd.f32 1.0, %v3305_v1  ;;  %v8364_v34 = vmul.f32 100.0, %v8342_v0  ;;  %vm8366_vm3 = vcmp.lt.f32.partialorder %v3290_v19, 0.0004427343 }
 0x3eb   : > { %v8333_v14 = vsel %vm3146_vm5, %v8066_v52, %v3562_v50  ;;  %v3224_v52 = vmul.f32 1.442695, %v3172_v6  ;;  %10188 = vst [vmem:[#allocation21_spill] sm:$0xff] %v8356_v23  ;;  %v3174_v28 = vmin.f32 %v8352_v30, 20.0  ;;  %v3308_v50 = vand.u32 2147483647, %v8297_v2 }
 0x3ec   : > { %10189 = vst [vmem:[#allocation29_spill] sm:$0xff] %v8360_v22  ;;  %10190 = vst [vmem:[#allocation34_spill] sm:$0xff] %v8364_v34  ;;  %v8373_v53 = vadd.f32 %v7991_v51, %v8121_v4  ;;  %v3289_v49 = vmul.f32 %v8282_v62, %v3288_v43  ;;  %v8378_v1 = vadd.f32 %v7991_v51, %v8160_v48  ;;  %v3210_v3 = vmul.f32 1.442695, %v3165_v59 }
 0x3ed   : > { %v5624_v20 = vpop.eup %5623  ;;  %5635 = vpow2.f32 %v3224_v52  ;;  %v3228_v6 = vmul.f32 1.442695, %v3174_v28  ;;  %v3167_v37 = vmin.f32 %v8356_v23, 20.0  ;;  %v3307_v0 = vmul.f32 %v8297_v2, %v3306_v36 }
 0x3ee   : > { %5637 = vpow2.f32 %v3198_v57  ;;  %v5626_v60 = vpop.eup %5625  ;;  %v3286_v31 = vmul.f32 0.6931472, %v5624_v20  ;;  %v8382_v57 = vmul.f32 100.0, %v8360_v22  ;;  %v3173_v62 = vmin.f32 %v8364_v34, 20.0 }
 0x3ef   : > { %v5628_v19 = vpop.eup %5627  ;;  %v3356_v52 = vadd.f32 1.0, %v5626_v60  ;;  %5639 = vpow2.f32 %v3228_v6  ;;  %vm3124_vm6 = vcmp.gt.f32.partialorder %v8172_v26, 20.0  ;;  %v8388_v43 = vmul.f32 100.0, %v8373_v53 }
 0x3f0   : > { %10193 = vst [vmem:[#allocation36_spill] sm:$0xff] %v8382_v57  ;;  %v5630_v15 = vpop.eup %5629  ;;  %v3304_v4 = vmul.f32 0.6931472, %v5628_v19  ;;  %v8392_v59 = vadd.f32 %v7991_v51, %v8127_v35  ;;  %v3292_v20 = vsel %vm8366_vm3, %v3289_v49, %v3286_v31  ;;  %vm3126_vm7 = vcmp.gt.f32.partialorder %v8188_v44, 20.0 }
 0x3f1   : > { %5641 = vlog2.f32 %v3356_v52  ;;  %v3374_v48 = vadd.f32 1.0, %v5630_v15  ;;  %vm8397_vm9 = vcmp.lt.f32.partialorder %v3308_v50, 0.0004427343  ;;  %v3359_v36 = vmul.f32 -0.5, %v5626_v60 }
 0x3f2   : > { %10194 = vst [vmem:[#allocation38_spill] sm:$0xff] %v8392_v59  ;;  %v8402_v28 = vmul.f32 100.0, %v8378_v1  ;;  %v3310_v6 = vsel %vm8397_vm9, %v3307_v0, %v3304_v4  ;;  %v3214_v19 = vmul.f32 1.442695, %v3167_v37  ;;  %v3175_v35 = vmin.f32 %v8382_v57, 20.0  ;;  %v8407_v52 = vpop.eup %5631 }
 0x3f3   : > { %5643 = vlog2.f32 %v3374_v48  ;;  %v3362_v17 = vand.u32 2147483647, %v5626_v60  ;;  %v3377_v31 = vmul.f32 -0.5, %v5630_v15  ;;  %v3226_v50 = vmul.f32 1.442695, %v3173_v62  ;;  %v8409_v49 = vpop.eup %5633 }
 0x3f4   : > { %5645 = vpow2.f32 %v3210_v3  ;;  %v3540_v22 = vmul.f32 0.01, %v3292_v20  ;;  %v3180_v34 = vmin.f32 %v8388_v43, 20.0  ;;  %v8413_v21 = vmul.f32 100.0, %v8392_v59 }
 0x3f5   : > { %v8417_v0 = vadd.f32 %v7991_v51, %v8174_v58  ;;  %v3542_v4 = vmul.f32 0.01, %v3310_v6  ;;  %v3360_v48 = vadd.f32 1.0, %v3359_v36  ;;  %v3380_v2 = vand.u32 2147483647, %v5630_v15 }
 0x3f6   : > { %10197 = vst [vmem:[#allocation27_spill] sm:$0xff] %v8413_v21  ;;  %v3182_v57 = vmin.f32 %v8402_v28, 20.0  ;;  %5647 = vpow2.f32 %v3214_v19  ;;  %v3230_v20 = vmul.f32 1.442695, %v3175_v35  ;;  %v3240_v27 = vmul.f32 1.442695, %v3180_v34 }
 0x3f7   : > { %10198 = vst [vmem:[#allocation37_spill] sm:$0xff] %v8417_v0  ;;  %v5636_v37 = vpop.eup %5635  ;;  %vm3132_vm10 = vcmp.gt.f32.partialorder %v8272_v39, 20.0  ;;  %vm8423_vm11 = vcmp.lt.f32.partialorder %v3362_v17, 0.0004427343  ;;  %v3378_v51 = vadd.f32 1.0, %v3377_v31  ;;  %5649 = vpow2.f32 %v3226_v50 }
 0x3f8   : > { %v8420_v3 = vpop.eup %5637  ;;  %v3428_v62 = vadd.f32 1.0, %v5636_v37  ;;  %v3244_v58 = vmul.f32 1.442695, %v3182_v57  ;;  %v3431_v36 = vmul.f32 -0.5, %v5636_v37  ;;  %v3434_v6 = vand.u32 2147483647, %v5636_v37 }
 0x3f9   : > { %v3181_v23 = vmin.f32 %v8413_v21, 20.0  ;;  %v8428_v25 = vpop.eup %5639  ;;  %v8433_v34 = vsel %vm3124_vm6, %v8147_v13, %v3540_v22  ;;  %v3361_v19 = vmul.f32 %v5626_v60, %v3360_v48  ;;  %vm3134_vm0 = vcmp.gt.f32.partialorder %v8280_v12, 20.0 }
 0x3fa   : > { %5651 = vlog2.f32 %v3428_v62  ;;  %10201 = vst [vmem:[#allocation22_spill] sm:$0xff] %v8433_v34  ;;  %v8437_v35 = vmul.f32 100.0, %v8417_v0  ;;  %v8442_v17 = vsel %vm3126_vm7, %v8158_v16, %v3542_v4  ;;  %vm8444_vm1 = vcmp.lt.f32.partialorder %v3380_v2, 0.0004427343 }
 0x3fb   : > { %5653 = vpow2.f32 %v3240_v27  ;;  %v5642_v57 = vpop.eup %5641  ;;  %10203 = vst [vmem:[#allocation8_spill] sm:$0xff] %v8442_v17  ;;  %v3446_v13 = vadd.f32 1.0, %v8428_v25  ;;  %v3379_v22 = vmul.f32 %v5630_v15, %v3378_v51  ;;  %v3257_v27 = vadd.f32 1.0, %v8133_v54 }
 0x3fc   : > { %10202 = vst [vmem:[#allocation35_spill] sm:$0xff] %v8437_v35  ;;  %5655 = vpow2.f32 %v3230_v20  ;;  %v3358_v26 = vmul.f32 0.6931472, %v5642_v57  ;;  %v3432_v50 = vadd.f32 1.0, %v3431_v36  ;;  %vm8450_vm12 = vcmp.lt.f32.partialorder %v3434_v6, 0.0004427343 }
 0x3fd   : > { %5657 = vpow2.f32 %v3244_v58  ;;  %v5644_v60 = vpop.eup %5643  ;;  %v3242_v44 = vmul.f32 1.442695, %v3181_v23  ;;  %v3183_v62 = vmin.f32 %v8437_v35, 20.0  ;;  %v3260_v15 = vmul.f32 -0.5, %v8133_v54 }
 0x3fe   : > { %5659 = vlog2.f32 %v3446_v13  ;;  %v8454_v16 = vpop.eup %5645  ;;  %v3364_v4 = vsel %vm8423_vm11, %v3361_v19, %v3358_v26  ;;  %v3376_v2 = vmul.f32 0.6931472, %v5644_v60  ;;  %v3449_v51 = vmul.f32 -0.5, %v8428_v25  ;;  %v10209_v26 = vld [vmem:[#allocation23_spill] sm:$0xff] }
 0x3ff   : > { %v3548_v20 = vmul.f32 0.01, %v3364_v4  ;;  %v3263_v58 = vand.u32 2147483647, %v8133_v54  ;;  %v3329_v36 = vadd.f32 1.0, %v8149_v10  ;;  %5661 = vlog2.f32 %v3257_v27 }
 0x400   : > { %v3382_v23 = vsel %vm8444_vm1, %v3379_v22, %v3376_v2  ;;  %v3452_v6 = vand.u32 2147483647, %v8428_v25  ;;  %v3332_v59 = vmul.f32 -0.5, %v8149_v10  ;;  %v8467_v19 = vpop.eup %5647  ;;  %v3275_v60 = vadd.f32 1.0, %v10209_v26 }
 0x401   : > { %v8472_v57 = vsel %vm3132_vm10, %v8244_v29, %v3548_v20  ;;  %v3550_v13 = vmul.f32 0.01, %v3382_v23  ;;  %5663 = vlog2.f32 %v3329_v36  ;;  %v8475_v4 = vpop.eup %5649  ;;  %vm3140_vm13 = vcmp.gt.f32.partialorder %v8312_v33, 20.0  ;;  %v10224_v33 = vld [vmem:[#allocation14_spill] sm:$0xff] }
 0x402   : > { %10208 = vst [vmem:[#allocation7_spill] sm:$0xff] %v8472_v57  ;;  %v3433_v22 = vmul.f32 %v5636_v37, %v3432_v50  ;;  %v8480_v27 = vmul.f32 1.442695, %v3183_v62  ;;  %v3278_v2 = vmul.f32 -0.5, %v10209_v26  ;;  %v3261_v39 = vadd.f32 1.0, %v3260_v15 }
 0x403   : > { %v8486_v29 = vsel %vm3134_vm0, %v8248_v7, %v3550_v13  ;;  %5665 = vlog2.f32 %v3275_v60  ;;  %v3347_v20 = vadd.f32 1.0, %v8239_v40  ;;  %v3450_v37 = vadd.f32 1.0, %v3449_v51 }
 0x404   : > { %v5652_v0 = vpop.eup %5651  ;;  %10210 = vst [vmem:[#allocation23_spill] sm:$0xff] %v8486_v29  ;;  %vm8491_vm14 = vcmp.lt.f32.partialorder %v3452_v6, 0.0004427343  ;;  %v3333_v7 = vadd.f32 1.0, %v3332_v59  ;;  %v3335_v15 = vand.u32 2147483647, %v8149_v10 }
 0x405   : > { %v5654_v36 = vpop.eup %5653  ;;  %v3430_v31 = vmul.f32 0.6931472, %v5652_v0  ;;  %v3279_v21 = vadd.f32 1.0, %v3278_v2  ;;  %v3281_v0 = vand.u32 2147483647, %v10209_v26  ;;  %5667 = vlog2.f32 %v3347_v20  ;;  %v10215_v59 = vld [vmem:[#allocation18_spill] sm:$0xff] }
 0x406   : > { %v8495_v62 = vpop.eup %5655  ;;  %v3500_v35 = vadd.f32 1.0, %v5654_v36  ;;  %v3503_v12 = vmul.f32 -0.5, %v5654_v36  ;;  %v3506_v23 = vand.u32 2147483647, %v5654_v36  ;;  %vm8503_vm2 = vcmp.lt.f32.partialorder %v3263_v58, 0.0004427343 }
 0x407   : > { %v8498_v13 = vpop.eup %5657  ;;  %v3436_v60 = vsel %vm8450_vm12, %v3433_v22, %v3430_v31  ;;  %vm3121_vm4 = vcmp.gt.f32.partialorder %v10215_v59, 20.0  ;;  %v10216_v29 = vld [vmem:[#allocation31_spill] sm:$0xff]  ;;  %v3350_v31 = vmul.f32 -0.5, %v8239_v40  ;;  %v3451_v22 = vmul.f32 %v8428_v25, %v3450_v37 }
 0x408   : > { %v5660_v51 = vpop.eup %5659  ;;  %v3556_v6 = vmul.f32 0.01, %v3436_v60  ;;  %5669 = vlog2.f32 %v3500_v35  ;;  %vm3129_vm5 = vcmp.gt.f32.partialorder %v10216_v29, 20.0  ;;  %v3518_v48 = vadd.f32 1.0, %v8498_v13 }
 0x409   : > { %v3448_v34 = vmul.f32 0.6931472, %v5660_v51  ;;  %5671 = vpow2.f32 %v3242_v44  ;;  %v3504_v2 = vadd.f32 1.0, %v3503_v12  ;;  %v3262_v35 = vmul.f32 %v8133_v54, %v3261_v39  ;;  %v5662_v20 = vpop.eup %5661  ;;  %v10234_v39 = vld [vmem:[#allocation26_spill] sm:$0xff] }
 0x40a   : > { %vm8513_vm15 = vcmp.lt.f32.partialorder %v3335_v15, 0.0004427343  ;;  %vm3142_vm3 = vcmp.gt.f32.partialorder %v8352_v30, 20.0  ;;  %5673 = vlog2.f32 %v3518_v48  ;;  %v3334_v60 = vmul.f32 %v8149_v10, %v3333_v7  ;;  %v10223_v15 = vld [vmem:[#allocation11_spill] sm:$0xff]  ;;  %v10231_v30 = vld [vmem:[#allocation16_spill] sm:$0xff] }
 0x40b   : > { %v3280_v51 = vmul.f32 %v10209_v26, %v3279_v21  ;;  %vm8520_vm6 = vcmp.lt.f32.partialorder %v3281_v0, 0.0004427343  ;;  %v5664_v25 = vpop.eup %5663  ;;  %v8527_v54 = vsel %vm3140_vm13, %v8291_v63, %v3556_v6  ;;  %vm8529_vm7 = vcmp.lt.f32.partialorder %v3506_v23, 0.0004427343  ;;  %v10225_v63 = vld [vmem:[#allocation25_spill] sm:$0xff] }
 0x40c   : > { %v3521_v37 = vmul.f32 -0.5, %v8498_v13  ;;  %v3524_v10 = vand.u32 2147483647, %v8498_v13  ;;  %v3259_v12 = vmul.f32 0.6931472, %v5662_v20  ;;  %v3454_v21 = vsel %vm8491_vm14, %v3451_v22, %v3448_v34 }
 0x40d   : > { %v3331_v26 = vmul.f32 0.6931472, %v5664_v25  ;;  %v3351_v7 = vadd.f32 1.0, %v3350_v31  ;;  %v3401_v0 = vadd.f32 1.0, %v10223_v15  ;;  %v5666_v48 = vpop.eup %5665  ;;  %vm3123_vm9 = vcmp.gt.f32.partialorder %v10224_v33, 20.0 }
 0x40e   : > { %vm3131_vm10 = vcmp.gt.f32.partialorder %v10225_v63, 20.0  ;;  %v3505_v23 = vmul.f32 %v5654_v36, %v3504_v2  ;;  %v3265_v6 = vsel %vm8503_vm2, %v3262_v35, %v3259_v12  ;;  %v3353_v57 = vand.u32 2147483647, %v8239_v40  ;;  %v10228_v12 = vld [vmem:[#allocation9_spill] sm:$0xff] }
 0x40f   : > { %v3473_v20 = vadd.f32 1.0, %v8349_v47  ;;  %vm3148_vm11 = vcmp.gt.f32.partialorder %v8388_v43, 20.0  ;;  %v3337_v34 = vsel %vm8513_vm15, %v3334_v60, %v3331_v26  ;;  %v3537_v50 = vmul.f32 0.01, %v3265_v6  ;;  %v5668_v36 = vpop.eup %5667 }
 0x410   : > { %v3277_v31 = vmul.f32 0.6931472, %v5666_v48  ;;  %5675 = vlog2.f32 %v3401_v0  ;;  %v3558_v22 = vmul.f32 0.01, %v3454_v21  ;;  %v3522_v25 = vadd.f32 1.0, %v3521_v37  ;;  %v10229_v21 = vld [vmem:[#allocation10_spill] sm:$0xff] }
 0x411   : > { %v3545_v45 = vmul.f32 0.01, %v3337_v34  ;;  %5677 = vlog2.f32 %v3473_v20  ;;  %vm8547_vm0 = vcmp.lt.f32.partialorder %v3524_v10, 0.0004427343  ;;  %v3352_v35 = vmul.f32 %v8239_v40, %v3351_v7 }
 0x412   : > { %v3283_v2 = vsel %vm8520_vm6, %v3280_v51, %v3277_v31  ;;  %v3404_v58 = vmul.f32 -0.5, %v10223_v15  ;;  %v5670_v60 = vpop.eup %5669  ;;  %vm3150_vm1 = vcmp.gt.f32.partialorder %v8402_v28, 20.0  ;;  %v3569_v37 = vsel %vm3121_vm4, %v10228_v12, %v3537_v50 }
 0x413   : > { %v3577_v10 = vsel %vm3129_vm5, %v10229_v21, %v3545_v45  ;;  %v3349_v26 = vmul.f32 0.6931472, %v5668_v36  ;;  %vm3354_vm12 = vcmp.lt.f32.partialorder %v3353_v57, 0.0004427343  ;;  %v8562_v0 = vpop.eup %5671  ;;  %v3502_v51 = vmul.f32 0.6931472, %v5670_v60 }
 0x414   : > { %v5169_v44 = vpack.c.bf16 %v3577_v10, %v3569_v37  ;;  %v3539_v40 = vmul.f32 0.01, %v3283_v2  ;;  %v3476_v7 = vmul.f32 -0.5, %v8349_v47  ;;  %v8568_v48 = vsel %vm3142_vm3, %v8338_v55, %v3558_v22  ;;  %v5674_v45 = vpop.eup %5673  ;;  %v10230_v2 = vld [vmem:[#allocation15_spill] sm:$0xff] }
 0x415   : > { %v3523_v59 = vmul.f32 %v8498_v13, %v3522_v25  ;;  %v3355_v6 = vsel %vm3354_vm12, %v3352_v35, %v3349_v26  ;;  %v3419_v29 = vadd.f32 1.0, %v8344_v18  ;;  %v3508_v57 = vsel %vm8529_vm7, %v3505_v23, %v3502_v51  ;;  %v10233_v22 = vld [vmem:[#allocation19_spill] sm:$0xff] }
 0x416   : > { %5170 = vmatprep.subr.bf16.mxu0 %v5169_v44  ;;  %v3547_v20 = vmul.f32 0.01, %v3355_v6  ;;  %v3405_v34 = vadd.f32 1.0, %v3404_v58  ;;  %v3407_v50 = vand.u32 2147483647, %v10223_v15  ;;  %v10232_v55 = vpack.c.bf16 %v10230_v2, %v10231_v30  ;;  %v10240_v30 = vld [vmem:[#allocation13_spill] sm:$0xff] }
 0x417   : > { %v3564_v31 = vmul.f32 0.01, %v3508_v57  ;;  %v3520_v36 = vmul.f32 0.6931472, %v5674_v45  ;;  %v3479_v13 = vand.u32 2147483647, %v8349_v47  ;;  %5679 = vlog2.f32 %v3419_v29 }
 0x418   : > { %5172 = vmatpush1.bf16.msra.mxu0 %v10232_v55  ;;  %v3571_v25 = vsel %vm3123_vm9, %v10233_v22, %v3539_v40  ;;  %v3579_v23 = vsel %vm3131_vm10, %v10234_v39, %v3547_v20  ;;  %v3477_v35 = vadd.f32 1.0, %v3476_v7  ;;  %v3491_v58 = vadd.f32 1.0, %v8407_v52  ;;  %v10238_v57 = vld [vmem:[#allocation17_spill] sm:$0xff]  ;;  %v8650_v26 = vld [vmem:[%s9757_s8] sm:$0xff] }
 0x419   : > { %v8589_v60 = vsel %vm3148_vm11, %v8373_v53, %v3564_v31  ;;  %v3526_v12 = vsel %vm8547_vm0, %v3523_v59, %v3520_v36  ;;  %v5177_v37 = vpack.c.bf16 %v3579_v23, %v3571_v25  ;;  %v3422_v21 = vmul.f32 -0.5, %v8344_v18 }
 0x41a   : > { %v5676_v33 = vpop.eup %5675  ;;  %v5191_v10 = vpack.c.bf16 %v8589_v60, %v8527_v54  ;;  %v3566_v63 = vmul.f32 0.01, %v3526_v12  ;;  %vm8596_vm13 = vcmp.lt.f32.partialorder %v3407_v50, 0.0004427343  ;;  %5681 = vlog2.f32 %v3491_v58  ;;  %v8814_v54 = vpop.permute.xlu0 %3610 }
 0x41b   : > { %v5678_v51 = vpop.eup %5677  ;;  %5178 = vmatprep.subr.bf16.mxu1 %v5177_v37  ;;  %v3403_v53 = vmul.f32 0.6931472, %v5676_v33  ;;  %v3406_v43 = vmul.f32 %v10223_v15, %v3405_v34  ;;  %v3494_v17 = vmul.f32 -0.5, %v8407_v52  ;;  %v3293_v44 = vadd.f32 1.0, %v8409_v49 }
 0x41c   : > { %v8606_v40 = vsel %vm3150_vm1, %v8378_v1, %v3566_v63  ;;  %v10237_v7 = vpack.c.bf16 %v8258_v32, %v8253_v5  ;;  %v3475_v59 = vmul.f32 0.6931472, %v5678_v51  ;;  %v3478_v6 = vmul.f32 %v8349_v47, %v3477_v35 }
 0x41d   : > { %vm3480_vm14 = vcmp.lt.f32.partialorder %v3479_v13, 0.0004427343  ;;  %v5199_v15 = vpack.c.bf16 %v8606_v40, %v8568_v48  ;;  %v3409_v29 = vsel %vm8596_vm13, %v3406_v43, %v3403_v53  ;;  %v3423_v45 = vadd.f32 1.0, %v3422_v21 }
 0x41e   : > { %5180 = vmatpush1.bf16.msra.mxu1 %v10237_v7  ;;  %5683 = vlog2.f32 %v3293_v44  ;;  %vm3137_vm2 = vcmp.gt.f32.partialorder %v10238_v57, 20.0  ;;  %vm3145_vm4 = vcmp.gt.f32.partialorder %v8093_v42, 20.0  ;;  %v3481_v1 = vsel %vm3480_vm14, %v3478_v6, %v3475_v59  ;;  %v10239_v42 = vld [vmem:[#allocation24_spill] sm:$0xff] }
 0x41f   : > { %v3553_v28 = vmul.f32 0.01, %v3409_v29  ;;  %v3561_v5 = vmul.f32 0.01, %v3481_v1  ;;  %v3425_v32 = vand.u32 2147483647, %v8344_v18  ;;  %5685 = vpow2.f32 %v8480_v27 }
 0x420   : > { %v3495_v20 = vadd.f32 1.0, %v3494_v17  ;;  %v3365_v47 = vadd.f32 1.0, %v8454_v16  ;;  %v3497_v34 = vand.u32 2147483647, %v8407_v52  ;;  %v3296_v50 = vmul.f32 -0.5, %v8409_v49  ;;  %v10257_v17 = vld [vmem:[#allocation33_spill] sm:$0xff] }
 0x421   : > { %v3311_v31 = vadd.f32 1.0, %v8420_v3  ;;  %v5680_v36 = vpop.eup %5679  ;;  %vm3139_vm5 = vcmp.gt.f32.partialorder %v8184_v61, 20.0  ;;  %vm3147_vm15 = vcmp.gt.f32.partialorder %v8263_v8, 20.0  ;;  %v3585_v2 = vsel %vm3137_vm2, %v10239_v42, %v3553_v28 }
 0x422   : > { %v3593_v55 = vsel %vm3145_vm4, %v10240_v30, %v3561_v5  ;;  %v3424_v13 = vmul.f32 %v8344_v18, %v3423_v45  ;;  %5687 = vlog2.f32 %v3365_v47  ;;  %v3421_v27 = vmul.f32 0.6931472, %v5680_v36  ;;  %v8673_v5 = vld [vmem:[%s9757_s8 + $0x8] sm:$0xff] }
 0x423   : > { %v5173_v22 = vpack.c.bf16 %v3593_v55, %v3585_v2  ;;  %v3299_v25 = vand.u32 2147483647, %v8409_v49  ;;  %5689 = vlog2.f32 %v3311_v31  ;;  %vm8630_vm3 = vcmp.lt.f32.partialorder %v3425_v32, 0.0004427343 }
 0x424   : > { %v3496_v23 = vmul.f32 %v8407_v52, %v3495_v20  ;;  %v3368_v35 = vmul.f32 -0.5, %v8454_v16  ;;  %v3383_v58 = vadd.f32 1.0, %v8467_v19  ;;  %v5682_v12 = vpop.eup %5681  ;;  %v3427_v18 = vsel %vm8630_vm3, %v3424_v13, %v3421_v27 }
 0x425   : > { %5174 = vmatprep.subr.bf16.mxu0 %v5173_v22  ;;  %vm8639_vm6 = vcmp.lt.f32.partialorder %v3497_v34, 0.0004427343  ;;  %v3297_v21 = vadd.f32 1.0, %v3296_v50  ;;  %v3437_v33 = vadd.f32 1.0, %v8475_v4  ;;  %v3493_v63 = vmul.f32 0.6931472, %v5682_v12 }
 0x426   : > { %v10245_v52 = vpack.c.bf16 %v8230_v11, %v8225_v9  ;;  %v3314_v51 = vmul.f32 -0.5, %v8420_v3  ;;  %5691 = vlog2.f32 %v3383_v58  ;;  %v3386_v53 = vmul.f32 -0.5, %v8467_v19  ;;  %v10249_v50 = vld [vmem:[#allocation12_spill] sm:$0xff] }
 0x427   : > { %v3555_v43 = vmul.f32 0.01, %v3427_v18  ;;  %vm8654_vm7 = vcmp.lt.f32.partialorder %v3299_v25, 0.0004427343  ;;  %v3371_v44 = vand.u32 2147483647, %v8454_v16  ;;  %5693 = vlog2.f32 %v3437_v33 }
 0x428   : > { %5176 = vmatpush1.bf16.msra.mxu0 %v10245_v52  ;;  %v5684_v9 = vpop.eup %5683  ;;  %v3499_v11 = vsel %vm8639_vm6, %v3496_v23, %v3493_v63  ;;  %v3369_v7 = vadd.f32 1.0, %v3368_v35  ;;  %v3317_v59 = vand.u32 2147483647, %v8420_v3  ;;  %v3509_v6 = vadd.f32 1.0, %v8562_v0  ;;  %v8704_v23 = vld [vmem:[%s9757_s8 + $0x10] sm:$0xff] }
 0x429   : > { %vm3125_vm9 = vcmp.gt.f32.partialorder %v8277_v41, 20.0  ;;  %vm3133_vm10 = vcmp.gt.f32.partialorder %v8323_v46, 20.0  ;;  %v3563_v29 = vmul.f32 0.01, %v3499_v11  ;;  %v3295_v45 = vmul.f32 0.6931472, %v5684_v9  ;;  %v8676_v34 = vpop.eup %5685 }
 0x42a   : > { %v3298_v57 = vmul.f32 %v8409_v49, %v3297_v21  ;;  %v3440_v1 = vmul.f32 -0.5, %v8475_v4  ;;  %v10248_v28 = vmov 0.0   ;;  %v3315_v32 = vadd.f32 1.0, %v3314_v51 }
 0x42b   : > { %5064 = vmatmul.mubr.msk.f32.vlgmr.msra.gmra.mrb[48].mxu0 %vm1381_vm8, %v8650_v26  ;;  %v3387_v20 = vadd.f32 1.0, %v3386_v53  ;;  %v3389_v47 = vand.u32 2147483647, %v8467_v19  ;;  %5695 = vlog2.f32 %v3509_v6  ;;  %v3587_v49 = vsel %vm3139_vm5, %v10249_v50, %v3555_v43  ;;  %v10260_v6 = vld [vmem:[#allocation20_spill] sm:$0xff] }
 0x42c   : > { %3710 = vmatprep.mubr.f32.mxu0 %v10248_v28  ;;  %v3595_v31 = vsel %vm3147_vm15, %v8220_v38, %v3563_v29  ;;  %v3301_v36 = vsel %vm8654_vm7, %v3298_v57, %v3295_v45  ;;  %v3455_v42 = vadd.f32 1.0, %v8495_v62  ;;  %v5688_v2 = vpop.eup %5687  ;;  %v3370_v55 = vmul.f32 %v8454_v16, %v3369_v7  ;;  %v10262_v50 = vld [vmem:[#allocation32_spill] sm:$0xff] }
 0x42d   : > { %v5181_v30 = vpack.c.bf16 %v3595_v31, %v3587_v49  ;;  %vm8688_vm11 = vcmp.lt.f32.partialorder %v3371_v44, 0.0004427343  ;;  %vm8692_vm0 = vcmp.lt.f32.partialorder %v3317_v59, 0.0004427343  ;;  %v5690_v22 = vpop.eup %5689  ;;  %v3367_v38 = vmul.f32 0.6931472, %v5688_v2 }
 0x42e   : > { %v3441_v8 = vadd.f32 1.0, %v3440_v1  ;;  %v3512_v27 = vmul.f32 -0.5, %v8562_v0  ;;  %5697 = vlog2.f32 %v3455_v42  ;;  %v3541_v25 = vmul.f32 0.01, %v3301_v36  ;;  %v10261_v1 = vld [vmem:[#allocation21_spill] sm:$0xff]  ;;  %v10263_v31 = vld [vmem:[#allocation28_spill] sm:$0xff] }
 0x42f   : > { %5065 = vmatmul.mubr.msk.f32.gmra.mrb[50].mxu0 %vm1381_vm8, %v8673_v5  ;;  %5182 = vmatprep.subr.bf16.mxu1 %v5181_v30  ;;  %v3313_v16 = vmul.f32 0.6931472, %v5690_v22  ;;  %v3316_v39 = vmul.f32 %v8420_v3, %v3315_v32  ;;  %v3527_v35 = vadd.f32 1.0, %v8676_v34  ;;  %v10254_v58 = vpack.c.bf16 %v8333_v14, %v8320_v56  ;;  %v10264_v42 = vld [vmem:[#allocation7_spill] sm:$0xff]  ;;  %v10265_v2 = vld [vmem:[#allocation22_spill] sm:$0xff] }
 0x430   : > { %3716 = vmatprep.mubr.f32.mxu0 %v10248_v28  ;;  %v3373_v12 = vsel %vm8688_vm11, %v3370_v55, %v3367_v38  ;;  %v3388_v18 = vmul.f32 %v8467_v19, %v3387_v20  ;;  %vm8713_vm1 = vcmp.lt.f32.partialorder %v3389_v47, 0.0004427343  ;;  %v3443_v37 = vand.u32 2147483647, %v8475_v4  ;;  %v5692_v21 = vpop.eup %5691  ;;  %v10272_v3 = vld [vmem:[#allocation30_spill] sm:$0xff] }
 0x431   : > { %5184 = vmatpush1.bf16.msra.mxu1 %v10254_v58  ;;  %v3549_v33 = vmul.f32 0.01, %v3373_v12  ;;  %v3319_v63 = vsel %vm8692_vm0, %v3316_v39, %v3313_v16  ;;  %v3458_v52 = vmul.f32 -0.5, %v8495_v62  ;;  %5699 = vlog2.f32 %v3527_v35  ;;  %v5694_v56 = vpop.eup %5693  ;;  %v10267_v16 = vld [vmem:[#allocation34_spill] sm:$0xff]  ;;  %v10268_v39 = vld [vmem:[#allocation27_spill] sm:$0xff]  ;;  %v10270_v12 = vld [vmem:[#allocation8_spill] sm:$0xff] }
 0x432   : > { %v3385_v14 = vmul.f32 0.6931472, %v5692_v21  ;;  %v3442_v19 = vmul.f32 %v8475_v4, %v3441_v8  ;;  %v3513_v51 = vadd.f32 1.0, %v3512_v27  ;;  %v3515_v53 = vand.u32 2147483647, %v8562_v0  ;;  %v8737_v4 = vld [vmem:[%s9757_s8 + $0x18] sm:$0xff] }
 0x433   : > { %5066 = vmatmul.mubr.msk.f32.gmra.mrb[52].mxu0 %vm1381_vm8, %v8704_v23  ;;  %v3573_v43 = vsel %vm3125_vm9, %v8234_v24, %v3541_v25  ;;  %v3581_v44 = vsel %vm3133_vm10, %v10257_v17, %v3549_v33  ;;  %v3543_v9 = vmul.f32 0.01, %v3319_v63  ;;  %v3439_v11 = vmul.f32 0.6931472, %v5694_v56  ;;  %v10269_v58 = vld [vmem:[#allocation23_spill] sm:$0xff]  ;;  %v10273_v21 = vld [vmem:[#allocation38_spill] sm:$0xff]  ;;  %v8831_v24 = vpop.permute.xlu0 %3620 }
 0x434   : > { %5068 = vmatmul.mubr.msk.f32.vlgmr.msra.gmra.mrb[48].mxu1 %vm1381_vm8, %v8650_v26  ;;  %3722 = vmatprep.mubr.f32.mxu0 %v10248_v28  ;;  %v5185_v7 = vpack.c.bf16 %v3581_v44, %v3573_v43  ;;  %v3391_v41 = vsel %vm8713_vm1, %v3388_v18, %v3385_v14  ;;  %vm8742_vm12 = vcmp.lt.f32.partialorder %v3443_v37, 0.0004427343  ;;  %v3530_v46 = vmul.f32 -0.5, %v8676_v34  ;;  %v10275_v43 = vld [vmem:[#allocation35_spill] sm:$0xff]  ;;  %v10276_v17 = vld [vmem:[#allocation29_spill] sm:$0xff] }
 0x435   : > { %3799 = vmatprep.mubr.f32.mxu1 %v10248_v28  ;;  %v5696_v59 = vpop.eup %5695  ;;  %vm3127_vm13 = vcmp.gt.f32.partialorder %v10260_v6, 20.0  ;;  %v3551_v29 = vmul.f32 0.01, %v3391_v41  ;;  %v3445_v45 = vsel %vm8742_vm12, %v3442_v19, %v3439_v11  ;;  %v3459_v57 = vadd.f32 1.0, %v3458_v52  ;;  %v10277_v44 = vld [vmem:[#allocation37_spill] sm:$0xff] }
 0x436   : > { %vm3135_vm14 = vcmp.gt.f32.partialorder %v10261_v1, 20.0  ;;  %5186 = vmatprep.subr.bf16.mxu0 %v5185_v7  ;;  %v3511_v32 = vmul.f32 0.6931472, %v5696_v59  ;;  %v3514_v20 = vmul.f32 %v8562_v0, %v3513_v51  ;;  %v3461_v47 = vand.u32 2147483647, %v8495_v62 }
 0x437   : > { %5067 = vmatmul.mubr.msk.f32.gmra.mrb[54].mxu0 %vm1381_vm8, %v8737_v4  ;;  %v3575_v49 = vsel %vm3127_vm13, %v10262_v50, %v3543_v9  ;;  %v3583_v36 = vsel %vm3135_vm14, %v10263_v31, %v3551_v29  ;;  %v10266_v30 = vpack.c.bf16 %v10264_v42, %v10265_v2  ;;  %vm3516_vm2 = vcmp.lt.f32.partialorder %v3515_v53, 0.0004427343  ;;  %v10274_v53 = vld [vmem:[#allocation36_spill] sm:$0xff] }
 0x438   : > { %5069 = vmatmul.mubr.msk.f32.gmra.mrb[50].mxu1 %vm1381_vm8, %v8673_v5  ;;  %v3557_v55 = vmul.f32 0.01, %v3445_v45  ;;  %v5698_v13 = vpop.eup %5697  ;;  %v5193_v61 = vpack.c.bf16 %v3583_v36, %v3575_v49  ;;  %v3517_v0 = vsel %vm3516_vm2, %v3514_v20, %v3511_v32  ;;  %v3531_v22 = vadd.f32 1.0, %v3530_v46  ;;  %3882 = vmatprep.mubr.f32.mxu0 %v10248_v28 }
 0x439   : > { %5188 = vmatpush1.bf16.msra.mxu0 %v10266_v30  ;;  %3805 = vmatprep.mubr.f32.mxu1 %v10248_v28  ;;  %v3565_v38 = vmul.f32 0.01, %v3517_v0  ;;  %v3457_v8 = vmul.f32 0.6931472, %v5698_v13  ;;  %v3460_v27 = vmul.f32 %v8495_v62, %v3459_v57  ;;  %v3533_v25 = vand.u32 2147483647, %v8676_v34 }
 0x43a   : > { %vm3141_vm4 = vcmp.gt.f32.partialorder %v10267_v16, 20.0  ;;  %vm3149_vm5 = vcmp.gt.f32.partialorder %v10268_v39, 20.0  ;;  %5194 = vmatprep.subr.bf16.mxu1 %v5193_v61  ;;  %vm3462_vm15 = vcmp.lt.f32.partialorder %v3461_v47, 0.0004427343  ;;  %v10271_v18 = vpack.c.bf16 %v10269_v58, %v10270_v12 }
 0x43b   : > { %v5700_v35 = vpop.eup %5699  ;;  %v3589_v37 = vsel %vm3141_vm4, %v10272_v3, %v3557_v55  ;;  %v3597_v33 = vsel %vm3149_vm5, %v10273_v21, %v3565_v38  ;;  %v3463_v63 = vsel %vm3462_vm15, %v3460_v27, %v3457_v8  ;;  %v3532_v56 = vmul.f32 %v8676_v34, %v3531_v22 }
 0x43c   : > { %5196 = vmatpush1.bf16.msra.mxu1 %v10271_v18  ;;  %v5189_v62 = vpack.c.bf16 %v3597_v33, %v3589_v37  ;;  %v3529_v52 = vmul.f32 0.6931472, %v5700_v35  ;;  %vm3534_vm3 = vcmp.lt.f32.partialorder %v3533_v25, 0.0004427343  ;;  %v3559_v14 = vmul.f32 0.01, %v3463_v63 }
 0x43d   : > { %5070 = vmatmul.mubr.msk.f32.gmra.mrb[52].mxu1 %vm1381_vm8, %v8704_v23  ;;  %vm3143_vm6 = vcmp.gt.f32.partialorder %v10274_v53, 20.0  ;;  %vm3151_vm7 = vcmp.gt.f32.partialorder %v10275_v43, 20.0 }
 0x43e   : > { %3811 = vmatprep.mubr.f32.mxu1 %v10248_v28  ;;  %5190 = vmatprep.subr.bf16.mxu0 %v5189_v62  ;;  %v3535_v19 = vsel %vm3534_vm3, %v3532_v56, %v3529_v52  ;;  %v3591_v34 = vsel %vm3143_vm6, %v10276_v17, %v3559_v14 }
 0x43f   : > { %v3567_v51 = vmul.f32 0.01, %v3535_v19  ;;  %5192 = vmatpush1.bf16.msra.mxu0 %v5191_v10 }
 0x441   : > { %5071 = vmatmul.mubr.msk.f32.gmra.mrb[54].mxu1 %vm1381_vm8, %v8737_v4  ;;  %v3599_v9 = vsel %vm3151_vm7, %v10277_v44, %v3567_v51 }
 0x442   : > { %3971 = vmatprep.mubr.f32.mxu1 %v10248_v28  ;;  %v5197_v11 = vpack.c.bf16 %v3599_v9, %v3591_v34  ;;  %5072 = vmatmul.mubr.msk.f32.vlgmr.msra.gmra.mrb[56].mxu0 %vm1381_vm8, %v8650_v26 }
 0x443   : > { %3888 = vmatprep.mubr.f32.mxu0 %v10248_v28 }
 0x444   : > { %5198 = vmatprep.subr.bf16.mxu1 %v5197_v11 }
 0x445   : > { %5200 = vmatpush1.bf16.msra.mxu1 %v5199_v15  ;;  %v8822_v15 = vpop.permute.xlu1 %3615 }
 0x446   : > { %5073 = vmatmul.mubr.msk.f32.gmra.mrb[58].mxu0 %vm1381_vm8, %v8673_v5 }
 0x447   : > { %3894 = vmatprep.mubr.f32.mxu0 %v10248_v28 }
 0x448   : > { %5076 = vmatmul.mubr.msk.f32.vlgmr.msra.gmra.mrb[56].mxu1 %vm1381_vm8, %v8650_v26 }
 0x449   : > { %3977 = vmatprep.mubr.f32.mxu1 %v10248_v28  ;;  %v8865_v8 = vpop.permute.xlu1 %3625 }
 0x44a   : > { %5074 = vmatmul.mubr.msk.f32.gmra.mrb[60].mxu0 %vm1381_vm8, %v8704_v23 }
 0x44b   : > { %3900 = vmatprep.mubr.f32.mxu0 %v10248_v28 }
 0x44c   : > { %5077 = vmatmul.mubr.msk.f32.gmra.mrb[58].mxu1 %vm1381_vm8, %v8673_v5 }
 0x44d   : > { %3983 = vmatprep.mubr.f32.mxu1 %v10248_v28 }
 0x44e   : > { %5075 = vmatmul.mubr.msk.f32.gmra.mrb[62].mxu0 %vm1381_vm8, %v8737_v4 }
 0x44f   : > { %4602 = vmatprep.mubr.f32.mxu0 %v10248_v28 }
 0x450   : > { %5078 = vmatmul.mubr.msk.f32.gmra.mrb[60].mxu1 %vm1381_vm8, %v8704_v23 }
 0x451   : > { %3989 = vmatprep.mubr.f32.mxu1 %v10248_v28 }
 0x454   : > { %5079 = vmatmul.mubr.msk.f32.gmra.mrb[62].mxu1 %vm1381_vm8, %v8737_v4 }
 0x455   : > { %4685 = vmatprep.mubr.f32.mxu1 %v10248_v28 }
 0x4fe   : > { %v3706_v48 = vpop.f32.mrb[48].mxu0 }
 0x4ff   : > { %v8817_v60 = vadd.f32 %v3706_v48, %v8814_v54  ;;  %v3708_v10 = vpop.f32.mrb[49].mxu0 }
 0x500   : > { %v8854_v61 = vadd.f32 %v3708_v10, %v8814_v54 }
 0x501   : > { %v8820_v40 = vmul.f32 100.0, %v8817_v60 }
 0x502   : > { %v3712_v26 = vpop.f32.mrb[50].mxu0  ;;  %v8881_v3 = vmul.f32 100.0, %v8854_v61 }
 0x503   : > { %v4060_v5 = vmin.f32 %v8820_v40, 20.0  ;;  %v8826_v23 = vadd.f32 %v3712_v26, %v8822_v15  ;;  %v3714_v4 = vpop.f32.mrb[51].mxu0  ;;  %vm4028_vm9 = vcmp.gt.f32.partialorder %v8820_v40, 20.0 }
 0x504   : > { %v8860_v22 = vadd.f32 %v3714_v4, %v8822_v15  ;;  %v4061_v53 = vmin.f32 %v8881_v3, 20.0 }
 0x505   : > { %v4092_v7 = vmul.f32 1.442695, %v4060_v5  ;;  %v8829_v41 = vmul.f32 100.0, %v8826_v23 }
 0x506   : > { %v3718_v46 = vpop.f32.mrb[52].mxu0  ;;  %10278 = vst [vmem:[#allocation18_spill] sm:$0xff] %v8860_v22  ;;  %v8884_v21 = vmul.f32 100.0, %v8860_v22 }
 0x507   : > { %5701 = vpow2.f32 %v4092_v7  ;;  %v3795_v59 = vpop.f32.mrb[48].mxu1  ;;  %v4068_v6 = vmin.f32 %v8829_v41, 20.0  ;;  %v8835_v29 = vadd.f32 %v3718_v46, %v8831_v24  ;;  %v3720_v45 = vpop.f32.mrb[53].mxu0  ;;  %v4094_v46 = vmul.f32 1.442695, %v4061_v53 }
 0x508   : > { %v8838_v57 = vadd.f32 %v3795_v59, %v8814_v54  ;;  %v3797_v1 = vpop.f32.mrb[49].mxu1  ;;  %v4069_v17 = vmin.f32 %v8884_v21, 20.0  ;;  %v8914_v26 = vadd.f32 %v3720_v45, %v8831_v24  ;;  %vm4036_vm10 = vcmp.gt.f32.partialorder %v8829_v41, 20.0 }
 0x509   : > { %v4108_v32 = vmul.f32 1.442695, %v4068_v6  ;;  %v8841_v20 = vmul.f32 100.0, %v8835_v29  ;;  %v8863_v38 = vadd.f32 %v3797_v1, %v8814_v54 }
 0x50a   : > { %v8844_v47 = vmul.f32 100.0, %v8838_v57  ;;  %v3724_v50 = vpop.f32.mrb[54].mxu0  ;;  %10283 = vst [vmem:[#allocation9_spill] sm:$0xff] %v8914_v26  ;;  %v4110_v6 = vmul.f32 1.442695, %v4069_v17 }
 0x50b   : > { %5703 = vpow2.f32 %v4108_v32  ;;  %v3801_v49 = vpop.f32.mrb[50].mxu1  ;;  %v4076_v31 = vmin.f32 %v8841_v20, 20.0  ;;  %v8847_v36 = vpop.f32.mrb[55].mxu0  ;;  %10279 = vst [vmem:[#allocation31_spill] sm:$0xff] %v8863_v38  ;;  %v8877_v12 = vadd.f32 %v3724_v50, %v8865_v8  ;;  %v8887_v33 = vmul.f32 100.0, %v8863_v38 }
 0x50c   : > { %v4062_v42 = vmin.f32 %v8844_v47, 20.0  ;;  %v8851_v2 = vadd.f32 %v3801_v49, %v8822_v15  ;;  %v3803_v30 = vpop.f32.mrb[51].mxu1  ;;  %vm4030_vm1 = vcmp.gt.f32.partialorder %v8844_v47, 20.0  ;;  %vm4044_vm4 = vcmp.gt.f32.partialorder %v8841_v20, 20.0 }
 0x50d   : > { %v4124_v55 = vmul.f32 1.442695, %v4076_v31  ;;  %v8869_v25 = vadd.f32 %v3803_v30, %v8822_v15  ;;  %10281 = vst [vmem:[#allocation14_spill] sm:$0xff] %v8887_v33  ;;  %v8899_v19 = vmul.f32 100.0, %v8877_v12  ;;  %v4063_v9 = vmin.f32 %v8887_v33, 20.0 }
 0x50e   : > { %v4096_v13 = vmul.f32 1.442695, %v4062_v42  ;;  %v8857_v0 = vmul.f32 100.0, %v8851_v2 }
 0x50f   : > { %5705 = vpow2.f32 %v4124_v55  ;;  %10280 = vst [vmem:[#allocation11_spill] sm:$0xff] %v8869_v25  ;;  %v8893_v62 = vmul.f32 100.0, %v8869_v25  ;;  %v4084_v4 = vmin.f32 %v8899_v19, 20.0  ;;  %v4098_v49 = vmul.f32 1.442695, %v4063_v9 }
 0x510   : > { %5707 = vpow2.f32 %v4096_v13  ;;  %v4070_v27 = vmin.f32 %v8857_v0, 20.0  ;;  %v3807_v16 = vpop.f32.mrb[52].mxu1  ;;  %v8932_v55 = vmul.f32 100.0, %v8914_v26  ;;  %vm4038_vm13 = vcmp.gt.f32.partialorder %v8857_v0, 20.0 }
 0x511   : > { %v8871_v39 = vpop.eup %5701  ;;  %v8874_v35 = vadd.f32 %v3807_v16, %v8831_v24  ;;  %v3809_v58 = vpop.f32.mrb[53].mxu1  ;;  %10282 = vst [vmem:[#allocation25_spill] sm:$0xff] %v8893_v62  ;;  %v4071_v10 = vmin.f32 %v8893_v62, 20.0  ;;  %vm4052_vm5 = vcmp.gt.f32.partialorder %v8899_v19, 20.0 }
 0x512   : > { %v4156_v18 = vadd.f32 1.0, %v8871_v39  ;;  %v4112_v37 = vmul.f32 1.442695, %v4070_v27  ;;  %v4159_v44 = vmul.f32 -0.5, %v8871_v39  ;;  %v4162_v42 = vand.u32 2147483647, %v8871_v39 }
 0x513   : > { %v8890_v63 = vmul.f32 100.0, %v8874_v35  ;;  %v4114_v30 = vmul.f32 1.442695, %v4071_v10  ;;  %10284 = vst [vmem:[#allocation10_spill] sm:$0xff] %v8932_v55  ;;  %v8938_v16 = vadd.f32 %v3809_v58, %v8831_v24 }
 0x514   : > { %5709 = vlog2.f32 %v4156_v18  ;;  %v3813_v52 = vpop.f32.mrb[54].mxu1  ;;  %v4160_v50 = vadd.f32 1.0, %v4159_v44  ;;  %v4140_v18 = vmul.f32 1.442695, %v4084_v4  ;;  %vm8956_vm11 = vcmp.lt.f32.partialorder %v4162_v42, 0.0004427343 }
 0x515   : > { %v8895_v56 = vpop.eup %5703  ;;  %5711 = vpow2.f32 %v4112_v37  ;;  %v4078_v14 = vmin.f32 %v8890_v63, 20.0  ;;  %v8901_v51 = vpop.f32.mrb[55].mxu1  ;;  %v8923_v1 = vadd.f32 %v3813_v52, %v8865_v8  ;;  %10285 = vst [vmem:[#allocation15_spill] sm:$0xff] %v8938_v16  ;;  %vm4046_vm3 = vcmp.gt.f32.partialorder %v8890_v63, 20.0 }
 0x516   : > { %v4228_v43 = vadd.f32 1.0, %v8895_v56  ;;  %v8906_v34 = vpop.f32.mrb[56].mxu0  ;;  %v4231_v59 = vmul.f32 -0.5, %v8895_v56  ;;  %v4234_v53 = vand.u32 2147483647, %v8895_v56  ;;  %v4161_v58 = vmul.f32 %v8871_v39, %v4160_v50 }
 0x517   : > { %v4128_v11 = vmul.f32 1.442695, %v4078_v14  ;;  %v8910_v48 = vpop.f32.mrb[57].mxu0  ;;  %v8967_v50 = vmul.f32 100.0, %v8938_v16  ;;  %v8984_v25 = vadd.f32 %v8906_v34, %v8814_v54 }
 0x518   : > { %5713 = vlog2.f32 %v4228_v43  ;;  %v4232_v14 = vadd.f32 1.0, %v4231_v59  ;;  %v8944_v43 = vmul.f32 100.0, %v8923_v1  ;;  %v4077_v59 = vmin.f32 %v8932_v55, 20.0 }
 0x519   : > { %v8916_v5 = vpop.eup %5705  ;;  %5715 = vpow2.f32 %v4128_v11  ;;  %v8925_v32 = vpop.f32.mrb[58].mxu0  ;;  %10288 = vst [vmem:[#allocation16_spill] sm:$0xff] %v8967_v50  ;;  %vm8973_vm0 = vcmp.lt.f32.partialorder %v4234_v53, 0.0004427343 }
 0x51a   : > { %v8919_v7 = vpop.eup %5707  ;;  %v8928_v31 = vpop.f32.mrb[59].mxu0  ;;  %v4300_v27 = vadd.f32 1.0, %v8916_v5  ;;  %v4233_v28 = vmul.f32 %v8895_v56, %v4232_v14  ;;  %v4303_v26 = vmul.f32 -0.5, %v8916_v5  ;;  %v8989_v14 = vadd.f32 %v8847_v36, %v8865_v8 }
 0x51b   : > { %v4174_v45 = vadd.f32 1.0, %v8919_v7  ;;  %v8934_v13 = vpop.f32.mrb[56].mxu1  ;;  %v4177_v11 = vmul.f32 -0.5, %v8919_v7  ;;  %v9002_v36 = vmul.f32 100.0, %v8984_v25  ;;  %vm4054_vm7 = vcmp.gt.f32.partialorder %v8944_v43, 20.0 }
 0x51c   : > { %v8940_v37 = vpop.f32.mrb[57].mxu1  ;;  %10291 = vst [vmem:[#allocation19_spill] sm:$0xff] %v8989_v14  ;;  %v4304_v62 = vadd.f32 1.0, %v4303_v26 }
 0x51d   : > { %5717 = vlog2.f32 %v4174_v45  ;;  %v8946_v17 = vpop.f32.mrb[60].mxu0  ;;  %v4064_v40 = vmin.f32 %v9002_v36, 20.0 }
 0x51e   : > { %v5710_v52 = vpop.eup %5709  ;;  %5719 = vpow2.f32 %v4094_v46  ;;  %v8954_v10 = vpop.f32.mrb[61].mxu0 }
 0x51f   : > { %v8948_v44 = vpop.eup %5711  ;;  %v4158_v9 = vmul.f32 0.6931472, %v5710_v52  ;;  %5721 = vpow2.f32 %v4140_v18  ;;  %v8962_v45 = vpop.f32.mrb[58].mxu1  ;;  %v4086_v18 = vmin.f32 %v8944_v43, 20.0 }
 0x520   : > { %v4246_v46 = vadd.f32 1.0, %v8948_v44  ;;  %5723 = vpow2.f32 %v4110_v6  ;;  %v8970_v42 = vpop.f32.mrb[59].mxu1  ;;  %v4306_v6 = vand.u32 2147483647, %v8916_v5 }
 0x521   : > { %v4164_v39 = vsel %vm8956_vm11, %v4161_v58, %v4158_v9  ;;  %5725 = vlog2.f32 %v4300_v27  ;;  %v8978_v4 = vpop.f32.mrb[62].mxu0  ;;  %v4178_v9 = vadd.f32 1.0, %v4177_v11  ;;  %v4144_v16 = vmul.f32 1.442695, %v4086_v18 }
 0x522   : > { %v5714_v52 = vpop.eup %5713  ;;  %5727 = vlog2.f32 %v4246_v46  ;;  %v4444_v38 = vmul.f32 0.01, %v4164_v39  ;;  %v8993_v46 = vpop.f32.mrb[63].mxu0  ;;  %v4249_v18 = vmul.f32 -0.5, %v8948_v44  ;;  %vm9040_vm14 = vcmp.lt.f32.partialorder %v4306_v6, 0.0004427343 }
 0x523   : > { %v8980_v27 = vpop.eup %5715  ;;  %v4230_v58 = vmul.f32 0.6931472, %v5714_v52  ;;  %5729 = vpow2.f32 %v4098_v49  ;;  %v8991_v53 = vpop.f32.mrb[60].mxu1  ;;  %v4126_v52 = vmul.f32 1.442695, %v4077_v59  ;;  %v4179_v22 = vmul.f32 %v8919_v7, %v4178_v9 }
 0x524   : > { %v4318_v56 = vadd.f32 1.0, %v8980_v27  ;;  %5731 = vpow2.f32 %v4144_v16  ;;  %v8998_v34 = vpop.f32.mrb[61].mxu1  ;;  %v4180_v49 = vand.u32 2147483647, %v8919_v7  ;;  %v9012_v16 = vsel %vm4028_vm9, %v8817_v60, %v4444_v38 }
 0x525   : > { %v4236_v11 = vsel %vm8973_vm0, %v4233_v28, %v4230_v58  ;;  %5733 = vpow2.f32 %v4114_v30  ;;  %v4079_v28 = vmin.f32 %v8967_v50, 20.0  ;;  %10292 = vst [vmem:[#allocation26_spill] sm:$0xff] %v9012_v16  ;;  %v4252_v60 = vand.u32 2147483647, %v8948_v44 }
 0x526   : > { %v4452_v39 = vmul.f32 0.01, %v4236_v11  ;;  %5735 = vlog2.f32 %v4318_v56  ;;  %v4250_v11 = vadd.f32 1.0, %v4249_v18  ;;  %vm9032_vm12 = vcmp.lt.f32.partialorder %v4180_v49, 0.0004427343 }
 0x527   : > { %v5718_v55 = vpop.eup %5717  ;;  %v9019_v7 = vpop.f32.mrb[62].mxu1  ;;  %5737 = vpow2.f32 %v4126_v52  ;;  %v4130_v9 = vmul.f32 1.442695, %v4079_v28  ;;  %v9046_v49 = vadd.f32 %v8934_v13, %v8814_v54  ;;  %v4305_v16 = vmul.f32 %v8916_v5, %v4304_v62 }
 0x528   : > { %v9007_v58 = vpop.eup %5719  ;;  %v4176_v59 = vmul.f32 0.6931472, %v5718_v55  ;;  %v9017_v30 = vsel %vm4036_vm10, %v8826_v23, %v4452_v39  ;;  %v9028_v38 = vpop.f32.mrb[63].mxu1  ;;  %v9050_v52 = vmul.f32 100.0, %v8989_v14  ;;  %vm4253_vm2 = vcmp.lt.f32.partialorder %v4252_v60, 0.0004427343 }
 0x529   : > { %10293 = vst [vmem:[#allocation17_spill] sm:$0xff] %v9017_v30  ;;  %v9021_v26 = vpop.eup %5721  ;;  %v4100_v30 = vmul.f32 1.442695, %v4064_v40  ;;  %v4321_v6 = vmul.f32 -0.5, %v8980_v27  ;;  %v9057_v13 = vmul.f32 100.0, %v9046_v49  ;;  %vm4032_vm0 = vcmp.gt.f32.partialorder %v9002_v36, 20.0 }
 0x52a   : > { %v9030_v41 = vpop.eup %5723  ;;  %v4372_v55 = vadd.f32 1.0, %v9021_v26  ;;  %v4182_v18 = vsel %vm9032_vm12, %v4179_v22, %v4176_v59  ;;  %v4251_v22 = vmul.f32 %v8948_v44, %v4250_v11  ;;  %v4375_v40 = vmul.f32 -0.5, %v9021_v26 }
 0x52b   : > { %v5726_v56 = vpop.eup %5725  ;;  %v4446_v28 = vmul.f32 0.01, %v4182_v18  ;;  %v9064_v44 = vadd.f32 %v8901_v51, %v8865_v8  ;;  %v4324_v60 = vand.u32 2147483647, %v8980_v27  ;;  %v4066_v18 = vmin.f32 %v9057_v13, 20.0 }
 0x52c   : > { %v5728_v50 = vpop.eup %5727  ;;  %5739 = vlog2.f32 %v4372_v55  ;;  %v4302_v23 = vmul.f32 0.6931472, %v5726_v56  ;;  %v4085_v55 = vmin.f32 %v9050_v52, 20.0  ;;  %v4322_v56 = vadd.f32 1.0, %v4321_v6 }
 0x52d   : > { %v4248_v33 = vmul.f32 0.6931472, %v5728_v50  ;;  %v9054_v59 = vpop.eup %5729  ;;  %5741 = vpow2.f32 %v4100_v30  ;;  %10298 = vst [vmem:[#allocation24_spill] sm:$0xff] %v9064_v44  ;;  %v9078_v51 = vadd.f32 %v8962_v45, %v8822_v15  ;;  %v4104_v47 = vmul.f32 1.442695, %v4066_v18 }
 0x52e   : > { %v9059_v62 = vpop.eup %5731  ;;  %5743 = vpow2.f32 %v4130_v9  ;;  %v4142_v39 = vmul.f32 1.442695, %v4085_v55  ;;  %v4323_v18 = vmul.f32 %v8980_v27, %v4322_v56  ;;  %vm9115_vm15 = vcmp.lt.f32.partialorder %v4324_v60, 0.0004427343 }
 0x52f   : > { %v4254_v5 = vsel %vm4253_vm2, %v4251_v22, %v4248_v33  ;;  %v9066_v50 = vpop.eup %5733  ;;  %v4390_v30 = vadd.f32 1.0, %v9059_v62  ;;  %v9074_v33 = vadd.f32 %v8925_v32, %v8822_v15  ;;  %v9083_v22 = vsel %vm4030_vm1, %v8838_v57, %v4446_v28 }
 0x530   : > { %v4454_v11 = vmul.f32 0.01, %v4254_v5  ;;  %v5736_v9 = vpop.eup %5735  ;;  %10299 = vst [vmem:[#allocation13_spill] sm:$0xff] %v9083_v22  ;;  %v4308_v32 = vsel %vm9040_vm14, %v4305_v16, %v4302_v23  ;;  %v4376_v5 = vadd.f32 1.0, %v4375_v40  ;;  %v9098_v57 = vadd.f32 %v8910_v48, %v8814_v54 }
 0x531   : > { %5745 = vlog2.f32 %v4390_v30  ;;  %v9100_v0 = vpop.eup %5737  ;;  %v4393_v28 = vmul.f32 -0.5, %v9059_v62  ;;  %v9106_v16 = vadd.f32 %v8940_v37, %v8814_v54  ;;  %v4320_v23 = vmul.f32 0.6931472, %v5736_v9 }
 0x532   : > { %v9088_v6 = vsel %vm4038_vm13, %v8851_v2, %v4454_v11  ;;  %10301 = vst [vmem:[#allocation33_spill] sm:$0xff] %v9098_v57  ;;  %v4378_v2 = vand.u32 2147483647, %v9021_v26  ;;  %5747 = vpow2.f32 %v4104_v47  ;;  %v9109_v40 = vmul.f32 100.0, %v9074_v33 }
 0x533   : > { %10300 = vst [vmem:[#allocation12_spill] sm:$0xff] %v9088_v6  ;;  %10302 = vst [vmem:[#allocation20_spill] sm:$0xff] %v9106_v16  ;;  %v9112_v11 = vmul.f32 100.0, %v9078_v51  ;;  %v4460_v30 = vmul.f32 0.01, %v4308_v32  ;;  %v9120_v55 = vmul.f32 100.0, %v9064_v44  ;;  %v4377_v37 = vmul.f32 %v9021_v26, %v4376_v5 }
 0x534   : > { %v9124_v9 = vmul.f32 100.0, %v9098_v57  ;;  %v4072_v47 = vmin.f32 %v9109_v40, 20.0  ;;  %vm4379_vm6 = vcmp.lt.f32.partialorder %v4378_v2, 0.0004427343  ;;  %v4394_v27 = vadd.f32 1.0, %v4393_v28 }
 0x535   : > { %v4396_v60 = vand.u32 2147483647, %v9059_v62  ;;  %v4074_v56 = vmin.f32 %v9112_v11, 20.0  ;;  %v4326_v26 = vsel %vm9115_vm15, %v4323_v18, %v4320_v23  ;;  %v9138_v57 = vmul.f32 100.0, %v9106_v16 }
 0x536   : > { %v5740_v48 = vpop.eup %5739  ;;  %v4116_v22 = vmul.f32 1.442695, %v4072_v47  ;;  %v9142_v2 = vadd.f32 %v8928_v31, %v8822_v15  ;;  %v9147_v28 = vsel %vm4044_vm4, %v8835_v29, %v4460_v30  ;;  %v4087_v45 = vmin.f32 %v9120_v55, 20.0 }
 0x537   : > { %v4374_v54 = vmul.f32 0.6931472, %v5740_v48  ;;  %v9127_v14 = vpop.eup %5741  ;;  %10305 = vst [vmem:[#allocation21_spill] sm:$0xff] %v9138_v57  ;;  %v4120_v6 = vmul.f32 1.442695, %v4074_v56  ;;  %v4065_v23 = vmin.f32 %v9124_v9, 20.0  ;;  %v4395_v31 = vmul.f32 %v9059_v62, %v4394_v27 }
 0x538   : > { %v9132_v32 = vpop.eup %5743  ;;  %v4192_v48 = vadd.f32 1.0, %v9127_v14  ;;  %10306 = vst [vmem:[#allocation32_spill] sm:$0xff] %v9142_v2  ;;  %v4067_v30 = vmin.f32 %v9138_v57, 20.0  ;;  %vm4397_vm9 = vcmp.lt.f32.partialorder %v4396_v60, 0.0004427343  ;;  %v9162_v47 = vmul.f32 100.0, %v9142_v2 }
 0x539   : > { %v4380_v5 = vsel %vm4379_vm6, %v4377_v37, %v4374_v54  ;;  %v4462_v54 = vmul.f32 0.01, %v4326_v26  ;;  %v9177_v60 = vadd.f32 %v8991_v53, %v8831_v24  ;;  %vm4040_vm1 = vcmp.gt.f32.partialorder %v9109_v40, 20.0 }
 0x53a   : > { %v4468_v44 = vmul.f32 0.01, %v4380_v5  ;;  %5749 = vlog2.f32 %v4192_v48  ;;  %10307 = vst [vmem:[#allocation28_spill] sm:$0xff] %v9162_v47  ;;  %v4106_v26 = vmul.f32 1.442695, %v4067_v30  ;;  %v4073_v53 = vmin.f32 %v9162_v47, 20.0 }
 0x53b   : > { %v5746_v18 = vpop.eup %5745  ;;  %5751 = vpow2.f32 %v4116_v22  ;;  %v4102_v22 = vmul.f32 1.442695, %v4065_v23  ;;  %v9200_v48 = vadd.f32 %v8954_v10, %v8831_v24  ;;  %vm4034_vm12 = vcmp.gt.f32.partialorder %v9057_v13, 20.0 }
 0x53c   : > { %v9154_v37 = vsel %vm4052_vm5, %v8877_v12, %v4468_v44  ;;  %v4392_v29 = vmul.f32 0.6931472, %v5746_v18  ;;  %5753 = vpow2.f32 %v4120_v6  ;;  %v9166_v12 = vadd.f32 %v8946_v17, %v8831_v24  ;;  %v9168_v19 = vpop.eup %5747 }
 0x53d   : > { %5755 = vpow2.f32 %v4142_v39  ;;  %v4146_v44 = vmul.f32 1.442695, %v4087_v45  ;;  %v4210_v56 = vadd.f32 1.0, %v9168_v19  ;;  %v9173_v6 = vadd.f32 %v8970_v42, %v8822_v15  ;;  %10311 = vst [vmem:[#allocation27_spill] sm:$0xff] %v9200_v48 }
 0x53e   : > { %v4398_v62 = vsel %vm4397_vm9, %v4395_v31, %v4392_v29  ;;  %v9182_v17 = vsel %vm4046_vm3, %v8874_v35, %v4462_v54  ;;  %v4195_v39 = vmul.f32 -0.5, %v9127_v14  ;;  %v9186_v5 = vmul.f32 100.0, %v9166_v12 }
 0x53f   : > { %v4470_v27 = vmul.f32 0.01, %v4398_v62  ;;  %10308 = vst [vmem:[#allocation7_spill] sm:$0xff] %v9173_v6  ;;  %10309 = vst [vmem:[#allocation22_spill] sm:$0xff] %v9182_v17  ;;  %v4198_v42 = vand.u32 2147483647, %v9127_v14  ;;  %5757 = vlog2.f32 %v4210_v56  ;;  %v9210_v18 = vadd.f32 %v8978_v4, %v8865_v8 }
 0x540   : > { %5759 = vpow2.f32 %v4146_v44  ;;  %v4080_v63 = vmin.f32 %v9186_v5, 20.0  ;;  %v9203_v43 = vmul.f32 100.0, %v9173_v6  ;;  %v4196_v31 = vadd.f32 1.0, %v4195_v39 }
 0x541   : > { %v9191_v15 = vsel %vm4054_vm7, %v8923_v1, %v4470_v27  ;;  %5761 = vpow2.f32 %v4102_v22  ;;  %v9206_v1 = vmul.f32 100.0, %v9177_v60  ;;  %vm9212_vm10 = vcmp.lt.f32.partialorder %v4198_v42, 0.0004427343 }
 0x542   : > { %10310 = vst [vmem:[#allocation34_spill] sm:$0xff] %v9191_v15  ;;  %10312 = vst [vmem:[#allocation23_spill] sm:$0xff] %v9203_v43  ;;  %5763 = vpow2.f32 %v4106_v26  ;;  %v4132_v23 = vmul.f32 1.442695, %v4080_v63  ;;  %v4118_v10 = vmul.f32 1.442695, %v4073_v53  ;;  %v9225_v26 = vadd.f32 %v8998_v34, %v8831_v24 }
 0x543   : > { %v4082_v30 = vmin.f32 %v9206_v1, 20.0  ;;  %v4213_v44 = vmul.f32 -0.5, %v9168_v19  ;;  %v9219_v27 = vmul.f32 100.0, %v9200_v48  ;;  %v4216_v4 = vand.u32 2147483647, %v9168_v19 }
 0x544   : > { %v5750_v45 = vpop.eup %5749  ;;  %5765 = vpow2.f32 %v4132_v23  ;;  %v4075_v39 = vmin.f32 %v9203_v43, 20.0  ;;  %10316 = vst [vmem:[#allocation30_spill] sm:$0xff] %v9225_v26  ;;  %v9230_v63 = vmul.f32 100.0, %v9210_v18  ;;  %v9234_v23 = vadd.f32 %v9019_v7, %v8865_v8 }
 0x545   : > { %v5752_v54 = vpop.eup %5751  ;;  %10315 = vst [vmem:[#allocation8_spill] sm:$0xff] %v9219_v27  ;;  %v4194_v53 = vmul.f32 0.6931472, %v5750_v45  ;;  %v4136_v48 = vmul.f32 1.442695, %v4082_v30  ;;  %v4197_v6 = vmul.f32 %v9127_v14, %v4196_v31  ;;  %v4214_v16 = vadd.f32 1.0, %v4213_v44 }
 0x546   : > { %v5754_v62 = vpop.eup %5753  ;;  %v4264_v22 = vadd.f32 1.0, %v5752_v54  ;;  %v4267_v35 = vmul.f32 -0.5, %v5752_v54  ;;  %v4081_v24 = vmin.f32 %v9219_v27, 20.0  ;;  %vm9238_vm11 = vcmp.lt.f32.partialorder %v4216_v4, 0.0004427343 }
 0x547   : > { %v4282_v56 = vadd.f32 1.0, %v5754_v62  ;;  %v9227_v42 = vpop.eup %5755  ;;  %v4285_v20 = vmul.f32 -0.5, %v5754_v62  ;;  %v9243_v7 = vmul.f32 100.0, %v9225_v26  ;;  %v4200_v14 = vsel %vm9212_vm10, %v4197_v6, %v4194_v53 }
 0x548   : > { %5767 = vlog2.f32 %v4264_v22  ;;  %v4122_v22 = vmul.f32 1.442695, %v4075_v39  ;;  %v4270_v31 = vand.u32 2147483647, %v5752_v54  ;;  %v9252_v30 = vmul.f32 100.0, %v9234_v23 }
 0x549   : > { %5769 = vlog2.f32 %v4282_v56  ;;  %v5758_v34 = vpop.eup %5757  ;;  %10319 = vst [vmem:[#allocation38_spill] sm:$0xff] %v9243_v7  ;;  %v4268_v4 = vadd.f32 1.0, %v4267_v35  ;;  %v4288_v56 = vand.u32 2147483647, %v5754_v62  ;;  %v9258_v39 = vadd.f32 %v8993_v46, %v8865_v8 }
 0x54a   : > { %5771 = vpow2.f32 %v4118_v10  ;;  %v9245_v43 = vpop.eup %5759  ;;  %v4088_v10 = vmin.f32 %v9230_v63, 20.0  ;;  %v4212_v27 = vmul.f32 0.6931472, %v5758_v34  ;;  %v4215_v6 = vmul.f32 %v9168_v19, %v4214_v16 }
 0x54b   : > { %5773 = vpow2.f32 %v4136_v48  ;;  %v9254_v44 = vpop.eup %5761  ;;  %v4286_v48 = vadd.f32 1.0, %v4285_v20  ;;  %10320 = vst [vmem:[#allocation36_spill] sm:$0xff] %v9258_v39  ;;  %v4134_v29 = vmul.f32 1.442695, %v4081_v24  ;;  %v4083_v57 = vmin.f32 %v9243_v7, 20.0 }
 0x54c   : > { %v9260_v26 = vpop.eup %5763  ;;  %v4148_v53 = vmul.f32 1.442695, %v4088_v10  ;;  %5775 = vpow2.f32 %v4122_v22  ;;  %v4090_v35 = vmin.f32 %v9252_v30, 20.0  ;;  %v9267_v20 = vmul.f32 100.0, %v9258_v39 }
 0x54d   : > { %v4448_v46 = vmul.f32 0.01, %v4200_v14  ;;  %vm9270_vm13 = vcmp.lt.f32.partialorder %v4270_v31, 0.0004427343  ;;  %vm4042_vm14 = vcmp.gt.f32.partialorder %v9112_v11, 20.0  ;;  %v9277_v16 = vadd.f32 %v9028_v38, %v8865_v8 }
 0x54e   : > { %v5766_v2 = vpop.eup %5765  ;;  %5777 = vpow2.f32 %v4148_v53  ;;  %v4269_v19 = vmul.f32 %v5752_v54, %v4268_v4  ;;  %vm9279_vm2 = vcmp.lt.f32.partialorder %v4288_v56, 0.0004427343  ;;  %v4165_v14 = vadd.f32 1.0, %v9007_v58 }
 0x54f   : > { %v4336_v22 = vadd.f32 1.0, %v5766_v2  ;;  %v4218_v31 = vsel %vm9238_vm11, %v4215_v6, %v4212_v27  ;;  %v4287_v7 = vmul.f32 %v5754_v62, %v4286_v48  ;;  %5779 = vpow2.f32 %v4134_v29 }
 0x550   : > { %v4152_v39 = vmul.f32 1.442695, %v4090_v35  ;;  %v4138_v8 = vmul.f32 1.442695, %v4083_v57  ;;  %v4089_v38 = vmin.f32 %v9267_v20, 20.0  ;;  %v4339_v56 = vmul.f32 -0.5, %v5766_v2 }
 0x551   : > { %5781 = vlog2.f32 %v4336_v22  ;;  %v9290_v15 = vmul.f32 100.0, %v9277_v16  ;;  %v9297_v62 = vsel %vm4032_vm0, %v8984_v25, %v4448_v46  ;;  %v4450_v27 = vmul.f32 0.01, %v4218_v31 }
 0x552   : > { %v5768_v10 = vpop.eup %5767  ;;  %5783 = vpow2.f32 %v4152_v39  ;;  %v4168_v6 = vmul.f32 -0.5, %v9007_v58  ;;  %v4342_v35 = vand.u32 2147483647, %v5766_v2  ;;  %v4150_v22 = vmul.f32 1.442695, %v4089_v38 }
 0x553   : > { %v5770_v53 = vpop.eup %5769  ;;  %v4266_v17 = vmul.f32 0.6931472, %v5768_v10  ;;  %5785 = vlog2.f32 %v4165_v14  ;;  %v4340_v36 = vadd.f32 1.0, %v4339_v56  ;;  %v4183_v38 = vadd.f32 1.0, %v9054_v59 }
 0x554   : > { %v9287_v54 = vpop.eup %5771  ;;  %v4284_v4 = vmul.f32 0.6931472, %v5770_v53  ;;  %5787 = vpow2.f32 %v4138_v8  ;;  %v4169_v10 = vadd.f32 1.0, %v4168_v6  ;;  %vm9330_vm4 = vcmp.lt.f32.partialorder %v4342_v35, 0.0004427343 }
 0x555   : > { %v9292_v47 = vpop.eup %5773  ;;  %v4272_v57 = vsel %vm9270_vm13, %v4269_v19, %v4266_v17  ;;  %v4091_v17 = vmin.f32 %v9290_v15, 20.0  ;;  %v4341_v53 = vmul.f32 %v5766_v2, %v4340_v36  ;;  %vm4048_vm5 = vcmp.gt.f32.partialorder %v9186_v5, 20.0 }
 0x556   : > { %v4456_v45 = vmul.f32 0.01, %v4272_v57  ;;  %v4290_v48 = vsel %vm9279_vm2, %v4287_v7, %v4284_v4  ;;  %v4354_v39 = vadd.f32 1.0, %v9292_v47  ;;  %v9311_v46 = vpop.eup %5775  ;;  %v9316_v7 = vsel %vm4034_vm12, %v9046_v49, %v4450_v27 }
 0x557   : > { %v4458_v29 = vmul.f32 0.01, %v4290_v48  ;;  %v4357_v14 = vmul.f32 -0.5, %v9292_v47  ;;  %v4237_v49 = vadd.f32 1.0, %v9030_v41  ;;  %v4360_v31 = vand.u32 2147483647, %v9292_v47 }
 0x558   : > { %v9308_v25 = vsel %vm4040_vm1, %v9074_v33, %v4456_v45  ;;  %5789 = vlog2.f32 %v4354_v39  ;;  %v4171_v33 = vand.u32 2147483647, %v9007_v58  ;;  %v5778_v19 = vpop.eup %5777  ;;  %v9337_v8 = vmul.f32 1.442695, %v4091_v17 }
 0x559   : > { %v9323_v40 = vsel %vm4042_vm14, %v9078_v51, %v4458_v29  ;;  %v4408_v11 = vadd.f32 1.0, %v5778_v19  ;;  %5791 = vpow2.f32 %v4150_v22  ;;  %v9335_v51 = vpop.eup %5779  ;;  %v4411_v56 = vmul.f32 -0.5, %v5778_v19 }
 0x55a   : > { %5793 = vlog2.f32 %v4237_v49  ;;  %v4240_v27 = vmul.f32 -0.5, %v9030_v41  ;;  %v4186_v57 = vmul.f32 -0.5, %v9054_v59  ;;  %v4358_v39 = vadd.f32 1.0, %v4357_v14 }
 0x55b   : > { %v5782_v4 = vpop.eup %5781  ;;  %5795 = vlog2.f32 %v4408_v11  ;;  %v4170_v6 = vmul.f32 %v9007_v58, %v4169_v10  ;;  %vm9344_vm15 = vcmp.lt.f32.partialorder %v4360_v31, 0.0004427343  ;;  %v4414_v35 = vand.u32 2147483647, %v5778_v19 }
 0x55c   : > { %v5784_v45 = vpop.eup %5783  ;;  %v4338_v48 = vmul.f32 0.6931472, %v5782_v4  ;;  %5797 = vlog2.f32 %v4183_v38  ;;  %vm9350_vm3 = vcmp.lt.f32.partialorder %v4171_v33, 0.0004427343  ;;  %v4243_v14 = vand.u32 2147483647, %v9030_v41 }
 0x55d   : > { %v5786_v2 = vpop.eup %5785  ;;  %v4426_v22 = vadd.f32 1.0, %v5784_v45  ;;  %v4429_v36 = vmul.f32 -0.5, %v5784_v45  ;;  %vm4029_vm6 = vcmp.gt.f32.partialorder %v8881_v3, 20.0  ;;  %v4412_v10 = vadd.f32 1.0, %v4411_v56 }
 0x55e   : > { %v4344_v17 = vsel %vm9330_vm4, %v4341_v53, %v4338_v48  ;;  %v4167_v49 = vmul.f32 0.6931472, %v5786_v2  ;;  %v9355_v58 = vpop.eup %5787  ;;  %v4241_v31 = vadd.f32 1.0, %v4240_v27  ;;  %v4187_v38 = vadd.f32 1.0, %v4186_v57 }
 0x55f   : > { %5799 = vlog2.f32 %v4426_v22  ;;  %v4464_v24 = vmul.f32 0.01, %v4344_v17  ;;  %v4430_v34 = vadd.f32 1.0, %v4429_v36  ;;  %v4432_v13 = vand.u32 2147483647, %v5784_v45 }
 0x560   : > { %v4255_v53 = vadd.f32 1.0, %v9066_v50  ;;  %vm4037_vm7 = vcmp.gt.f32.partialorder %v8884_v21, 20.0  ;;  %v4359_v33 = vmul.f32 %v9292_v47, %v4358_v39  ;;  %vm9361_vm9 = vcmp.lt.f32.partialorder %v4414_v35, 0.0004427343 }
 0x561   : > { %v4173_v56 = vsel %vm9350_vm3, %v4170_v6, %v4167_v49  ;;  %v4258_v27 = vmul.f32 -0.5, %v9066_v50  ;;  %vm4056_vm10 = vcmp.gt.f32.partialorder %v9230_v63, 20.0  ;;  %vm9369_vm11 = vcmp.lt.f32.partialorder %v4243_v14, 0.0004427343  ;;  %v10345_v14 = vld [vmem:[#allocation17_spill] sm:$0xff] }
 0x562   : > { %v5790_v4 = vpop.eup %5789  ;;  %v4189_v22 = vand.u32 2147483647, %v9054_v59  ;;  %5801 = vlog2.f32 %v4255_v53  ;;  %v4413_v39 = vmul.f32 %v5778_v19, %v4412_v10  ;;  %v4242_v35 = vmul.f32 %v9030_v41, %v4241_v31 }
 0x563   : > { %v4356_v57 = vmul.f32 0.6931472, %v5790_v4  ;;  %v9374_v47 = vpop.eup %5791  ;;  %v4188_v36 = vmul.f32 %v9054_v59, %v4187_v38  ;;  %v4309_v6 = vadd.f32 1.0, %v9100_v0  ;;  %v9382_v49 = vsel %vm4048_vm5, %v9166_v12, %v4464_v24 }
 0x564   : > { %v5794_v17 = vpop.eup %5793  ;;  %vm4050_vm0 = vcmp.gt.f32.partialorder %v9206_v1, 20.0  ;;  %v4431_v11 = vmul.f32 %v5784_v45, %v4430_v34  ;;  %vm9385_vm1 = vcmp.lt.f32.partialorder %v4432_v13, 0.0004427343  ;;  %v4445_v19 = vmul.f32 0.01, %v4173_v56  ;;  %v10344_v34 = vld [vmem:[#allocation10_spill] sm:$0xff] }
 0x565   : > { %v5796_v10 = vpop.eup %5795  ;;  %v4239_v41 = vmul.f32 0.6931472, %v5794_v17  ;;  %v4259_v31 = vadd.f32 1.0, %v4258_v27  ;;  %5803 = vlog2.f32 %v4309_v6  ;;  %v4381_v59 = vadd.f32 1.0, %v9227_v42 }
 0x566   : > { %v5798_v38 = vpop.eup %5797  ;;  %v4362_v5 = vsel %vm9344_vm15, %v4359_v33, %v4356_v57  ;;  %v4410_v12 = vmul.f32 0.6931472, %v5796_v10  ;;  %vm4058_vm12 = vcmp.gt.f32.partialorder %v9252_v30, 20.0  ;;  %vm9393_vm13 = vcmp.lt.f32.partialorder %v4189_v22, 0.0004427343  ;;  %v10339_v57 = vld [vmem:[#allocation14_spill] sm:$0xff] }
 0x567   : > { %v4312_v24 = vmul.f32 -0.5, %v9100_v0  ;;  %v4245_v45 = vsel %vm9369_vm11, %v4242_v35, %v4239_v41  ;;  %v4185_v4 = vmul.f32 0.6931472, %v5798_v38  ;;  %v4261_v13 = vand.u32 2147483647, %v9066_v50  ;;  %v10340_v22 = vld [vmem:[#allocation25_spill] sm:$0xff] }
 0x568   : > { %5805 = vlog2.f32 %v4381_v59  ;;  %v4416_v29 = vsel %vm9361_vm9, %v4413_v39, %v4410_v12  ;;  %v4453_v53 = vmul.f32 0.01, %v4245_v45  ;;  %v4477_v33 = vsel %vm4029_vm6, %v8854_v61, %v4445_v19  ;;  %v10341_v39 = vld [vmem:[#allocation18_spill] sm:$0xff] }
 0x569   : > { %v4384_v56 = vmul.f32 -0.5, %v9227_v42  ;;  %v5800_v27 = vpop.eup %5799  ;;  %vm4031_vm14 = vcmp.gt.f32.partialorder %v10339_v57, 20.0  ;;  %vm4039_vm2 = vcmp.gt.f32.partialorder %v10340_v22, 20.0  ;;  %v4466_v2 = vmul.f32 0.01, %v4362_v5 }
 0x56a   : > { %v4472_v35 = vmul.f32 0.01, %v4416_v29  ;;  %v4260_v6 = vmul.f32 %v9066_v50, %v4259_v31  ;;  %v4327_v17 = vadd.f32 1.0, %v9132_v32  ;;  %v4428_v48 = vmul.f32 0.6931472, %v5800_v27 }
 0x56b   : > { %v4485_v10 = vsel %vm4037_vm7, %v10341_v39, %v4453_v53  ;;  %v4313_v3 = vadd.f32 1.0, %v4312_v24  ;;  %v4315_v61 = vand.u32 2147483647, %v9100_v0  ;;  %v4191_v59 = vsel %vm9393_vm13, %v4188_v36, %v4185_v4  ;;  %v10353_v39 = vld [vmem:[#allocation11_spill] sm:$0xff] }
 0x56c   : > { %v9418_v19 = vsel %vm4056_vm10, %v9210_v18, %v4472_v35  ;;  %v5201_v41 = vpack.c.bf16 %v4485_v10, %v4477_v33  ;;  %5807 = vlog2.f32 %v4327_v17  ;;  %v5802_v50 = vpop.eup %5801  ;;  %v4434_v21 = vsel %vm9385_vm1, %v4431_v11, %v4428_v48  ;;  %v10346_v11 = vld [vmem:[#allocation26_spill] sm:$0xff] }
 0x56d   : > { %v5223_v31 = vpack.c.bf16 %v9418_v19, %v9382_v49  ;;  %vm9426_vm4 = vcmp.lt.f32.partialorder %v4261_v13, 0.0004427343  ;;  %v4385_v5 = vadd.f32 1.0, %v4384_v56  ;;  %v9433_v18 = vsel %vm4050_vm0, %v9177_v60, %v4466_v2  ;;  %v10357_v13 = vld [vmem:[#allocation16_spill] sm:$0xff] }
 0x56e   : > { %v4474_v63 = vmul.f32 0.01, %v4434_v21  ;;  %5202 = vmatprep.subr.bf16.mxu0 %v5201_v41  ;;  %v4257_v36 = vmul.f32 0.6931472, %v5802_v50  ;;  %v4387_v12 = vand.u32 2147483647, %v9227_v42  ;;  %v10347_v45 = vpack.c.bf16 %v10345_v14, %v10346_v11 }
 0x56f   : > { %vm4045_vm5 = vcmp.gt.f32.partialorder %v10344_v34, 20.0  ;;  %v4447_v24 = vmul.f32 0.01, %v4191_v59  ;;  %v4314_v4 = vmul.f32 %v9100_v0, %v4313_v3  ;;  %vm9441_vm15 = vcmp.lt.f32.partialorder %v4315_v61, 0.0004427343  ;;  %v5804_v1 = vpop.eup %5803 }
 0x570   : > { %5204 = vmatpush1.bf16.msra.mxu0 %v10347_v45  ;;  %v4399_v60 = vadd.f32 1.0, %v9245_v43  ;;  %v9449_v29 = vsel %vm4058_vm12, %v9234_v23, %v4474_v63  ;;  %v4263_v53 = vsel %vm9426_vm4, %v4260_v6, %v4257_v36  ;;  %v4330_v33 = vmul.f32 -0.5, %v9132_v32  ;;  %v10352_v6 = vld [vmem:[#allocation31_spill] sm:$0xff] }
 0x571   : > { %v4201_v56 = vadd.f32 1.0, %v9254_v44  ;;  %v5231_v0 = vpack.c.bf16 %v9449_v29, %v9433_v18  ;;  %v4455_v27 = vmul.f32 0.01, %v4263_v53  ;;  %v4311_v2 = vmul.f32 0.6931472, %v5804_v1  ;;  %v10359_v1 = vld [vmem:[#allocation19_spill] sm:$0xff]  ;;  %v4522_v18 = vpop.permute.xlu1 %4521 }
 0x572   : > { %5809 = vlog2.f32 %v4399_v60  ;;  %v5806_v35 = vpop.eup %5805  ;;  %v4386_v17 = vmul.f32 %v9227_v42, %v4385_v5  ;;  %vm9458_vm3 = vcmp.lt.f32.partialorder %v4387_v12, 0.0004427343  ;;  %v4402_v23 = vmul.f32 -0.5, %v9245_v43  ;;  %v10354_v12 = vld [vmem:[#allocation12_spill] sm:$0xff]  ;;  %v10358_v60 = vld [vmem:[#allocation9_spill] sm:$0xff] }
 0x573   : > { %5811 = vlog2.f32 %v4201_v56  ;;  %v4479_v48 = vsel %vm4031_vm14, %v10352_v6, %v4447_v24  ;;  %v4487_v10 = vsel %vm4039_vm2, %v10353_v39, %v4455_v27  ;;  %v4317_v3 = vsel %vm9441_vm15, %v4314_v4, %v4311_v2  ;;  %v10355_v24 = vld [vmem:[#allocation13_spill] sm:$0xff] }
 0x574   : > { %v4383_v61 = vmul.f32 0.6931472, %v5806_v35  ;;  %v5209_v42 = vpack.c.bf16 %v4487_v10, %v4479_v48  ;;  %v4461_v41 = vmul.f32 0.01, %v4317_v3  ;;  %v4331_v59 = vadd.f32 1.0, %v4330_v33 }
 0x575   : > { %v4204_v50 = vmul.f32 -0.5, %v9254_v44  ;;  %vm4053_vm6 = vcmp.gt.f32.partialorder %v9050_v52, 20.0  ;;  %v4333_v57 = vand.u32 2147483647, %v9132_v32  ;;  %v4273_v38 = vadd.f32 1.0, %v9287_v54 }
 0x576   : > { %v4389_v21 = vsel %vm9458_vm3, %v4386_v17, %v4383_v61  ;;  %v5808_v22 = vpop.eup %5807  ;;  %5813 = vpow2.f32 %v9337_v8  ;;  %5210 = vmatprep.subr.bf16.mxu1 %v5209_v42  ;;  %v4403_v63 = vadd.f32 1.0, %v4402_v23  ;;  %v4405_v36 = vand.u32 2147483647, %v9245_v43  ;;  %v9518_v61 = vld [vmem:[%s9759_s10] sm:$0xff] }
 0x577   : > { %v4469_v5 = vmul.f32 0.01, %v4389_v21  ;;  %v10356_v14 = vpack.c.bf16 %v10354_v12, %v10355_v24  ;;  %v4329_v11 = vmul.f32 0.6931472, %v5808_v22  ;;  %v4207_v45 = vand.u32 2147483647, %v9254_v44 }
 0x578   : > { %5815 = vlog2.f32 %v4273_v38  ;;  %v4219_v4 = vadd.f32 1.0, %v9260_v26  ;;  %vm4047_vm7 = vcmp.gt.f32.partialorder %v10357_v13, 20.0  ;;  %v4493_v8 = vsel %vm4045_vm5, %v10358_v60, %v4461_v41  ;;  %v10367_v21 = vld [vmem:[#allocation28_spill] sm:$0xff] }
 0x579   : > { %5212 = vmatpush1.bf16.msra.mxu1 %v10356_v14  ;;  %v4501_v53 = vsel %vm4053_vm6, %v10359_v1, %v4469_v5  ;;  %v4332_v33 = vmul.f32 %v9132_v32, %v4331_v59  ;;  %v4205_v56 = vadd.f32 1.0, %v4204_v50  ;;  %vm4055_vm9 = vcmp.gt.f32.partialorder %v9120_v55, 20.0  ;;  %v9542_v12 = vld [vmem:[%s9759_s10 + $0x8] sm:$0xff] }
 0x57a   : > { %v5205_v27 = vpack.c.bf16 %v4501_v53, %v4493_v8  ;;  %vm9493_vm10 = vcmp.lt.f32.partialorder %v4333_v57, 0.0004427343  ;;  %5817 = vlog2.f32 %v4219_v4  ;;  %vm9499_vm11 = vcmp.lt.f32.partialorder %v4405_v36, 0.0004427343  ;;  %v10371_v4 = vld [vmem:[#allocation15_spill] sm:$0xff]  ;;  %v10372_v8 = vld [vmem:[#allocation24_spill] sm:$0xff] }
 0x57b   : > { %v4335_v35 = vsel %vm9493_vm10, %v4332_v33, %v4329_v11  ;;  %v4276_v52 = vmul.f32 -0.5, %v9287_v54  ;;  %v4291_v32 = vadd.f32 1.0, %v9311_v46  ;;  %v4404_v30 = vmul.f32 %v9245_v43, %v4403_v63 }
 0x57c   : > { %v5810_v17 = vpop.eup %5809  ;;  %5206 = vmatprep.subr.bf16.mxu0 %v5205_v27  ;;  %vm9506_vm0 = vcmp.lt.f32.partialorder %v4207_v45, 0.0004427343  ;;  %v4279_v6 = vand.u32 2147483647, %v9287_v54  ;;  %v4345_v48 = vadd.f32 1.0, %v9335_v51  ;;  %v10366_v3 = vpack.c.bf16 %v9154_v37, %v9147_v28 }
 0x57d   : > { %v5812_v39 = vpop.eup %5811  ;;  %v4401_v10 = vmul.f32 0.6931472, %v5810_v17  ;;  %v4206_v43 = vmul.f32 %v9254_v44, %v4205_v56  ;;  %v4222_v42 = vmul.f32 -0.5, %v9260_v26  ;;  %5819 = vlog2.f32 %v4291_v32 }
 0x57e   : > { %5208 = vmatpush1.bf16.msra.mxu0 %v10366_v3  ;;  %v4463_v41 = vmul.f32 0.01, %v4335_v35  ;;  %v4203_v59 = vmul.f32 0.6931472, %v5812_v39  ;;  %v4294_v50 = vmul.f32 -0.5, %v9311_v46  ;;  %5821 = vlog2.f32 %v4345_v48  ;;  %v10376_v48 = vld [vmem:[#allocation22_spill] sm:$0xff] }
 0x57f   : > { %vm4033_vm1 = vcmp.gt.f32.partialorder %v9124_v9, 20.0  ;;  %vm4041_vm12 = vcmp.gt.f32.partialorder %v10367_v21, 20.0  ;;  %v4407_v28 = vsel %vm9499_vm11, %v4404_v30, %v4401_v10  ;;  %v4277_v37 = vadd.f32 1.0, %v4276_v52  ;;  %v9569_v30 = vld [vmem:[%s9759_s10 + $0x10] sm:$0x1] }
 0x580   : > { %v4348_v57 = vmul.f32 -0.5, %v9335_v51  ;;  %v4417_v44 = vadd.f32 1.0, %v9374_v47  ;;  %v4471_v38 = vmul.f32 0.01, %v4407_v28  ;;  %vm9531_vm13 = vcmp.lt.f32.partialorder %v4279_v6, 0.0004427343  ;;  %v9536_v63 = vpop.eup %5813 }
 0x581   : > { %5080 = vmatmul.mubr.msk.f32.vlgmr.msra.gmra.mrb[64].mxu0 %vm1381_vm8, %v9518_v61  ;;  %v4225_v5 = vand.u32 2147483647, %v9260_v26  ;;  %v10370_v36 = vmov 0.0   ;;  %v4209_v24 = vsel %vm9506_vm0, %v4206_v43, %v4203_v59  ;;  %v4223_v14 = vadd.f32 1.0, %v4222_v42  ;;  %v10375_v6 = vld [vmem:[#allocation34_spill] sm:$0xff] }
 0x582   : > { %4608 = vmatprep.mubr.f32.mxu0 %v10370_v36  ;;  %v4297_v11 = vand.u32 2147483647, %v9311_v46  ;;  %5823 = vlog2.f32 %v4417_v44  ;;  %v5816_v45 = vpop.eup %5815  ;;  %v4495_v60 = vsel %vm4047_vm7, %v10371_v4, %v4463_v41  ;;  %v4503_v1 = vsel %vm4055_vm9, %v10372_v8, %v4471_v38  ;;  %v10384_v4 = vld [vmem:[#allocation21_spill] sm:$0xff] }
 0x583   : > { %v4295_v53 = vadd.f32 1.0, %v4294_v50  ;;  %v4363_v33 = vadd.f32 1.0, %v9355_v58  ;;  %v5213_v56 = vpack.c.bf16 %v4503_v1, %v4495_v60  ;;  %v4275_v27 = vmul.f32 0.6931472, %v5816_v45 }
 0x584   : > { %v4278_v2 = vmul.f32 %v9287_v54, %v4277_v37  ;;  %v4349_v35 = vadd.f32 1.0, %v4348_v57  ;;  %v5818_v34 = vpop.eup %5817  ;;  %v4449_v52 = vmul.f32 0.01, %v4209_v24  ;;  %vm9557_vm14 = vcmp.lt.f32.partialorder %v4225_v5, 0.0004427343  ;;  %v10380_v37 = vld [vmem:[#allocation33_spill] sm:$0xff] }
 0x585   : > { %5081 = vmatmul.mubr.msk.f32.gmra.mrb[66].mxu0 %vm1381_vm8, %v9542_v12  ;;  %v4420_v55 = vmul.f32 -0.5, %v9374_v47  ;;  %5825 = vlog2.f32 %v4363_v33  ;;  %5214 = vmatprep.subr.bf16.mxu1 %v5213_v56  ;;  %v4221_v17 = vmul.f32 0.6931472, %v5818_v34  ;;  %v4224_v54 = vmul.f32 %v9260_v26, %v4223_v14  ;;  %v10381_v57 = vld [vmem:[#allocation32_spill] sm:$0xff] }
 0x586   : > { %v4281_v32 = vsel %vm9531_vm13, %v4278_v2, %v4275_v27  ;;  %4614 = vmatprep.mubr.f32.mxu0 %v10370_v36  ;;  %v4435_v23 = vadd.f32 1.0, %v9536_v63  ;;  %v10377_v39 = vpack.c.bf16 %v10375_v6, %v10376_v48  ;;  %v4296_v3 = vmul.f32 %v9311_v46, %v4295_v53  ;;  %v10385_v53 = vld [vmem:[#allocation23_spill] sm:$0xff]  ;;  %v10389_v48 = vld [vmem:[#allocation8_spill] sm:$0xff] }
 0x587   : > { %v4457_v10 = vmul.f32 0.01, %v4281_v32  ;;  %vm9576_vm2 = vcmp.lt.f32.partialorder %v4297_v11, 0.0004427343  ;;  %v4351_v26 = vand.u32 2147483647, %v9335_v51  ;;  %v5820_v42 = vpop.eup %5819  ;;  %v4227_v41 = vsel %vm9557_vm14, %v4224_v54, %v4221_v17 }
 0x588   : > { %5216 = vmatpush1.bf16.msra.mxu1 %v10377_v39  ;;  %v4350_v59 = vmul.f32 %v9335_v51, %v4349_v35  ;;  %v4366_v50 = vmul.f32 -0.5, %v9355_v58  ;;  %5827 = vlog2.f32 %v4435_v23  ;;  %v5822_v28 = vpop.eup %5821  ;;  %v4481_v46 = vsel %vm4033_vm1, %v10380_v37, %v4449_v52  ;;  %v10387_v35 = vld [vmem:[#allocation20_spill] sm:$0xff]  ;;  %v10388_v52 = vld [vmem:[#allocation7_spill] sm:$0xff]  ;;  %v10394_v37 = vld [vmem:[#allocation30_spill] sm:$0xff] }
 0x589   : > { %v4489_v44 = vsel %vm4041_vm12, %v10381_v57, %v4457_v10  ;;  %v4293_v38 = vmul.f32 0.6931472, %v5820_v42  ;;  %5082 = vmatmul.mubr.msk.f32.gmra.mrb[68].mxu0 %vm1381_vm8, %v9569_v30  ;;  %v4421_v22 = vadd.f32 1.0, %v4420_v55  ;;  %v4451_v5 = vmul.f32 0.01, %v4227_v41 }
 0x58a   : > { %v5217_v51 = vpack.c.bf16 %v4489_v44, %v4481_v46  ;;  %v4347_v24 = vmul.f32 0.6931472, %v5822_v28  ;;  %v4423_v14 = vand.u32 2147483647, %v9374_v47  ;;  %4768 = vmatprep.mubr.f32.mxu0 %v10370_v36  ;;  %vm9600_vm4 = vcmp.lt.f32.partialorder %v4351_v26, 0.0004427343 }
 0x58b   : > { %5083 = vmatmul.mubr.msk.f32.vlgmr.msra.gmra.mrb[64].mxu1 %vm1381_vm8, %v9518_v61  ;;  %v4299_v9 = vsel %vm9576_vm2, %v4296_v3, %v4293_v38  ;;  %v4438_v11 = vmul.f32 -0.5, %v9536_v63  ;;  %vm4035_vm5 = vcmp.gt.f32.partialorder %v10384_v4, 20.0  ;;  %v4367_v1 = vadd.f32 1.0, %v4366_v50  ;;  %v10391_v3 = vld [vmem:[#allocation27_spill] sm:$0xff]  ;;  %v10392_v26 = vld [vmem:[#allocation36_spill] sm:$0xff] }
 0x58c   : > { %4691 = vmatprep.mubr.f32.mxu1 %v10370_v36  ;;  %v5824_v45 = vpop.eup %5823  ;;  %5218 = vmatprep.subr.bf16.mxu0 %v5217_v51  ;;  %v4459_v60 = vmul.f32 0.01, %v4299_v9  ;;  %v4353_v8 = vsel %vm9600_vm4, %v4350_v59, %v4347_v24  ;;  %vm4043_vm15 = vcmp.gt.f32.partialorder %v10385_v53, 20.0  ;;  %v10386_v33 = vpack.c.bf16 %v9308_v25, %v9297_v62 }
 0x58d   : > { %v4419_v56 = vmul.f32 0.6931472, %v5824_v45  ;;  %v4422_v27 = vmul.f32 %v9374_v47, %v4421_v22  ;;  %v4369_v2 = vand.u32 2147483647, %v9355_v58  ;;  %v4483_v34 = vsel %vm4035_vm5, %v10387_v35, %v4451_v5 }
 0x58e   : > { %5220 = vmatpush1.bf16.msra.mxu0 %v10386_v33  ;;  %v4491_v13 = vsel %vm4043_vm15, %v10388_v52, %v4459_v60  ;;  %vm4424_vm3 = vcmp.lt.f32.partialorder %v4423_v14, 0.0004427343  ;;  %v4465_v55 = vmul.f32 0.01, %v4353_v8  ;;  %v4439_v25 = vadd.f32 1.0, %v4438_v11 }
 0x58f   : > { %5084 = vmatmul.mubr.msk.f32.gmra.mrb[66].mxu1 %vm1381_vm8, %v9542_v12  ;;  %v5826_v32 = vpop.eup %5825  ;;  %v5225_v17 = vpack.c.bf16 %v4491_v13, %v4483_v34  ;;  %v4425_v62 = vsel %vm4424_vm3, %v4422_v27, %v4419_v56  ;;  %v4368_v47 = vmul.f32 %v9355_v58, %v4367_v1  ;;  %v4441_v6 = vand.u32 2147483647, %v9536_v63 }
 0x590   : > { %4697 = vmatprep.mubr.f32.mxu1 %v10370_v36  ;;  %v4473_v54 = vmul.f32 0.01, %v4425_v62  ;;  %v4365_v23 = vmul.f32 0.6931472, %v5826_v32  ;;  %vm4049_vm6 = vcmp.gt.f32.partialorder %v10389_v48, 20.0  ;;  %vm4057_vm7 = vcmp.gt.f32.partialorder %v9267_v20, 20.0 }
 0x591   : > { %5226 = vmatprep.subr.bf16.mxu1 %v5225_v17  ;;  %vm4370_vm9 = vcmp.lt.f32.partialorder %v4369_v2, 0.0004427343  ;;  %v10390_v10 = vpack.c.bf16 %v9323_v40, %v9316_v7  ;;  %v4497_v43 = vsel %vm4049_vm6, %v10391_v3, %v4465_v55  ;;  %v4440_v50 = vmul.f32 %v9536_v63, %v4439_v25  ;;  %v10393_v40 = vld [vmem:[#allocation38_spill] sm:$0xff] }
 0x592   : > { %v5828_v39 = vpop.eup %5827  ;;  %v4505_v42 = vsel %vm4057_vm7, %v10392_v26, %v4473_v54  ;;  %v4371_v41 = vsel %vm4370_vm9, %v4368_v47, %v4365_v23  ;;  %vm4442_vm10 = vcmp.lt.f32.partialorder %v4441_v6, 0.0004427343  ;;  %vm4051_vm11 = vcmp.gt.f32.partialorder %v10393_v40, 20.0 }
 0x593   : > { %5228 = vmatpush1.bf16.msra.mxu1 %v10390_v10  ;;  %v5221_v58 = vpack.c.bf16 %v4505_v42, %v4497_v43  ;;  %v4437_v59 = vmul.f32 0.6931472, %v5828_v39  ;;  %v4467_v20 = vmul.f32 0.01, %v4371_v41  ;;  %vm4059_vm0 = vcmp.gt.f32.partialorder %v9290_v15, 20.0  ;;  %v4517_v15 = vpop.permute.xlu0 %4516 }
 0x594   : > { %5085 = vmatmul.mubr.msk.f32.gmra.mrb[68].mxu1 %vm1381_vm8, %v9569_v30 }
 0x595   : > { %4851 = vmatprep.mubr.f32.mxu1 %v10370_v36  ;;  %5222 = vmatprep.subr.bf16.mxu0 %v5221_v58  ;;  %v4443_v28 = vsel %vm4442_vm10, %v4440_v50, %v4437_v59  ;;  %v4499_v46 = vsel %vm4051_vm11, %v10394_v37, %v4467_v20 }
 0x596   : > { %v4475_v7 = vmul.f32 0.01, %v4443_v28  ;;  %5224 = vmatpush1.bf16.msra.mxu0 %v5223_v31 }
 0x598   : > { %v4507_v63 = vsel %vm4059_vm0, %v9277_v16, %v4475_v7 }
 0x599   : > { %v5229_v57 = vpack.c.bf16 %v4507_v63, %v4499_v46  ;;  %5086 = vmatmul.mubr.msk.f32.vlgmr.msra.gmra.mrb[70].mxu0 %vm1381_vm8, %v9518_v61 }
 0x59a   : > { %4774 = vmatprep.mubr.f32.mxu0 %v10370_v36 }
 0x59b   : > { %5230 = vmatprep.subr.bf16.mxu1 %v5229_v57 }
 0x59c   : > { %5232 = vmatpush1.bf16.msra.mxu1 %v5231_v0 }
 0x59d   : > { %5087 = vmatmul.mubr.msk.f32.gmra.mrb[72].mxu0 %vm1381_vm8, %v9542_v12 }
 0x59e   : > { %4780 = vmatprep.mubr.f32.mxu0 %v10370_v36 }
 0x59f   : > { %5089 = vmatmul.mubr.msk.f32.vlgmr.msra.gmra.mrb[70].mxu1 %vm1381_vm8, %v9518_v61 }
 0x5a0   : > { %4857 = vmatprep.mubr.f32.mxu1 %v10370_v36 }
 0x5a1   : > { %5088 = vmatmul.mubr.msk.f32.gmra.mrb[74].mxu0 %vm1381_vm8, %v9569_v30 }
 0x5a3   : > { %5090 = vmatmul.mubr.msk.f32.gmra.mrb[72].mxu1 %vm1381_vm8, %v9542_v12  ;;  %v9666_v12 = vpop.permute.xlu0 %4526 }
 0x5a4   : > { %4863 = vmatprep.mubr.f32.mxu1 %v10370_v36 }
 0x5a7   : > { %5091 = vmatmul.mubr.msk.f32.gmra.mrb[74].mxu1 %vm1381_vm8, %v9569_v30 }
 0x654   : > { %v4604_v16 = vpop.f32.mrb[64].mxu0 }
 0x655   : > { %v4605_v49 = vadd.f32 %v4604_v16, %v4517_v15  ;;  %v4606_v19 = vpop.f32.mrb[65].mxu0 }
 0x656   : > { %v4607_v31 = vadd.f32 %v4606_v19, %v4517_v15 }
 0x657   : > { %4870 = vst [vmem:[%s9661_s26] sm:$0xff] %v4605_v49 }
 0x658   : > { %4871 = vst [vmem:[%s9661_s26 + $0x8] sm:$0xff] %v4607_v31  ;;  %v4610_v29 = vpop.f32.mrb[66].mxu0 }
 0x659   : > { %v4611_v0 = vadd.f32 %v4610_v29, %v4522_v18  ;;  %v4612_v61 = vpop.f32.mrb[67].mxu0 }
 0x65a   : > { %v4613_v36 = vadd.f32 %v4612_v61, %v4522_v18 }
 0x65b   : > { %4878 = vst [vmem:[%s9661_s26 + $0x40] sm:$0xff] %v4611_v0 }
 0x65c   : > { %4879 = vst [vmem:[%s9661_s26 + $0x48] sm:$0xff] %v4613_v36  ;;  %v4616_v30 = vpop.f32.mrb[68].mxu0 }
 0x65d   : > { %v4617_v38 = vadd.f32 %v4616_v30, %v9666_v12  ;;  %v4618_v22 = vpop.f32.mrb[69].mxu0 }
 0x65e   : > { %v4687_v44 = vpop.f32.mrb[64].mxu1  ;;  %v4619_v24 = vadd.f32 %v4618_v22, %v9666_v12 }
 0x65f   : > { %v4688_v51 = vadd.f32 %v4687_v44, %v4517_v15  ;;  %v4689_v5 = vpop.f32.mrb[65].mxu1  ;;  %4886 = vst [vmem:[%s9661_s26 + $0x80] sm:$0x1] %v4617_v38 }
 0x660   : > { %v4690_v14 = vadd.f32 %v4689_v5, %v4517_v15  ;;  %4887 = vst [vmem:[%s9661_s26 + $0x88] sm:$0x1] %v4619_v24 }
 0x661   : > { %4872 = vst [vmem:[%s9661_s26 + $0x10] sm:$0xff] %v4688_v51 }
 0x662   : > { %4873 = vst [vmem:[%s9661_s26 + $0x18] sm:$0xff] %v4690_v14  ;;  %v4693_v9 = vpop.f32.mrb[66].mxu1 }
 0x663   : > { %v4694_v21 = vadd.f32 %v4693_v9, %v4522_v18  ;;  %v4695_v11 = vpop.f32.mrb[67].mxu1 }
 0x664   : > { %v4696_v45 = vadd.f32 %v4695_v11, %v4522_v18 }
 0x665   : > { %4880 = vst [vmem:[%s9661_s26 + $0x50] sm:$0xff] %v4694_v21 }
 0x666   : > { %4881 = vst [vmem:[%s9661_s26 + $0x58] sm:$0xff] %v4696_v45 }
 0x667   : > { %v4699_v4 = vpop.f32.mrb[68].mxu1 }
 0x668   : > { %v4700_v60 = vadd.f32 %v4699_v4, %v9666_v12  ;;  %v4701_v8 = vpop.f32.mrb[69].mxu1 }
 0x669   : > { %v4702_v1 = vadd.f32 %v4701_v8, %v9666_v12 }
 0x66a   : > { %4888 = vst [vmem:[%s9661_s26 + $0x90] sm:$0x1] %v4700_v60 }
 0x66b   : > { %4889 = vst [vmem:[%s9661_s26 + $0x98] sm:$0x1] %v4702_v1 }
 0x66c   : > { %v4770_v53 = vpop.f32.mrb[70].mxu0 }
 0x66d   : > { %v4771_v33 = vadd.f32 %v4770_v53, %v4517_v15  ;;  %v4772_v56 = vpop.f32.mrb[71].mxu0 }
 0x66e   : > { %v4773_v27 = vadd.f32 %v4772_v56, %v4517_v15 }
 0x66f   : > { %4874 = vst [vmem:[%s9661_s26 + $0x20] sm:$0xff] %v4771_v33 }
 0x670   : > { %4875 = vst [vmem:[%s9661_s26 + $0x28] sm:$0xff] %v4773_v27  ;;  %v4776_v2 = vpop.f32.mrb[72].mxu0 }
 0x671   : > { %v4777_v35 = vadd.f32 %v4776_v2, %v4522_v18  ;;  %v4778_v34 = vpop.f32.mrb[73].mxu0 }
 0x672   : > { %v4853_v52 = vpop.f32.mrb[70].mxu1  ;;  %v4779_v13 = vadd.f32 %v4778_v34, %v4522_v18 }
 0x673   : > { %v4854_v55 = vadd.f32 %v4853_v52, %v4517_v15  ;;  %v4855_v32 = vpop.f32.mrb[71].mxu1  ;;  %4882 = vst [vmem:[%s9661_s26 + $0x60] sm:$0xff] %v4777_v35 }
 0x674   : > { %v4856_v17 = vadd.f32 %v4855_v32, %v4517_v15  ;;  %4883 = vst [vmem:[%s9661_s26 + $0x68] sm:$0xff] %v4779_v13  ;;  %v4782_v62 = vpop.f32.mrb[74].mxu0 }
 0x675   : > { %4876 = vst [vmem:[%s9661_s26 + $0x30] sm:$0xff] %v4854_v55  ;;  %v4783_v25 = vadd.f32 %v4782_v62, %v9666_v12  ;;  %v4784_v54 = vpop.f32.mrb[75].mxu0 }
 0x676   : > { %4877 = vst [vmem:[%s9661_s26 + $0x38] sm:$0xff] %v4856_v17  ;;  %v4859_v23 = vpop.f32.mrb[72].mxu1  ;;  %v4785_v47 = vadd.f32 %v4784_v54, %v9666_v12 }
 0x677   : > { %v4860_v6 = vadd.f32 %v4859_v23, %v4522_v18  ;;  %v4861_v48 = vpop.f32.mrb[73].mxu1  ;;  %4890 = vst [vmem:[%s9661_s26 + $0xa0] sm:$0x1] %v4783_v25 }
 0x678   : > { %v4862_v39 = vadd.f32 %v4861_v48, %v4522_v18  ;;  %4891 = vst [vmem:[%s9661_s26 + $0xa8] sm:$0x1] %v4785_v47 }
 0x679   : > { %4884 = vst [vmem:[%s9661_s26 + $0x70] sm:$0xff] %v4860_v6 }
 0x67a   : > { %4885 = vst [vmem:[%s9661_s26 + $0x78] sm:$0xff] %v4862_v39  ;;  %v4865_v10 = vpop.f32.mrb[74].mxu1 }
 0x67b   : > { %v4866_v3 = vadd.f32 %v4865_v10, %v9666_v12  ;;  %v4867_v43 = vpop.f32.mrb[75].mxu1 }
 0x67c   : > { %v4868_v26 = vadd.f32 %v4867_v43, %v9666_v12 }
 0x67d   : > { %4892 = vst [vmem:[%s9661_s26 + $0xb0] sm:$0x1] %v4866_v3 }
 0x67e   : > { %4893 = vst [vmem:[%s9661_s26 + $0xb8] sm:$0x1] %v4868_v26 }
 0x67f   : > { %5846 = shalt.err (!%p5843_p3)
}
 0x680   : > { %s5847_s19 = scalar_lea.hbm %s9698_s15, 3072  ;;  %s5851_s16 = scalar_lea.hbm %s9761_s12, 9216 }
 0x681   : > { %p5848_p4 = scmp.ne.s32.totalorder %s9698_s15, %s5847_s19  ;;  %p5852_p9 = scmp.lt.u32.totalorder %s9698_s15, %s9761_s12 }
 0x682   : > { %p5853_p10 = scmp.lt.u32.totalorder %s5851_s16, %s5847_s19  ;;  %p5855_p12 = scmp.lt.u32.totalorder %s5847_s19, %s9698_s15 }
 0x683   : > { %p5849_p7 = pnand %p5848_p4, %p6007_p5 }
 0x684   : > { %p5854_p11 = por %p5853_p10, %p5852_p9 }
 0x685   : > { %p5850_p8 = pneg %p5849_p7 }
 0x686   : > { %p5856_p13 = por %p5855_p12, %p5854_p11 }
 0x688   : > { %p5857_p0 = pnand %p5856_p13, %p5850_p8 }
 0x68a   : > { %5860 = shalt.err (!%p5857_p0)
}
 0x68b   : > { %s5901_s18 = smov 1024   ;;  %s5902_s30 = smov 3072  }
 0x68c   : > { %s5903_s20 = smov 64  }
 0x68d   : > { %5266 = dma.vmem_to_hbm [thread:$0]  (%p6007_p5), %s9701_s29, 3072, %s9698_s15, %s9708_s25, %s5901_s18, %s5902_s30, %s5903_s20  }
 0x68e PF: > { %p5272_p1 = scmp.ge.s32.totalorder %s5895_s24, 2  ;;  %s4923_s26 = sand.u32 1, %s5883_s21  }
 0x68f   : > { %s4924_s19 = scalar_lea.sflag [#allocation3], %s4923_s26 }
 0x690   : > { %p5269_p2 = pnand %p5272_p1, %p6011_p6 }
 0x692   : > { %5878 = dma.done.wait (!%p5269_p2), %s4924_s19, 3072  }
 0x693   : > { %5880 = vsyncadd (!%p5269_p2), %s4924_s19, 4294964224  ;;  %s10395_s28 = sld [smem:[#allocation5_spill]]  ;;  %s10396_s23 = sld [smem:[#allocation6_spill]] }
 0x694   : > { %p22_p3 = scmp.ge.s32.totalorder %s5994_s27, 5   ;;  %s10397_s21 = smov %s5887_s22 }
 0x695   : > { %s10399_s24 = smov %s5994_s27 }
 0x696   :  { %24 = sbr.rel (!%p22_p3) target bundleno = 3 (0x3), region = 103 }
 0x699   : > { %s10398_s22 = smov %s10395_s28 }
 0x69d   :  { %4929 = vsyncpa [#allocation3], 1 }
 0x69e   :  { %4931 = vsyncpa [#allocation3 + $0x1], 1 }

</bundles_post_ra>
